<compile_context>
chip_gen: v6e
topology: v6e:2x2x1
jax: 0.10.0
libtpu: 0.0.40
codegen_flags: <defaults>
</compile_context>

<pallas_src>
import functools

import jax
import jax.numpy as jnp
import numpy as np
from jax.experimental import pallas as pl
from jax.experimental.pallas import tpu as pltpu


_LAYER_ORDER = ["conv4", "conv5", "conv6", "conv7",
                "conv1", "conv2", "conv9", "conv10"]
_LAYER_DILS = (1, 2, 4, 1, 1, 1, 1, 1)


# ------------------------------ fused kernel ------------------------------- #
def _fused_kernel(f_ref, a_ref, w8_ref, b8_ref, w1_ref, b1_ref, o_ref,
                  buf0, buf1, *, H, W, C, dils, maxd):
    Wp = W + 2 * maxd          # per-row width incl. left+right halo columns
    HWp = H * Wp               # lane-dense "interior slab" length
    base = maxd * Wp + maxd    # flat offset of pixel (0, 0) in the padded buffer

    # Ping-pong buffers are channel-major flat (C, Hp*Wp + 2*maxd): C=8 maps to
    # sublanes, all spatial positions map to lanes.  Zeroing both buffers is now
    # ~10 vreg stores total, so halo-only zeroing isn't worth masked stores.
    buf0[...] = jnp.zeros_like(buf0)
    buf1[...] = jnp.zeros_like(buf1)

    # Validity mask for the 2*maxd pad columns appended to each row; hoisted out
    # of the layer loop (broadcasts are not CSE'd).
    col = jax.lax.broadcasted_iota(jnp.int32, (C, HWp), 1)
    valid = (col % Wp) < W

    # attend: feats * attn on a lane-dense (C, HWp) slab.  The wrapper already
    # right-padded each row with zeros, so pad columns stay zero and buf0's halo
    # remains a correct zero padding for every dilation <= maxd.
    buf0[:, base:base + HWp] = (f_ref[0] * a_ref[0]).astype(jnp.float32)

    bufs = (buf0, buf1)
    for li, d in enumerate(dils):                     # static unroll, 8 layers
        src = bufs[li % 2]
        dst = bufs[(li + 1) % 2]

        # Transposed im2col: taps are lane-shifted slices of the flat buffer,
        # stacked along the sublane axis -> (9C, HWp).  All offsets are static.
        taps = []
        for ky in range(3):
            for kx in range(3):
                off = base + (ky - 1) * d * Wp + (kx - 1) * d
                taps.append(src[:, off:off + HWp])
        patches = jnp.concatenate(taps, axis=0)       # (9C, HWp)

        # (C, 9C) @ (9C, HWp): MXU N dim is lane-dense; bias+ReLU run on
        # (C, HWp) fully-used vregs.
        # TODO(synk): operands could be cast to bf16 (keeping f32 accumulation)
        # on v5e/v6e/v7x for extra MXU headroom; kept f32 to hold the
        # 5e-4/1e-5 test tolerance against the f32 lax reference.
        acc = jnp.dot(w8_ref[li], patches, preferred_element_type=jnp.float32)
        acc = jnp.maximum(acc + b8_ref[li], 0.0)      # bias + ReLU
        # Zero the pad columns before writing: they land exactly on dst's
        # left/right halo columns, which must stay zero for the next layer.
        dst[:, base:base + HWp] = jnp.where(valid, acc, 0.0)

    final = bufs[len(dils) % 2]
    slab = final[:, base:base + HWp]                  # (C, HWp)
    # 1x1 conv transposed: (1, C) @ (C, HWp) -> lane-dense (1, HWp); sigmoid and
    # the output store are full-lane, unmasked ops.
    y = jnp.dot(w1_ref[...], slab, preferred_element_type=jnp.float32) + b1_ref[...]
    o_ref[...] = jax.nn.sigmoid(y).reshape(o_ref.shape).astype(o_ref.dtype)


# --------------------------------- wrapper ---------------------------------- #
def _padded_block_bytes(shape, itemsize=4):
    """Bytes of a block after (8, 128) lane/sublane padding."""
    dims = list(shape)
    dims[-1] = pl.cdiv(dims[-1], 128) * 128
    if len(dims) >= 2:
        dims[-2] = pl.cdiv(dims[-2], 8) * 8
    return int(np.prod(dims)) * itemsize


def filter_attention_forward(params, feats, attn):
    """feats: (B,H,W,dim) NHWC, attn: (B,H,W,1) NHWC -> (B,H,W,1)."""
    B, H, W, C = feats.shape
    maxd = max(_LAYER_DILS)
    Wp = W + 2 * maxd
    Hp = H + 2 * maxd
    HWp = H * Wp
    L = Hp * Wp + 2 * maxd            # flat scratch length (covers extreme taps)
    n_layers = len(_LAYER_ORDER)

    # ---- host-side layout plumbing (cheap XLA ops, done once) ----
    # channel-major, each row right-padded by 2*maxd zeros, flattened -> the
    # kernel's lane-dense interior-slab layout.
    def to_slab(x):                                   # (B,H,W,c) -> (B,c,H*Wp)
        x = jnp.transpose(x, (0, 3, 1, 2))
        x = jnp.pad(x, ((0, 0), (0, 0), (0, 0), (0, 2 * maxd)))
        return x.reshape(B, x.shape[1], HWp)

    feats_p = to_slab(feats)
    attn_p = to_slab(attn)

    # Pre-transposed, pre-stacked weights (stay resident via constant index_map).
    w8t = jnp.stack([params[n][0].reshape(9 * C, C).T for n in _LAYER_ORDER])  # (8,C,9C)
    b8 = jnp.stack([params[n][1].reshape(C, 1) for n in _LAYER_ORDER])         # (8,C,1)
    w1t = params["conv3"][0].T                                                 # (1,C)
    b1 = params["conv3"][1]                                                    # (1,1)

    # Explicit VMEM budget from the actual lane/sublane-padded footprint
    # (matters on v7x's 64 MiB VMEM; trivially satisfied at these shapes).
    blocks = [(1, C, HWp), (1, 1, HWp), (n_layers, C, 9 * C), (n_layers, C, 1),
              (1, C), (1, 1), (1, 1, HWp)]
    footprint = 2 * sum(_padded_block_bytes(s) for s in blocks)   # double-buffered
    footprint += 2 * _padded_block_bytes((C, L))                  # scratch
    vmem_limit = max(4 * 1024 * 1024, 2 * footprint)

    kernel = functools.partial(_fused_kernel, H=H, W=W, C=C,
                               dils=_LAYER_DILS, maxd=maxd)
    out_p = pl.pallas_call(
        kernel,
        out_shape=jax.ShapeDtypeStruct((B, 1, HWp), feats.dtype),
        grid=(B,),
        in_specs=[
            pl.BlockSpec((1, C, HWp), lambda b: (b, 0, 0)),
            pl.BlockSpec((1, 1, HWp), lambda b: (b, 0, 0)),
            pl.BlockSpec((n_layers, C, 9 * C), lambda b: (0, 0, 0)),
            pl.BlockSpec((n_layers, C, 1), lambda b: (0, 0, 0)),
            pl.BlockSpec((1, C), lambda b: (0, 0)),
            pl.BlockSpec((1, 1), lambda b: (0, 0)),
        ],
        out_specs=pl.BlockSpec((1, 1, HWp), lambda b: (b, 0, 0)),
        scratch_shapes=[
            pltpu.VMEM((C, L), jnp.float32),   # ping
            pltpu.VMEM((C, L), jnp.float32),   # pong
        ],
        compiler_params=pltpu.CompilerParams(
            dimension_semantics=("parallel",),
            vmem_limit_bytes=vmem_limit),
    )(feats_p, attn_p, w8t, b8, w1t, b1)

    # Strip the per-row pad columns and restore NHWC.
    return out_p.reshape(B, H, Wp)[:, :, :W][..., None]


# ------------------------- parameter construction -------------------------- #
def init_params(key, dim):
    """Deterministic kaiming-normal 3x3 weights, PyTorch-style uniform biases."""
    params = {}
    keys = jax.random.split(key, 2 * (len(_LAYER_ORDER) + 1))
    for i, name in enumerate(_LAYER_ORDER):
        fan_in = dim * 3 * 3
        std = np.sqrt(2.0 / fan_in)                       # kaiming_normal_, a=0
        w = std * jax.random.normal(keys[2 * i], (3, 3, dim, dim), jnp.float32)
        bound = 1.0 / np.sqrt(fan_in)
        b = jax.random.uniform(keys[2 * i + 1], (1, dim), jnp.float32,
                               -bound, bound)
        params[name] = (w, b)
    # conv3: 1x1, dim -> 1
    fan_in = dim
    std = np.sqrt(2.0 / fan_in)
    w3 = std * jax.random.normal(keys[-2], (dim, 1), jnp.float32)
    bound = 1.0 / np.sqrt(fan_in)
    b3 = jax.random.uniform(keys[-1], (1, 1), jnp.float32, -bound, bound)
    params["conv3"] = (w3, b3)
    return params


# ------------------------------ reference ---------------------------------- #
def _ref_forward(params, feats, attn):
    out = feats * attn
    for name, dil in zip(_LAYER_ORDER, _LAYER_DILS):
        w, b = params[name]
        out = jax.lax.conv_general_dilated(
            out, w, window_strides=(1, 1), padding=((dil, dil), (dil, dil)),
            rhs_dilation=(dil, dil),
            dimension_numbers=("NHWC", "HWIO", "NHWC")) + b[0]
        out = jnp.maximum(out, 0.0)
    w3, b3 = params["conv3"]
    out = jax.lax.conv_general_dilated(
        out, w3[None, None], window_strides=(1, 1), padding="VALID",
        dimension_numbers=("NHWC", "HWIO", "NHWC")) + b3[0]
    return jax.nn.sigmoid(out)


if __name__ == "__main__":
    B, dim, H, W = 2, 8, 16, 16
    key = jax.random.PRNGKey(0)
    k_feats, k_attn, k_params = jax.random.split(key, 3)

    feats = jax.random.normal(k_feats, (B, H, W, dim), jnp.float32)
    attn = jax.random.uniform(k_attn, (B, H, W, 1), jnp.float32)
    params = init_params(k_params, dim)

    out = jax.block_until_ready(filter_attention_forward(params, feats, attn))
    ref = jax.block_until_ready(_ref_forward(params, feats, attn))

    assert out.shape == (B, H, W, 1)
    np.testing.assert_allclose(np.asarray(out), np.asarray(ref),
                               rtol=5e-4, atol=1e-5)
    print("KERNEL_OK")
</pallas_src>

<mosaic_0001>
module attributes {stable_mosaic.version = 11 : i64} {
  func.func @_fused_kernel(%arg0: i32, %arg1: memref<1x8x384xf32, #tpu.memory_space<vmem>>, %arg2: memref<1x1x384xf32, #tpu.memory_space<vmem>>, %arg3: memref<8x8x72xf32, #tpu.memory_space<vmem>>, %arg4: memref<8x8x1xf32, #tpu.memory_space<vmem>>, %arg5: memref<1x8xf32, #tpu.memory_space<vmem>>, %arg6: memref<1x1xf32, #tpu.memory_space<vmem>>, %arg7: memref<1x1x384xf32, #tpu.memory_space<vmem>>, %arg8: memref<8x584xf32, #tpu.memory_space<vmem>>, %arg9: memref<8x584xf32, #tpu.memory_space<vmem>>) attributes {dimension_semantics = [#tpu.dimension_semantics<parallel>], iteration_bounds = array<i64: 2>, scalar_prefetch = 0 : i64, scratch_operands = 2 : i64, tpu.core_type = #tpu.core_type<tc>, window_params = [{transform_indices = @transform_0, window_bounds = array<i64: 1, 8, 384>}, {transform_indices = @transform_1, window_bounds = array<i64: 1, 1, 384>}, {pipeline_mode = #tpu.pipeline_mode<synchronous>, transform_indices = @transform_2, window_bounds = array<i64: 8, 8, 72>}, {pipeline_mode = #tpu.pipeline_mode<synchronous>, transform_indices = @transform_3, window_bounds = array<i64: 8, 8, 1>}, {pipeline_mode = #tpu.pipeline_mode<synchronous>, transform_indices = @transform_4, window_bounds = array<i64: 1, 8>}, {pipeline_mode = #tpu.pipeline_mode<synchronous>, transform_indices = @transform_5, window_bounds = array<i64: 1, 1>}, {transform_indices = @transform_6, window_bounds = array<i64: 1, 1, 384>}]} {
    %cst = arith.constant 0.000000e+00 : f32
    %0 = vector.broadcast %cst : f32 to vector<8x584xf32>
    %c0 = arith.constant 0 : index
    %c0_0 = arith.constant 0 : index
    %1 = vector.load %arg8[%c0, %c0_0] : memref<8x584xf32, #tpu.memory_space<vmem>>, vector<8x584xf32>
    tpu.vector_store %arg8[%c0, %c0_0], %0 {strides = array<i32>} : memref<8x584xf32, #tpu.memory_space<vmem>>, vector<8x584xf32>,
    %cst_1 = arith.constant 0.000000e+00 : f32
    %2 = vector.broadcast %cst_1 : f32 to vector<8x584xf32>
    %c0_2 = arith.constant 0 : index
    %c0_3 = arith.constant 0 : index
    %3 = vector.load %arg9[%c0_2, %c0_3] : memref<8x584xf32, #tpu.memory_space<vmem>>, vector<8x584xf32>
    tpu.vector_store %arg9[%c0_2, %c0_3], %2 {strides = array<i32>} : memref<8x584xf32, #tpu.memory_space<vmem>>, vector<8x584xf32>,
    %4 = tpu.iota {dimensions = array<i32: 1>} : vector<8x384xi32>
    %c24_i32 = arith.constant 24 : i32
    %c0_i32 = arith.constant 0 : i32
    %5 = arith.cmpi eq, %c24_i32, %c0_i32 : i32
    %c1_i32 = arith.constant 1 : i32
    %6 = arith.select %5, %c1_i32, %c24_i32 : i32
    %7 = vector.broadcast %6 : i32 to vector<8x384xi32>
    %8 = arith.remsi %4, %7 : vector<8x384xi32>
    %c0_i32_4 = arith.constant 0 : i32
    %9 = vector.broadcast %c0_i32_4 : i32 to vector<8x384xi32>
    %10 = arith.cmpi ne, %8, %9 : vector<8x384xi32>
    %c0_i32_5 = arith.constant 0 : i32
    %11 = vector.broadcast %c0_i32_5 : i32 to vector<8x384xi32>
    %12 = arith.cmpi slt, %8, %11 : vector<8x384xi32>
    %c0_i32_6 = arith.constant 0 : i32
    %13 = arith.cmpi slt, %6, %c0_i32_6 : i32
    %14 = vector.broadcast %13 : i1 to vector<8x384xi1>
    %15 = vector.broadcast %14 : vector<8x384xi1> to vector<8x384xi1>
    %16 = arith.xori %12, %15 : vector<8x384xi1>
    %17 = arith.andi %16, %10 : vector<8x384xi1>
    %18 = vector.broadcast %6 : i32 to vector<8x384xi32>
    %19 = arith.addi %8, %18 : vector<8x384xi32>
    %20 = arith.select %17, %19, %8 : vector<8x384xi1>, vector<8x384xi32>
    %c16_i32 = arith.constant 16 : i32
    %21 = vector.broadcast %c16_i32 : i32 to vector<8x384xi32>
    %22 = arith.cmpi slt, %20, %21 : vector<8x384xi32>
    %c0_7 = arith.constant 0 : index
    %c0_8 = arith.constant 0 : index
    %c0_9 = arith.constant 0 : index
    %23 = vector.load %arg1[%c0_7, %c0_8, %c0_9] : memref<1x8x384xf32, #tpu.memory_space<vmem>>, vector<1x8x384xf32>
    %24 = vector.shape_cast %23 : vector<1x8x384xf32> to vector<8x384xf32>
    %c0_10 = arith.constant 0 : index
    %c0_11 = arith.constant 0 : index
    %c0_12 = arith.constant 0 : index
    %25 = vector.load %arg2[%c0_10, %c0_11, %c0_12] : memref<1x1x384xf32, #tpu.memory_space<vmem>>, vector<1x1x384xf32>
    %26 = vector.shape_cast %25 : vector<1x1x384xf32> to vector<1x384xf32>
    %27 = vector.broadcast %26 : vector<1x384xf32> to vector<8x384xf32>
    %28 = arith.mulf %24, %27 : vector<8x384xf32>
    %c0_13 = arith.constant 0 : index
    %c100 = arith.constant 100 : index
    %29 = vector.load %arg8[%c0_13, %c100] : memref<8x584xf32, #tpu.memory_space<vmem>>, vector<8x384xf32>
    tpu.vector_store %arg8[%c0_13, %c100], %28 {strides = array<i32>} : memref<8x584xf32, #tpu.memory_space<vmem>>, vector<8x384xf32>,
    %c0_14 = arith.constant 0 : index
    %c75 = arith.constant 75 : index
    %30 = vector.load %arg8[%c0_14, %c75] : memref<8x584xf32, #tpu.memory_space<vmem>>, vector<8x384xf32>
    %c0_15 = arith.constant 0 : index
    %c76 = arith.constant 76 : index
    %31 = vector.load %arg8[%c0_15, %c76] : memref<8x584xf32, #tpu.memory_space<vmem>>, vector<8x384xf32>
    %c0_16 = arith.constant 0 : index
    %c77 = arith.constant 77 : index
    %32 = vector.load %arg8[%c0_16, %c77] : memref<8x584xf32, #tpu.memory_space<vmem>>, vector<8x384xf32>
    %c0_17 = arith.constant 0 : index
    %c99 = arith.constant 99 : index
    %33 = vector.load %arg8[%c0_17, %c99] : memref<8x584xf32, #tpu.memory_space<vmem>>, vector<8x384xf32>
    %c0_18 = arith.constant 0 : index
    %c100_19 = arith.constant 100 : index
    %34 = vector.load %arg8[%c0_18, %c100_19] : memref<8x584xf32, #tpu.memory_space<vmem>>, vector<8x384xf32>
    %c0_20 = arith.constant 0 : index
    %c101 = arith.constant 101 : index
    %35 = vector.load %arg8[%c0_20, %c101] : memref<8x584xf32, #tpu.memory_space<vmem>>, vector<8x384xf32>
    %c0_21 = arith.constant 0 : index
    %c123 = arith.constant 123 : index
    %36 = vector.load %arg8[%c0_21, %c123] : memref<8x584xf32, #tpu.memory_space<vmem>>, vector<8x384xf32>
    %c0_22 = arith.constant 0 : index
    %c124 = arith.constant 124 : index
    %37 = vector.load %arg8[%c0_22, %c124] : memref<8x584xf32, #tpu.memory_space<vmem>>, vector<8x384xf32>
    %c0_23 = arith.constant 0 : index
    %c125 = arith.constant 125 : index
    %38 = vector.load %arg8[%c0_23, %c125] : memref<8x584xf32, #tpu.memory_space<vmem>>, vector<8x384xf32>
    %39 = tpu.concatenate %30, %31, %32, %33, %34, %35, %36, %37, %38 in 0 : vector<8x384xf32>, vector<8x384xf32>, vector<8x384xf32>, vector<8x384xf32>, vector<8x384xf32>, vector<8x384xf32>, vector<8x384xf32>, vector<8x384xf32>, vector<8x384xf32> -> vector<72x384xf32>
    %c0_24 = arith.constant 0 : index
    %c0_25 = arith.constant 0 : index
    %c0_26 = arith.constant 0 : index
    %40 = vector.load %arg3[%c0_24, %c0_25, %c0_26] : memref<8x8x72xf32, #tpu.memory_space<vmem>>, vector<1x8x72xf32>
    %41 = vector.shape_cast %40 : vector<1x8x72xf32> to vector<8x72xf32>
    %cst_27 = arith.constant dense<0.000000e+00> : vector<8x384xf32>
    %42 = tpu.matmul %41, %39, %cst_27 {dimension_numbers = #tpu.dot_dimension_numbers<[1], [0], [0], [1], [0, 0, 1, 1], [], []>} : vector<8x72xf32>, vector<72x384xf32>, vector<8x384xf32> -> vector<8x384xf32>
    %c0_28 = arith.constant 0 : index
    %c0_29 = arith.constant 0 : index
    %c0_30 = arith.constant 0 : index
    %43 = vector.load %arg4[%c0_28, %c0_29, %c0_30] : memref<8x8x1xf32, #tpu.memory_space<vmem>>, vector<1x8x1xf32>
    %44 = vector.shape_cast %43 : vector<1x8x1xf32> to vector<8x1xf32>
    %45 = vector.broadcast %44 : vector<8x1xf32> to vector<8x384xf32>
    %46 = arith.addf %42, %45 : vector<8x384xf32>
    %cst_31 = arith.constant 0.000000e+00 : f32
    %47 = vector.broadcast %cst_31 : f32 to vector<8x384xf32>
    %48 = arith.maximumf %46, %47 : vector<8x384xf32>
    %cst_32 = arith.constant 0.000000e+00 : f32
    %49 = vector.broadcast %cst_32 : f32 to vector<8x384xf32>
    %50 = arith.select %22, %48, %49 : vector<8x384xi1>, vector<8x384xf32>
    %c0_33 = arith.constant 0 : index
    %c100_34 = arith.constant 100 : index
    %51 = vector.load %arg9[%c0_33, %c100_34] : memref<8x584xf32, #tpu.memory_space<vmem>>, vector<8x384xf32>
    tpu.vector_store %arg9[%c0_33, %c100_34], %50 {strides = array<i32>} : memref<8x584xf32, #tpu.memory_space<vmem>>, vector<8x384xf32>,
    %c0_35 = arith.constant 0 : index
    %c50 = arith.constant 50 : index
    %52 = vector.load %arg9[%c0_35, %c50] : memref<8x584xf32, #tpu.memory_space<vmem>>, vector<8x384xf32>
    %c0_36 = arith.constant 0 : index
    %c52 = arith.constant 52 : index
    %53 = vector.load %arg9[%c0_36, %c52] : memref<8x584xf32, #tpu.memory_space<vmem>>, vector<8x384xf32>
    %c0_37 = arith.constant 0 : index
    %c54 = arith.constant 54 : index
    %54 = vector.load %arg9[%c0_37, %c54] : memref<8x584xf32, #tpu.memory_space<vmem>>, vector<8x384xf32>
    %c0_38 = arith.constant 0 : index
    %c98 = arith.constant 98 : index
    %55 = vector.load %arg9[%c0_38, %c98] : memref<8x584xf32, #tpu.memory_space<vmem>>, vector<8x384xf32>
    %c0_39 = arith.constant 0 : index
    %c100_40 = arith.constant 100 : index
    %56 = vector.load %arg9[%c0_39, %c100_40] : memref<8x584xf32, #tpu.memory_space<vmem>>, vector<8x384xf32>
    %c0_41 = arith.constant 0 : index
    %c102 = arith.constant 102 : index
    %57 = vector.load %arg9[%c0_41, %c102] : memref<8x584xf32, #tpu.memory_space<vmem>>, vector<8x384xf32>
    %c0_42 = arith.constant 0 : index
    %c146 = arith.constant 146 : index
    %58 = vector.load %arg9[%c0_42, %c146] : memref<8x584xf32, #tpu.memory_space<vmem>>, vector<8x384xf32>
    %c0_43 = arith.constant 0 : index
    %c148 = arith.constant 148 : index
    %59 = vector.load %arg9[%c0_43, %c148] : memref<8x584xf32, #tpu.memory_space<vmem>>, vector<8x384xf32>
    %c0_44 = arith.constant 0 : index
    %c150 = arith.constant 150 : index
    %60 = vector.load %arg9[%c0_44, %c150] : memref<8x584xf32, #tpu.memory_space<vmem>>, vector<8x384xf32>
    %61 = tpu.concatenate %52, %53, %54, %55, %56, %57, %58, %59, %60 in 0 : vector<8x384xf32>, vector<8x384xf32>, vector<8x384xf32>, vector<8x384xf32>, vector<8x384xf32>, vector<8x384xf32>, vector<8x384xf32>, vector<8x384xf32>, vector<8x384xf32> -> vector<72x384xf32>
    %c1 = arith.constant 1 : index
    %c0_45 = arith.constant 0 : index
    %c0_46 = arith.constant 0 : index
    %62 = vector.load %arg3[%c1, %c0_45, %c0_46] : memref<8x8x72xf32, #tpu.memory_space<vmem>>, vector<1x8x72xf32>
    %63 = vector.shape_cast %62 : vector<1x8x72xf32> to vector<8x72xf32>
    %cst_47 = arith.constant dense<0.000000e+00> : vector<8x384xf32>
    %64 = tpu.matmul %63, %61, %cst_47 {dimension_numbers = #tpu.dot_dimension_numbers<[1], [0], [0], [1], [0, 0, 1, 1], [], []>} : vector<8x72xf32>, vector<72x384xf32>, vector<8x384xf32> -> vector<8x384xf32>
    %c1_48 = arith.constant 1 : index
    %c0_49 = arith.constant 0 : index
    %c0_50 = arith.constant 0 : index
    %65 = vector.load %arg4[%c1_48, %c0_49, %c0_50] : memref<8x8x1xf32, #tpu.memory_space<vmem>>, vector<1x8x1xf32>
    %66 = vector.shape_cast %65 : vector<1x8x1xf32> to vector<8x1xf32>
    %67 = vector.broadcast %66 : vector<8x1xf32> to vector<8x384xf32>
    %68 = arith.addf %64, %67 : vector<8x384xf32>
    %cst_51 = arith.constant 0.000000e+00 : f32
    %69 = vector.broadcast %cst_51 : f32 to vector<8x384xf32>
    %70 = arith.maximumf %68, %69 : vector<8x384xf32>
    %cst_52 = arith.constant 0.000000e+00 : f32
    %71 = vector.broadcast %cst_52 : f32 to vector<8x384xf32>
    %72 = arith.select %22, %70, %71 : vector<8x384xi1>, vector<8x384xf32>
    %c0_53 = arith.constant 0 : index
    %c100_54 = arith.constant 100 : index
    %73 = vector.load %arg8[%c0_53, %c100_54] : memref<8x584xf32, #tpu.memory_space<vmem>>, vector<8x384xf32>
    tpu.vector_store %arg8[%c0_53, %c100_54], %72 {strides = array<i32>} : memref<8x584xf32, #tpu.memory_space<vmem>>, vector<8x384xf32>,
    %c0_55 = arith.constant 0 : index
    %c0_56 = arith.constant 0 : index
    %74 = vector.load %arg8[%c0_55, %c0_56] : memref<8x584xf32, #tpu.memory_space<vmem>>, vector<8x384xf32>
    %c0_57 = arith.constant 0 : index
    %c4 = arith.constant 4 : index
    %75 = vector.load %arg8[%c0_57, %c4] : memref<8x584xf32, #tpu.memory_space<vmem>>, vector<8x384xf32>
    %c0_58 = arith.constant 0 : index
    %c8 = arith.constant 8 : index
    %76 = vector.load %arg8[%c0_58, %c8] : memref<8x584xf32, #tpu.memory_space<vmem>>, vector<8x384xf32>
    %c0_59 = arith.constant 0 : index
    %c96 = arith.constant 96 : index
    %77 = vector.load %arg8[%c0_59, %c96] : memref<8x584xf32, #tpu.memory_space<vmem>>, vector<8x384xf32>
    %c0_60 = arith.constant 0 : index
    %c100_61 = arith.constant 100 : index
    %78 = vector.load %arg8[%c0_60, %c100_61] : memref<8x584xf32, #tpu.memory_space<vmem>>, vector<8x384xf32>
    %c0_62 = arith.constant 0 : index
    %c104 = arith.constant 104 : index
    %79 = vector.load %arg8[%c0_62, %c104] : memref<8x584xf32, #tpu.memory_space<vmem>>, vector<8x384xf32>
    %c0_63 = arith.constant 0 : index
    %c192 = arith.constant 192 : index
    %80 = vector.load %arg8[%c0_63, %c192] : memref<8x584xf32, #tpu.memory_space<vmem>>, vector<8x384xf32>
    %c0_64 = arith.constant 0 : index
    %c196 = arith.constant 196 : index
    %81 = vector.load %arg8[%c0_64, %c196] : memref<8x584xf32, #tpu.memory_space<vmem>>, vector<8x384xf32>
    %c0_65 = arith.constant 0 : index
    %c200 = arith.constant 200 : index
    %82 = vector.load %arg8[%c0_65, %c200] : memref<8x584xf32, #tpu.memory_space<vmem>>, vector<8x384xf32>
    %83 = tpu.concatenate %74, %75, %76, %77, %78, %79, %80, %81, %82 in 0 : vector<8x384xf32>, vector<8x384xf32>, vector<8x384xf32>, vector<8x384xf32>, vector<8x384xf32>, vector<8x384xf32>, vector<8x384xf32>, vector<8x384xf32>, vector<8x384xf32> -> vector<72x384xf32>
    %c2 = arith.constant 2 : index
    %c0_66 = arith.constant 0 : index
    %c0_67 = arith.constant 0 : index
    %84 = vector.load %arg3[%c2, %c0_66, %c0_67] : memref<8x8x72xf32, #tpu.memory_space<vmem>>, vector<1x8x72xf32>
    %85 = vector.shape_cast %84 : vector<1x8x72xf32> to vector<8x72xf32>
    %cst_68 = arith.constant dense<0.000000e+00> : vector<8x384xf32>
    %86 = tpu.matmul %85, %83, %cst_68 {dimension_numbers = #tpu.dot_dimension_numbers<[1], [0], [0], [1], [0, 0, 1, 1], [], []>} : vector<8x72xf32>, vector<72x384xf32>, vector<8x384xf32> -> vector<8x384xf32>
    %c2_69 = arith.constant 2 : index
    %c0_70 = arith.constant 0 : index
    %c0_71 = arith.constant 0 : index
    %87 = vector.load %arg4[%c2_69, %c0_70, %c0_71] : memref<8x8x1xf32, #tpu.memory_space<vmem>>, vector<1x8x1xf32>
    %88 = vector.shape_cast %87 : vector<1x8x1xf32> to vector<8x1xf32>
    %89 = vector.broadcast %88 : vector<8x1xf32> to vector<8x384xf32>
    %90 = arith.addf %86, %89 : vector<8x384xf32>
    %cst_72 = arith.constant 0.000000e+00 : f32
    %91 = vector.broadcast %cst_72 : f32 to vector<8x384xf32>
    %92 = arith.maximumf %90, %91 : vector<8x384xf32>
    %cst_73 = arith.constant 0.000000e+00 : f32
    %93 = vector.broadcast %cst_73 : f32 to vector<8x384xf32>
    %94 = arith.select %22, %92, %93 : vector<8x384xi1>, vector<8x384xf32>
    %c0_74 = arith.constant 0 : index
    %c100_75 = arith.constant 100 : index
    %95 = vector.load %arg9[%c0_74, %c100_75] : memref<8x584xf32, #tpu.memory_space<vmem>>, vector<8x384xf32>
    tpu.vector_store %arg9[%c0_74, %c100_75], %94 {strides = array<i32>} : memref<8x584xf32, #tpu.memory_space<vmem>>, vector<8x384xf32>,
    %c0_76 = arith.constant 0 : index
    %c75_77 = arith.constant 75 : index
    %96 = vector.load %arg9[%c0_76, %c75_77] : memref<8x584xf32, #tpu.memory_space<vmem>>, vector<8x384xf32>
    %c0_78 = arith.constant 0 : index
    %c76_79 = arith.constant 76 : index
    %97 = vector.load %arg9[%c0_78, %c76_79] : memref<8x584xf32, #tpu.memory_space<vmem>>, vector<8x384xf32>
    %c0_80 = arith.constant 0 : index
    %c77_81 = arith.constant 77 : index
    %98 = vector.load %arg9[%c0_80, %c77_81] : memref<8x584xf32, #tpu.memory_space<vmem>>, vector<8x384xf32>
    %c0_82 = arith.constant 0 : index
    %c99_83 = arith.constant 99 : index
    %99 = vector.load %arg9[%c0_82, %c99_83] : memref<8x584xf32, #tpu.memory_space<vmem>>, vector<8x384xf32>
    %c0_84 = arith.constant 0 : index
    %c100_85 = arith.constant 100 : index
    %100 = vector.load %arg9[%c0_84, %c100_85] : memref<8x584xf32, #tpu.memory_space<vmem>>, vector<8x384xf32>
    %c0_86 = arith.constant 0 : index
    %c101_87 = arith.constant 101 : index
    %101 = vector.load %arg9[%c0_86, %c101_87] : memref<8x584xf32, #tpu.memory_space<vmem>>, vector<8x384xf32>
    %c0_88 = arith.constant 0 : index
    %c123_89 = arith.constant 123 : index
    %102 = vector.load %arg9[%c0_88, %c123_89] : memref<8x584xf32, #tpu.memory_space<vmem>>, vector<8x384xf32>
    %c0_90 = arith.constant 0 : index
    %c124_91 = arith.constant 124 : index
    %103 = vector.load %arg9[%c0_90, %c124_91] : memref<8x584xf32, #tpu.memory_space<vmem>>, vector<8x384xf32>
    %c0_92 = arith.constant 0 : index
    %c125_93 = arith.constant 125 : index
    %104 = vector.load %arg9[%c0_92, %c125_93] : memref<8x584xf32, #tpu.memory_space<vmem>>, vector<8x384xf32>
    %105 = tpu.concatenate %96, %97, %98, %99, %100, %101, %102, %103, %104 in 0 : vector<8x384xf32>, vector<8x384xf32>, vector<8x384xf32>, vector<8x384xf32>, vector<8x384xf32>, vector<8x384xf32>, vector<8x384xf32>, vector<8x384xf32>, vector<8x384xf32> -> vector<72x384xf32>
    %c3 = arith.constant 3 : index
    %c0_94 = arith.constant 0 : index
    %c0_95 = arith.constant 0 : index
    %106 = vector.load %arg3[%c3, %c0_94, %c0_95] : memref<8x8x72xf32, #tpu.memory_space<vmem>>, vector<1x8x72xf32>
    %107 = vector.shape_cast %106 : vector<1x8x72xf32> to vector<8x72xf32>
    %cst_96 = arith.constant dense<0.000000e+00> : vector<8x384xf32>
    %108 = tpu.matmul %107, %105, %cst_96 {dimension_numbers = #tpu.dot_dimension_numbers<[1], [0], [0], [1], [0, 0, 1, 1], [], []>} : vector<8x72xf32>, vector<72x384xf32>, vector<8x384xf32> -> vector<8x384xf32>
    %c3_97 = arith.constant 3 : index
    %c0_98 = arith.constant 0 : index
    %c0_99 = arith.constant 0 : index
    %109 = vector.load %arg4[%c3_97, %c0_98, %c0_99] : memref<8x8x1xf32, #tpu.memory_space<vmem>>, vector<1x8x1xf32>
    %110 = vector.shape_cast %109 : vector<1x8x1xf32> to vector<8x1xf32>
    %111 = vector.broadcast %110 : vector<8x1xf32> to vector<8x384xf32>
    %112 = arith.addf %108, %111 : vector<8x384xf32>
    %cst_100 = arith.constant 0.000000e+00 : f32
    %113 = vector.broadcast %cst_100 : f32 to vector<8x384xf32>
    %114 = arith.maximumf %112, %113 : vector<8x384xf32>
    %cst_101 = arith.constant 0.000000e+00 : f32
    %115 = vector.broadcast %cst_101 : f32 to vector<8x384xf32>
    %116 = arith.select %22, %114, %115 : vector<8x384xi1>, vector<8x384xf32>
    %c0_102 = arith.constant 0 : index
    %c100_103 = arith.constant 100 : index
    %117 = vector.load %arg8[%c0_102, %c100_103] : memref<8x584xf32, #tpu.memory_space<vmem>>, vector<8x384xf32>
    tpu.vector_store %arg8[%c0_102, %c100_103], %116 {strides = array<i32>} : memref<8x584xf32, #tpu.memory_space<vmem>>, vector<8x384xf32>,
    %c0_104 = arith.constant 0 : index
    %c75_105 = arith.constant 75 : index
    %118 = vector.load %arg8[%c0_104, %c75_105] : memref<8x584xf32, #tpu.memory_space<vmem>>, vector<8x384xf32>
    %c0_106 = arith.constant 0 : index
    %c76_107 = arith.constant 76 : index
    %119 = vector.load %arg8[%c0_106, %c76_107] : memref<8x584xf32, #tpu.memory_space<vmem>>, vector<8x384xf32>
    %c0_108 = arith.constant 0 : index
    %c77_109 = arith.constant 77 : index
    %120 = vector.load %arg8[%c0_108, %c77_109] : memref<8x584xf32, #tpu.memory_space<vmem>>, vector<8x384xf32>
    %c0_110 = arith.constant 0 : index
    %c99_111 = arith.constant 99 : index
    %121 = vector.load %arg8[%c0_110, %c99_111] : memref<8x584xf32, #tpu.memory_space<vmem>>, vector<8x384xf32>
    %c0_112 = arith.constant 0 : index
    %c100_113 = arith.constant 100 : index
    %122 = vector.load %arg8[%c0_112, %c100_113] : memref<8x584xf32, #tpu.memory_space<vmem>>, vector<8x384xf32>
    %c0_114 = arith.constant 0 : index
    %c101_115 = arith.constant 101 : index
    %123 = vector.load %arg8[%c0_114, %c101_115] : memref<8x584xf32, #tpu.memory_space<vmem>>, vector<8x384xf32>
    %c0_116 = arith.constant 0 : index
    %c123_117 = arith.constant 123 : index
    %124 = vector.load %arg8[%c0_116, %c123_117] : memref<8x584xf32, #tpu.memory_space<vmem>>, vector<8x384xf32>
    %c0_118 = arith.constant 0 : index
    %c124_119 = arith.constant 124 : index
    %125 = vector.load %arg8[%c0_118, %c124_119] : memref<8x584xf32, #tpu.memory_space<vmem>>, vector<8x384xf32>
    %c0_120 = arith.constant 0 : index
    %c125_121 = arith.constant 125 : index
    %126 = vector.load %arg8[%c0_120, %c125_121] : memref<8x584xf32, #tpu.memory_space<vmem>>, vector<8x384xf32>
    %127 = tpu.concatenate %118, %119, %120, %121, %122, %123, %124, %125, %126 in 0 : vector<8x384xf32>, vector<8x384xf32>, vector<8x384xf32>, vector<8x384xf32>, vector<8x384xf32>, vector<8x384xf32>, vector<8x384xf32>, vector<8x384xf32>, vector<8x384xf32> -> vector<72x384xf32>
    %c4_122 = arith.constant 4 : index
    %c0_123 = arith.constant 0 : index
    %c0_124 = arith.constant 0 : index
    %128 = vector.load %arg3[%c4_122, %c0_123, %c0_124] : memref<8x8x72xf32, #tpu.memory_space<vmem>>, vector<1x8x72xf32>
    %129 = vector.shape_cast %128 : vector<1x8x72xf32> to vector<8x72xf32>
    %cst_125 = arith.constant dense<0.000000e+00> : vector<8x384xf32>
    %130 = tpu.matmul %129, %127, %cst_125 {dimension_numbers = #tpu.dot_dimension_numbers<[1], [0], [0], [1], [0, 0, 1, 1], [], []>} : vector<8x72xf32>, vector<72x384xf32>, vector<8x384xf32> -> vector<8x384xf32>
    %c4_126 = arith.constant 4 : index
    %c0_127 = arith.constant 0 : index
    %c0_128 = arith.constant 0 : index
    %131 = vector.load %arg4[%c4_126, %c0_127, %c0_128] : memref<8x8x1xf32, #tpu.memory_space<vmem>>, vector<1x8x1xf32>
    %132 = vector.shape_cast %131 : vector<1x8x1xf32> to vector<8x1xf32>
    %133 = vector.broadcast %132 : vector<8x1xf32> to vector<8x384xf32>
    %134 = arith.addf %130, %133 : vector<8x384xf32>
    %cst_129 = arith.constant 0.000000e+00 : f32
    %135 = vector.broadcast %cst_129 : f32 to vector<8x384xf32>
    %136 = arith.maximumf %134, %135 : vector<8x384xf32>
    %cst_130 = arith.constant 0.000000e+00 : f32
    %137 = vector.broadcast %cst_130 : f32 to vector<8x384xf32>
    %138 = arith.select %22, %136, %137 : vector<8x384xi1>, vector<8x384xf32>
    %c0_131 = arith.constant 0 : index
    %c100_132 = arith.constant 100 : index
    %139 = vector.load %arg9[%c0_131, %c100_132] : memref<8x584xf32, #tpu.memory_space<vmem>>, vector<8x384xf32>
    tpu.vector_store %arg9[%c0_131, %c100_132], %138 {strides = array<i32>} : memref<8x584xf32, #tpu.memory_space<vmem>>, vector<8x384xf32>,
    %c0_133 = arith.constant 0 : index
    %c75_134 = arith.constant 75 : index
    %140 = vector.load %arg9[%c0_133, %c75_134] : memref<8x584xf32, #tpu.memory_space<vmem>>, vector<8x384xf32>
    %c0_135 = arith.constant 0 : index
    %c76_136 = arith.constant 76 : index
    %141 = vector.load %arg9[%c0_135, %c76_136] : memref<8x584xf32, #tpu.memory_space<vmem>>, vector<8x384xf32>
    %c0_137 = arith.constant 0 : index
    %c77_138 = arith.constant 77 : index
    %142 = vector.load %arg9[%c0_137, %c77_138] : memref<8x584xf32, #tpu.memory_space<vmem>>, vector<8x384xf32>
    %c0_139 = arith.constant 0 : index
    %c99_140 = arith.constant 99 : index
    %143 = vector.load %arg9[%c0_139, %c99_140] : memref<8x584xf32, #tpu.memory_space<vmem>>, vector<8x384xf32>
    %c0_141 = arith.constant 0 : index
    %c100_142 = arith.constant 100 : index
    %144 = vector.load %arg9[%c0_141, %c100_142] : memref<8x584xf32, #tpu.memory_space<vmem>>, vector<8x384xf32>
    %c0_143 = arith.constant 0 : index
    %c101_144 = arith.constant 101 : index
    %145 = vector.load %arg9[%c0_143, %c101_144] : memref<8x584xf32, #tpu.memory_space<vmem>>, vector<8x384xf32>
    %c0_145 = arith.constant 0 : index
    %c123_146 = arith.constant 123 : index
    %146 = vector.load %arg9[%c0_145, %c123_146] : memref<8x584xf32, #tpu.memory_space<vmem>>, vector<8x384xf32>
    %c0_147 = arith.constant 0 : index
    %c124_148 = arith.constant 124 : index
    %147 = vector.load %arg9[%c0_147, %c124_148] : memref<8x584xf32, #tpu.memory_space<vmem>>, vector<8x384xf32>
    %c0_149 = arith.constant 0 : index
    %c125_150 = arith.constant 125 : index
    %148 = vector.load %arg9[%c0_149, %c125_150] : memref<8x584xf32, #tpu.memory_space<vmem>>, vector<8x384xf32>
    %149 = tpu.concatenate %140, %141, %142, %143, %144, %145, %146, %147, %148 in 0 : vector<8x384xf32>, vector<8x384xf32>, vector<8x384xf32>, vector<8x384xf32>, vector<8x384xf32>, vector<8x384xf32>, vector<8x384xf32>, vector<8x384xf32>, vector<8x384xf32> -> vector<72x384xf32>
    %c5 = arith.constant 5 : index
    %c0_151 = arith.constant 0 : index
    %c0_152 = arith.constant 0 : index
    %150 = vector.load %arg3[%c5, %c0_151, %c0_152] : memref<8x8x72xf32, #tpu.memory_space<vmem>>, vector<1x8x72xf32>
    %151 = vector.shape_cast %150 : vector<1x8x72xf32> to vector<8x72xf32>
    %cst_153 = arith.constant dense<0.000000e+00> : vector<8x384xf32>
    %152 = tpu.matmul %151, %149, %cst_153 {dimension_numbers = #tpu.dot_dimension_numbers<[1], [0], [0], [1], [0, 0, 1, 1], [], []>} : vector<8x72xf32>, vector<72x384xf32>, vector<8x384xf32> -> vector<8x384xf32>
    %c5_154 = arith.constant 5 : index
    %c0_155 = arith.constant 0 : index
    %c0_156 = arith.constant 0 : index
    %153 = vector.load %arg4[%c5_154, %c0_155, %c0_156] : memref<8x8x1xf32, #tpu.memory_space<vmem>>, vector<1x8x1xf32>
    %154 = vector.shape_cast %153 : vector<1x8x1xf32> to vector<8x1xf32>
    %155 = vector.broadcast %154 : vector<8x1xf32> to vector<8x384xf32>
    %156 = arith.addf %152, %155 : vector<8x384xf32>
    %cst_157 = arith.constant 0.000000e+00 : f32
    %157 = vector.broadcast %cst_157 : f32 to vector<8x384xf32>
    %158 = arith.maximumf %156, %157 : vector<8x384xf32>
    %cst_158 = arith.constant 0.000000e+00 : f32
    %159 = vector.broadcast %cst_158 : f32 to vector<8x384xf32>
    %160 = arith.select %22, %158, %159 : vector<8x384xi1>, vector<8x384xf32>
    %c0_159 = arith.constant 0 : index
    %c100_160 = arith.constant 100 : index
    %161 = vector.load %arg8[%c0_159, %c100_160] : memref<8x584xf32, #tpu.memory_space<vmem>>, vector<8x384xf32>
    tpu.vector_store %arg8[%c0_159, %c100_160], %160 {strides = array<i32>} : memref<8x584xf32, #tpu.memory_space<vmem>>, vector<8x384xf32>,
    %c0_161 = arith.constant 0 : index
    %c75_162 = arith.constant 75 : index
    %162 = vector.load %arg8[%c0_161, %c75_162] : memref<8x584xf32, #tpu.memory_space<vmem>>, vector<8x384xf32>
    %c0_163 = arith.constant 0 : index
    %c76_164 = arith.constant 76 : index
    %163 = vector.load %arg8[%c0_163, %c76_164] : memref<8x584xf32, #tpu.memory_space<vmem>>, vector<8x384xf32>
    %c0_165 = arith.constant 0 : index
    %c77_166 = arith.constant 77 : index
    %164 = vector.load %arg8[%c0_165, %c77_166] : memref<8x584xf32, #tpu.memory_space<vmem>>, vector<8x384xf32>
    %c0_167 = arith.constant 0 : index
    %c99_168 = arith.constant 99 : index
    %165 = vector.load %arg8[%c0_167, %c99_168] : memref<8x584xf32, #tpu.memory_space<vmem>>, vector<8x384xf32>
    %c0_169 = arith.constant 0 : index
    %c100_170 = arith.constant 100 : index
    %166 = vector.load %arg8[%c0_169, %c100_170] : memref<8x584xf32, #tpu.memory_space<vmem>>, vector<8x384xf32>
    %c0_171 = arith.constant 0 : index
    %c101_172 = arith.constant 101 : index
    %167 = vector.load %arg8[%c0_171, %c101_172] : memref<8x584xf32, #tpu.memory_space<vmem>>, vector<8x384xf32>
    %c0_173 = arith.constant 0 : index
    %c123_174 = arith.constant 123 : index
    %168 = vector.load %arg8[%c0_173, %c123_174] : memref<8x584xf32, #tpu.memory_space<vmem>>, vector<8x384xf32>
    %c0_175 = arith.constant 0 : index
    %c124_176 = arith.constant 124 : index
    %169 = vector.load %arg8[%c0_175, %c124_176] : memref<8x584xf32, #tpu.memory_space<vmem>>, vector<8x384xf32>
    %c0_177 = arith.constant 0 : index
    %c125_178 = arith.constant 125 : index
    %170 = vector.load %arg8[%c0_177, %c125_178] : memref<8x584xf32, #tpu.memory_space<vmem>>, vector<8x384xf32>
    %171 = tpu.concatenate %162, %163, %164, %165, %166, %167, %168, %169, %170 in 0 : vector<8x384xf32>, vector<8x384xf32>, vector<8x384xf32>, vector<8x384xf32>, vector<8x384xf32>, vector<8x384xf32>, vector<8x384xf32>, vector<8x384xf32>, vector<8x384xf32> -> vector<72x384xf32>
    %c6 = arith.constant 6 : index
    %c0_179 = arith.constant 0 : index
    %c0_180 = arith.constant 0 : index
    %172 = vector.load %arg3[%c6, %c0_179, %c0_180] : memref<8x8x72xf32, #tpu.memory_space<vmem>>, vector<1x8x72xf32>
    %173 = vector.shape_cast %172 : vector<1x8x72xf32> to vector<8x72xf32>
    %cst_181 = arith.constant dense<0.000000e+00> : vector<8x384xf32>
    %174 = tpu.matmul %173, %171, %cst_181 {dimension_numbers = #tpu.dot_dimension_numbers<[1], [0], [0], [1], [0, 0, 1, 1], [], []>} : vector<8x72xf32>, vector<72x384xf32>, vector<8x384xf32> -> vector<8x384xf32>
    %c6_182 = arith.constant 6 : index
    %c0_183 = arith.constant 0 : index
    %c0_184 = arith.constant 0 : index
    %175 = vector.load %arg4[%c6_182, %c0_183, %c0_184] : memref<8x8x1xf32, #tpu.memory_space<vmem>>, vector<1x8x1xf32>
    %176 = vector.shape_cast %175 : vector<1x8x1xf32> to vector<8x1xf32>
    %177 = vector.broadcast %176 : vector<8x1xf32> to vector<8x384xf32>
    %178 = arith.addf %174, %177 : vector<8x384xf32>
    %cst_185 = arith.constant 0.000000e+00 : f32
    %179 = vector.broadcast %cst_185 : f32 to vector<8x384xf32>
    %180 = arith.maximumf %178, %179 : vector<8x384xf32>
    %cst_186 = arith.constant 0.000000e+00 : f32
    %181 = vector.broadcast %cst_186 : f32 to vector<8x384xf32>
    %182 = arith.select %22, %180, %181 : vector<8x384xi1>, vector<8x384xf32>
    %c0_187 = arith.constant 0 : index
    %c100_188 = arith.constant 100 : index
    %183 = vector.load %arg9[%c0_187, %c100_188] : memref<8x584xf32, #tpu.memory_space<vmem>>, vector<8x384xf32>
    tpu.vector_store %arg9[%c0_187, %c100_188], %182 {strides = array<i32>} : memref<8x584xf32, #tpu.memory_space<vmem>>, vector<8x384xf32>,
    %c0_189 = arith.constant 0 : index
    %c75_190 = arith.constant 75 : index
    %184 = vector.load %arg9[%c0_189, %c75_190] : memref<8x584xf32, #tpu.memory_space<vmem>>, vector<8x384xf32>
    %c0_191 = arith.constant 0 : index
    %c76_192 = arith.constant 76 : index
    %185 = vector.load %arg9[%c0_191, %c76_192] : memref<8x584xf32, #tpu.memory_space<vmem>>, vector<8x384xf32>
    %c0_193 = arith.constant 0 : index
    %c77_194 = arith.constant 77 : index
    %186 = vector.load %arg9[%c0_193, %c77_194] : memref<8x584xf32, #tpu.memory_space<vmem>>, vector<8x384xf32>
    %c0_195 = arith.constant 0 : index
    %c99_196 = arith.constant 99 : index
    %187 = vector.load %arg9[%c0_195, %c99_196] : memref<8x584xf32, #tpu.memory_space<vmem>>, vector<8x384xf32>
    %c0_197 = arith.constant 0 : index
    %c100_198 = arith.constant 100 : index
    %188 = vector.load %arg9[%c0_197, %c100_198] : memref<8x584xf32, #tpu.memory_space<vmem>>, vector<8x384xf32>
    %c0_199 = arith.constant 0 : index
    %c101_200 = arith.constant 101 : index
    %189 = vector.load %arg9[%c0_199, %c101_200] : memref<8x584xf32, #tpu.memory_space<vmem>>, vector<8x384xf32>
    %c0_201 = arith.constant 0 : index
    %c123_202 = arith.constant 123 : index
    %190 = vector.load %arg9[%c0_201, %c123_202] : memref<8x584xf32, #tpu.memory_space<vmem>>, vector<8x384xf32>
    %c0_203 = arith.constant 0 : index
    %c124_204 = arith.constant 124 : index
    %191 = vector.load %arg9[%c0_203, %c124_204] : memref<8x584xf32, #tpu.memory_space<vmem>>, vector<8x384xf32>
    %c0_205 = arith.constant 0 : index
    %c125_206 = arith.constant 125 : index
    %192 = vector.load %arg9[%c0_205, %c125_206] : memref<8x584xf32, #tpu.memory_space<vmem>>, vector<8x384xf32>
    %193 = tpu.concatenate %184, %185, %186, %187, %188, %189, %190, %191, %192 in 0 : vector<8x384xf32>, vector<8x384xf32>, vector<8x384xf32>, vector<8x384xf32>, vector<8x384xf32>, vector<8x384xf32>, vector<8x384xf32>, vector<8x384xf32>, vector<8x384xf32> -> vector<72x384xf32>
    %c7 = arith.constant 7 : index
    %c0_207 = arith.constant 0 : index
    %c0_208 = arith.constant 0 : index
    %194 = vector.load %arg3[%c7, %c0_207, %c0_208] : memref<8x8x72xf32, #tpu.memory_space<vmem>>, vector<1x8x72xf32>
    %195 = vector.shape_cast %194 : vector<1x8x72xf32> to vector<8x72xf32>
    %cst_209 = arith.constant dense<0.000000e+00> : vector<8x384xf32>
    %196 = tpu.matmul %195, %193, %cst_209 {dimension_numbers = #tpu.dot_dimension_numbers<[1], [0], [0], [1], [0, 0, 1, 1], [], []>} : vector<8x72xf32>, vector<72x384xf32>, vector<8x384xf32> -> vector<8x384xf32>
    %c7_210 = arith.constant 7 : index
    %c0_211 = arith.constant 0 : index
    %c0_212 = arith.constant 0 : index
    %197 = vector.load %arg4[%c7_210, %c0_211, %c0_212] : memref<8x8x1xf32, #tpu.memory_space<vmem>>, vector<1x8x1xf32>
    %198 = vector.shape_cast %197 : vector<1x8x1xf32> to vector<8x1xf32>
    %199 = vector.broadcast %198 : vector<8x1xf32> to vector<8x384xf32>
    %200 = arith.addf %196, %199 : vector<8x384xf32>
    %cst_213 = arith.constant 0.000000e+00 : f32
    %201 = vector.broadcast %cst_213 : f32 to vector<8x384xf32>
    %202 = arith.maximumf %200, %201 : vector<8x384xf32>
    %cst_214 = arith.constant 0.000000e+00 : f32
    %203 = vector.broadcast %cst_214 : f32 to vector<8x384xf32>
    %204 = arith.select %22, %202, %203 : vector<8x384xi1>, vector<8x384xf32>
    %c0_215 = arith.constant 0 : index
    %c100_216 = arith.constant 100 : index
    %205 = vector.load %arg8[%c0_215, %c100_216] : memref<8x584xf32, #tpu.memory_space<vmem>>, vector<8x384xf32>
    tpu.vector_store %arg8[%c0_215, %c100_216], %204 {strides = array<i32>} : memref<8x584xf32, #tpu.memory_space<vmem>>, vector<8x384xf32>,
    %c0_217 = arith.constant 0 : index
    %c100_218 = arith.constant 100 : index
    %206 = vector.load %arg8[%c0_217, %c100_218] : memref<8x584xf32, #tpu.memory_space<vmem>>, vector<8x384xf32>
    %c0_219 = arith.constant 0 : index
    %c0_220 = arith.constant 0 : index
    %207 = vector.load %arg5[%c0_219, %c0_220] : memref<1x8xf32, #tpu.memory_space<vmem>>, vector<1x8xf32>
    %cst_221 = arith.constant dense<0.000000e+00> : vector<1x384xf32>
    %208 = tpu.matmul %207, %206, %cst_221 {dimension_numbers = #tpu.dot_dimension_numbers<[1], [0], [0], [1], [0, 0, 1, 1], [], []>} : vector<1x8xf32>, vector<8x384xf32>, vector<1x384xf32> -> vector<1x384xf32>
    %c0_222 = arith.constant 0 : index
    %c0_223 = arith.constant 0 : index
    %209 = vector.load %arg6[%c0_222, %c0_223] : memref<1x1xf32, #tpu.memory_space<vmem>>, vector<1x1xf32>
    %210 = vector.broadcast %209 : vector<1x1xf32> to vector<1x384xf32>
    %211 = arith.addf %208, %210 : vector<1x384xf32>
    %212 = arith.negf %211 : vector<1x384xf32>
    %213 = math.exp %212 : vector<1x384xf32>
    %cst_224 = arith.constant 1.000000e+00 : f32
    %214 = vector.broadcast %cst_224 : f32 to vector<1x384xf32>
    %215 = arith.addf %214, %213 : vector<1x384xf32>
    %216 = arith.divf %214, %215 : vector<1x384xf32>
    %217 = vector.shape_cast %216 : vector<1x384xf32> to vector<1x1x384xf32>
    %c0_225 = arith.constant 0 : index
    %c0_226 = arith.constant 0 : index
    %c0_227 = arith.constant 0 : index
    %218 = vector.load %arg7[%c0_225, %c0_226, %c0_227] : memref<1x1x384xf32, #tpu.memory_space<vmem>>, vector<1x1x384xf32>
    tpu.vector_store %arg7[%c0_225, %c0_226, %c0_227], %217 {strides = array<i32>} : memref<1x1x384xf32, #tpu.memory_space<vmem>>, vector<1x1x384xf32>,
    return
  }
  func.func @transform_0(%arg0: i32) -> (i32, i32, i32) {
    %c0_i32 = arith.constant 0 : i32
    %c0_i32_0 = arith.constant 0 : i32
    %c0_i32_1 = arith.constant 0 : i32
    return %arg0, %c0_i32, %c0_i32_0 : i32, i32, i32
  }
  func.func @transform_1(%arg0: i32) -> (i32, i32, i32) {
    %c0_i32 = arith.constant 0 : i32
    %c0_i32_0 = arith.constant 0 : i32
    %c0_i32_1 = arith.constant 0 : i32
    return %arg0, %c0_i32, %c0_i32_0 : i32, i32, i32
  }
  func.func @transform_2(%arg0: i32) -> (i32, i32, i32) {
    %c0_i32 = arith.constant 0 : i32
    %c0_i32_0 = arith.constant 0 : i32
    %c0_i32_1 = arith.constant 0 : i32
    %c0_i32_2 = arith.constant 0 : i32
    return %c0_i32, %c0_i32_0, %c0_i32_1 : i32, i32, i32
  }
  func.func @transform_3(%arg0: i32) -> (i32, i32, i32) {
    %c0_i32 = arith.constant 0 : i32
    %c0_i32_0 = arith.constant 0 : i32
    %c0_i32_1 = arith.constant 0 : i32
    %c0_i32_2 = arith.constant 0 : i32
    return %c0_i32, %c0_i32_0, %c0_i32_1 : i32, i32, i32
  }
  func.func @transform_4(%arg0: i32) -> (i32, i32) {
    %c0_i32 = arith.constant 0 : i32
    %c0_i32_0 = arith.constant 0 : i32
    %c0_i32_1 = arith.constant 0 : i32
    return %c0_i32, %c0_i32_0 : i32, i32
  }
  func.func @transform_5(%arg0: i32) -> (i32, i32) {
    %c0_i32 = arith.constant 0 : i32
    %c0_i32_0 = arith.constant 0 : i32
    %c0_i32_1 = arith.constant 0 : i32
    return %c0_i32, %c0_i32_0 : i32, i32
  }
  func.func @transform_6(%arg0: i32) -> (i32, i32, i32) {
    %c0_i32 = arith.constant 0 : i32
    %c0_i32_0 = arith.constant 0 : i32
    %c0_i32_1 = arith.constant 0 : i32
    return %arg0, %c0_i32, %c0_i32_0 : i32, i32, i32
  }
}

</mosaic_0001>

<bundles_post_ra>
// kernel: tpu_custom_call.1
= control target key start
LH: loop header
LB: loop body
LE: loop exit
PB: predicated region body
PF: predicated region fallthrough
CT: control target
= control target key end

     0   :  { %s5965_s0 = inlined_call_operand.hbm [shape: f32[2,8,384], index: 0, kind: input, shape index: {}]   ;;  %s5966_s1 = inlined_call_operand.vmem [shape: f32[2,1,384], index: 1, kind: input, shape index: {}]   ;;  %s5967_s2 = inlined_call_operand.vmem [shape: f32[8,8,72], index: 2, kind: input, shape index: {}]   ;;  %s5968_s3 = inlined_call_operand.vmem [shape: f32[8,8,1], index: 3, kind: input, shape index: {}]   ;;  %s5969_s4 = inlined_call_operand.vmem [shape: f32[1,8], index: 4, kind: input, shape index: {}]   ;;  %s5970_s5 = inlined_call_operand.<no memory space> [shape: f32[1,1], index: 5, kind: input, shape index: {}]   ;;  %s5971_s6 = inlined_call_operand.hbm [shape: f32[2,1,384], index: 6, kind: output, shape index: {}]  }
   0x1   :  { %v11_v0 = vstv %s5970_s5 }
   0x2   :  { %12 = vst [vmem:[#allocation4] sm:$0x1] %v11_v0 }
   0x3   :  { %13 = vsyncpa [#allocation6], 0 }
   0x4   :  { %15 = vsyncpa [#allocation6 + $0x1], 0 }
   0x5   :  { %16 = vsyncpa [#allocation7], 0 }
   0x6   :  { %18 = vsyncpa [#allocation7 + $0x1], 0  ;;  %s4382_s23 = smov 0   ;;  %s4384_s24 = smov 0  }
   0x7   :  { %s4386_s25 = smov 0   ;;  %s4388_s26 = smov 0  }
   0x8 LB: > { %s4403_s5 = sadd.s32 4294967295, %s4316_s26   ;;  %s3830_s27 = sadd.s32 4294967294, %s4316_s26   ;;  %s4316_s26 = sphi %s4388_s26, %s6216_s26   ;;  %s4312_s25 = sphi %s4386_s25, %s6215_s25   ;;  %s4308_s24 = sphi %s4384_s24, %s6214_s24   ;;  %s4304_s23 = sphi %s4382_s23, %s6213_s23  }
   0x9   : > { %s4407_s28 = sadd.s32 1, %s4316_s26   ;;  %s31_s29 = sadd.s32 1, %s4312_s25 }
   0xa   : > { %s28_s30 = ssub.s32 %s4316_s26, %s4407_s28  ;;  %p38_p0 = scmp.ne.s32.totalorder %s4312_s25, %s4308_s24 }
   0xb   : > { %p29_p1 = scmp.eq.s32.totalorder %s28_s30, 0  ;;  %p39_p2 = scmp.eq.s32.totalorder %s4316_s26, 0 }
   0xc   : > { %p44_p3 = scmp.ne.s32.totalorder %s4308_s24, %s4304_s23  ;;  %p45_p4 = scmp.eq.s32.totalorder %s4403_s5, 0 }
   0xd   : > { %s4419_s7 = scalar_select %p29_p1, %s4312_s25, %s31_s29  }
   0xe   : > { %p40_p5 = por %p39_p2, %p38_p0  ;;  %p4421_p6 = por %p45_p4, %p44_p3 }
   0xf   : > { %p178_p7 = scmp.eq.s32.totalorder %s4403_s5, 1  ;;  %p184_p8 = scmp.eq.s32.totalorder %s3830_s27, 1 }
  0x10   : > { %s5989_s8 = scalar_select %p4421_p6, 1, 0 }
  0x11   : > { %p4152_p10 = scmp.lt.s32.totalorder %s4316_s26, 2  ;;  %p4428_p11 = por %p178_p7, %p38_p0 }
  0x12   : > { %p4432_p12 = por %p184_p8, %p44_p3  ;;  %s216_s11 = sand.u32 1, %s4312_s25  }
  0x13   : > { %s5990_s9 = scalar_select %p4428_p11, 1, 0 }
  0x14   : > { %s5991_s10 = scalar_select %p4432_p12, 1, 0 }
  0x15   : > { %s4129_s12 = smul.u32 384, %s4316_s26  ;;  %p4443_p13 = pnand %p4152_p10, %p40_p5 }
  0x16   : > { %s4128_s13 = smul.u32 24, %s216_s11  ;;  %s217_s20 = scalar_lea.sflag [#allocation6], %s216_s11 }
  0x17   : > { %s4441_s16 = scalar_lea.hbm %s5965_s0, %s4129_s12  ;;  %p4226_p3 = pneg %p4443_p13 }
  0x18   : > { %s220_s18 = scalar_lea.vmem [#allocation5], %s4128_s13  ;;  %s4224_s21 = scalar_lea.hbm %s4441_s16, 384 }
  0x19   : > { %s228_s19 = sshll.u32 %s220_s18, 4  ;;  %p4225_p2 = scmp.ne.s32.totalorder %s4441_s16, %s4224_s21  ;;  %s229_s19 = int_to_ptr.vmem [resolvable:$true] %s228_s19 }
  0x1a   : > { %s4229_s29 = scalar_lea.hbm %s5965_s0, 768  ;;  %p4230_p5 = scmp.lt.s32.totalorder %s4441_s16, %s5965_s0 }
  0x1b   : > { %p4227_p4 = pnand %p4226_p3, %p4225_p2  ;;  %p4231_p8 = scmp.lt.s32.totalorder %s4229_s29, %s4224_s21 }
  0x1d   : > { %p4228_p7 = pneg %p4227_p4  ;;  %p4232_p10 = por %p4231_p8, %p4230_p5 }
  0x1f   : > { %p4233_p9 = pnand %p4232_p10, %p4228_p7 }
  0x21   : > { %4236 = shalt.err (!%p4233_p9)
}
  0x22   : > { %s4237_s13 = scalar_lea.vmem %s229_s19, 384  ;;  %s4318_s11 = smov [#allocation5]  }
  0x23   : > { %p4238_p0 = scmp.ne.s32.totalorder %s229_s19, %s4237_s13  ;;  %s4242_s14 = sshll.u32 %s4318_s11, 4  ;;  %s4243_s14 = int_to_ptr.vmem [resolvable:$false] %s4242_s14 }
  0x24   : > { %s4244_s15 = scalar_lea.vmem %s4243_s14, 768  ;;  %p4245_p2 = scmp.lt.s32.totalorder %s229_s19, %s4243_s14 }
  0x25   : > { %p4240_p1 = pnand %p4238_p0, %p4226_p3  ;;  %p4246_p4 = scmp.lt.s32.totalorder %s4244_s15, %s4237_s13 }
  0x27   : > { %p4241_p12 = pneg %p4240_p1  ;;  %p4247_p11 = por %p4246_p4, %p4245_p2 }
  0x29   : > { %p4248_p6 = pnand %p4247_p11, %p4241_p12 }
  0x2b   : > { %4251 = shalt.err (!%p4248_p6)
}
  0x2c   : > { %4147 = dma.hbm_to_vmem [thread:$0]  (!%p4443_p13), %s4441_s16, 384, %s229_s19, %s217_s20  }
  0x2d   : > { %p5993_p9 = scmp.lt.s32.totalorder %s4316_s26, 3  ;;  %p5994_p7 = scmp.ge.s32.totalorder %s4316_s26, 1 }
  0x2f   : > { %p241_p5 = pnand %p5994_p7, %p5993_p9 }
  0x30   : > { %s4468_s18 = sand.u32 (!%p241_p5), 1, %s4308_s24   ;;  %p5995_p6 = scmp.ne.s32.totalorder (!%p241_p5), %s5989_s8, 0 }
  0x31   : > { %244 = sbr.rel (%p241_p5) target bundleno = 5594 (0x15da), region = 44  ;;  %s247_s22 = scalar_lea.sflag (!%p241_p5), [#allocation6], %s4468_s18 }
  0x32   : > { %s4130_s21 = smul.u32 (!%p241_p5), 24, %s4468_s18 }
  0x34   : > { %s250_s27 = scalar_lea.vmem (!%p241_p5), [#allocation5], %s4130_s21 }
  0x36   : > { %4295 = dma.done.wait (%p5995_p6), %s247_s22, 384  }
  0x37   : > { %4297 = vsyncadd (%p5995_p6), %s247_s22, 4294966912  ;;  %p283_p11 = scmp.lt.s32.totalorder %s4403_s5, 1  ;;  %v298_v1 = vlaneseq  ;;  %v4319_v2 = vmov 0.0   ;;  %v355_v7 = vld [vmem:[%s250_s27 + $0x10] sm:$0xff]  ;;  %v353_v9 = vld [vmem:[%s250_s27] sm:$0xff]  ;;  %s4320_s29 = smov 100  }
  0x38   : > { %290 = vst [vmem:[#allocation2 + $0x18] sm:$0xff] %v4319_v2  ;;  %287 = vst [vmem:[#allocation2] sm:$0xff] %v4319_v2  ;;  %3955 = vmatprep.subr.mxu1 %v4319_v2  ;;  %702 = vmatprep.mubr.f32.mxu0 %v4319_v2  ;;  %v354_v13 = vld [vmem:[%s250_s27 + $0x8] sm:$0xff]  ;;  %vm385_vm0 = vcmask 818176   ;;  %vm392_vm1 = vcmask 1048352   ;;  %s4321_s30 = smov 78  }
  0x39   : > { %293 = vst [vmem:[#allocation3] sm:$0xff] %v4319_v2  ;;  %296 = vst [vmem:[#allocation3 + $0x18] sm:$0xff] %v4319_v2  ;;  %s284_s16 = scalar_select %p283_p11, %s4403_s5, 1  ;;  %v4485_v3 = vshrl.u32 %v298_v1, 7  ;;  %vm497_vm2 = vcmask 637952   ;;  %vm5979_vm3 = vcmask 646144  }
  0x3a   : > { %s4322_s12 = smov 79   ;;  %s4323_s13 = smov 80   ;;  %vm473_vm4 = vcmask 654336   ;;  %vm5978_vm5 = vcmask 834560   ;;  %vm5977_vm6 = vcmask 842752   ;;  %vm5976_vm7 = vcmask 850944  }
  0x3b   : > { %s4132_s8 = smul.u32 3, %s284_s16  ;;  %v368_v4 = vsub.s32 2, %v4485_v3  ;;  %v360_v5 = vsub.s32 0, %v4485_v3  ;;  %v364_v6 = vsub.s32 1, %v4485_v3  ;;  %s4324_s11 = smov 102   ;;  %vm5988_vm8 = vcmask 1031168  }
  0x3c   : > { %s4325_s14 = smov 103   ;;  %s4326_s15 = smov 104   ;;  %vm5975_vm9 = vcmask 1039360   ;;  %vm291_vm10 = vcmask 588800   ;;  %vm5980_vm11 = vmmov 0   ;;  %vm5974_vm12 = vcmask 433152  }
  0x3d   : > { %s286_s20 = scalar_lea.vmem %s5966_s1, %s4132_s8  ;;  %s5986_s21 = smov 126   ;;  %292 = vst.msk [vmem:[#allocation2 + $0x20] sm:$0xff] %vm291_vm10, %v4319_v2  ;;  %297 = vst.msk [vmem:[#allocation3 + $0x20] sm:$0xff] %vm291_vm10, %v4319_v2  ;;  %3973 = vmatprep.mubr.msk.f32.mxu1 %vm5980_vm11, %v4319_v2 }
  0x3e   : > { %v356_v8 = vld [vmem:[%s286_s20] sm:$0x7]  ;;  %s5984_s22 = smov 127   ;;  %s5982_s27 = smov 53  }
  0x3f   : > { %v369_v10 = vrot.slane %v356_v8, %v368_v4  ;;  %v361_v11 = vrot.slane %v356_v8, %v360_v5  ;;  %v365_v12 = vrot.slane %v356_v8, %v364_v6  ;;  %s4332_s20 = smov 28   ;;  %s4333_s16 = smov 32  }
  0x40   : > { %s4334_s8 = smov 30   ;;  %s4335_s17 = smov 76  }
  0x41   : > { %v375_v14 = vmul.f32 %v369_v10, %v355_v7  ;;  %v373_v15 = vmul.f32 %v361_v11, %v353_v9  ;;  %v374_v16 = vmul.f32 %v365_v12, %v354_v13  ;;  %s4336_s19 = smov 124   ;;  %p6210_p13 = scmp.ne.s32.totalorder %s5990_s9, 0 }
  0x43   : > { %383 = vrot.lane.b32.xlu1 %v375_v14, %s4320_s29  ;;  %379 = vrot.lane.b32.xlu0 %v373_v15, %s4320_s29 }
  0x47   : > { %381 = vrot.lane.b32.xlu0 %v374_v16, %s4320_s29 }
  0xb5   : > { %v384_v17 = vpop.permute.xlu1 %383  ;;  %v380_v18 = vpop.permute.xlu0 %379 }
  0xb6   : > { %396 = vst.msk [vmem:[#allocation2 + $0x18] sm:$0xff] %vm385_vm0, %v384_v17 }
  0xb7   : > { %393 = vst.msk [vmem:[#allocation2] sm:$0xff] %vm392_vm1, %v380_v18 }
  0xb9   : > { %v382_v21 = vpop.permute.xlu0 %381 }
  0xba   : > { %v386_v22 = vsel %vm385_vm0, %v380_v18, %v382_v21  ;;  %v387_v23 = vsel %vm385_vm0, %v382_v21, %v384_v17  ;;  %v502_v18 = vld [vmem:[%s5968_s3] sm:$0xff]  ;;  %v4331_v21 = vmov 0  }
  0xbb   : > { %4210 = vset.pattern.permute.xlu1 %v4331_v21  ;;  %4211 = vset.pattern.permute.xlu0 %v4331_v21 }
  0xbd   : > { %v4500_v19 = vld [vmem:[#allocation2 + $0x18] sm:$0xff] }
  0xbe   : > { %v397_v20 = vld [vmem:[#allocation2] sm:$0xff]  ;;  %495 = vrot.lane.b32.xlu1 %v4500_v19, %s4321_s30 }
  0xbf   : > { %489 = vrot.lane.b32.xlu0 %v397_v20, %s4321_s30 }
  0xc2   : > { %483 = vrot.lane.b32.xlu1 %v4500_v19, %s4322_s12 }
  0xc3   : > { %477 = vrot.lane.b32.xlu0 %v397_v20, %s4322_s12 }
  0xc6   : > { %471 = vrot.lane.b32.xlu1 %v4500_v19, %s4323_s13 }
  0xc7   : > { %465 = vrot.lane.b32.xlu0 %v397_v20, %s4323_s13 }
  0xca   : > { %459 = vrot.lane.b32.xlu1 %v4500_v19, %s4324_s11 }
  0xcb   : > { %453 = vrot.lane.b32.xlu0 %v397_v20, %s4324_s11 }
  0xce   : > { %447 = vrot.lane.b32.xlu1 %v4500_v19, %s4325_s14 }
  0xcf   : > { %441 = vrot.lane.b32.xlu0 %v397_v20, %s4325_s14 }
  0xd2   : > { %435 = vrot.lane.b32.xlu1 %v4500_v19, %s4326_s15 }
  0xd3   : > { %429 = vrot.lane.b32.xlu0 %v397_v20, %s4326_s15 }
  0xd6   : > { %423 = vrot.lane.b32.xlu1 %v4500_v19, %s5986_s21 }
  0xd7   : > { %417 = vrot.lane.b32.xlu0 %v397_v20, %s5986_s21 }
  0xda   : > { %411 = vrot.lane.b32.xlu1 %v4500_v19, %s5984_s22 }
  0xdb   : > { %405 = vrot.lane.b32.xlu0 %v397_v20, %s5984_s22 }
  0xde   : > { %491 = vrot.lane.b32.xlu1 %v386_v22, %s4321_s30 }
  0xdf   : > { %508 = vrot.lane.b32.xlu0 %v397_v20, %s5982_s27 }
  0xe2   : > { %479 = vrot.lane.b32.xlu1 %v386_v22, %s4322_s12 }
  0xe3   : > { %493 = vrot.lane.b32.xlu0 %v387_v23, %s4321_s30 }
  0xe6   : > { %467 = vrot.lane.b32.xlu1 %v386_v22, %s4323_s13 }
  0xe7   : > { %481 = vrot.lane.b32.xlu0 %v387_v23, %s4322_s12 }
  0xea   : > { %455 = vrot.lane.b32.xlu1 %v386_v22, %s4324_s11 }
  0xeb   : > { %469 = vrot.lane.b32.xlu0 %v387_v23, %s4323_s13 }
  0xee   : > { %443 = vrot.lane.b32.xlu1 %v386_v22, %s4325_s14 }
  0xef   : > { %457 = vrot.lane.b32.xlu0 %v387_v23, %s4324_s11 }
  0xf2   : > { %431 = vrot.lane.b32.xlu1 %v386_v22, %s4326_s15 }
  0xf3   : > { %445 = vrot.lane.b32.xlu0 %v387_v23, %s4325_s14 }
  0xf6   : > { %419 = vrot.lane.b32.xlu1 %v386_v22, %s5986_s21 }
  0xf7   : > { %433 = vrot.lane.b32.xlu0 %v387_v23, %s4326_s15 }
  0xfa   : > { %407 = vrot.lane.b32.xlu1 %v386_v22, %s5984_s22 }
  0xfb   : > { %421 = vrot.lane.b32.xlu0 %v387_v23, %s5986_s21 }
  0xfe   : > { %512 = vrot.lane.b32.xlu1 %v387_v23, %s5982_s27 }
  0xff   : > { %409 = vrot.lane.b32.xlu0 %v387_v23, %s5984_s22  ;;  %s4340_s22 = smov 24  }
 0x103   : > { %510 = vrot.lane.b32.xlu0 %v386_v22, %s5982_s27 }
 0x130   : > { %v496_v24 = vpop.permute.xlu1 %495 }
 0x131   : > { %v490_v25 = vpop.permute.xlu0 %489  ;;  %578 = vrot.lane.b32.xlu1 %v496_v24, %s5982_s27 }
 0x134   : > { %v484_v26 = vpop.permute.xlu1 %483 }
 0x135   : > { %v478_v27 = vpop.permute.xlu0 %477  ;;  %570 = vrot.lane.b32.xlu1 %v484_v26, %s5982_s27 }
 0x138   : > { %v472_v28 = vpop.permute.xlu1 %471 }
 0x139   : > { %v466_v29 = vpop.permute.xlu0 %465  ;;  %562 = vrot.lane.b32.xlu1 %v472_v28, %s5982_s27 }
 0x13c   : > { %v460_v30 = vpop.permute.xlu1 %459 }
 0x13d   : > { %v454_v31 = vpop.permute.xlu0 %453  ;;  %554 = vrot.lane.b32.xlu1 %v460_v30, %s5982_s27 }
 0x140   : > { %v448_v32 = vpop.permute.xlu1 %447 }
 0x141   : > { %v4551_v33 = vpop.permute.xlu0 %441  ;;  %546 = vrot.lane.b32.xlu1 %v448_v32, %s5982_s27 }
 0x144   : > { %v436_v34 = vpop.permute.xlu1 %435 }
 0x145   : > { %v4554_v35 = vpop.permute.xlu0 %429  ;;  %538 = vrot.lane.b32.xlu1 %v436_v34, %s5982_s27 }
 0x148   : > { %v424_v36 = vpop.permute.xlu1 %423 }
 0x149   : > { %v4557_v37 = vpop.permute.xlu0 %417  ;;  %530 = vrot.lane.b32.xlu1 %v424_v36, %s5982_s27 }
 0x14c   : > { %v4560_v38 = vpop.permute.xlu1 %411 }
 0x14d   : > { %v4562_v39 = vpop.permute.xlu0 %405 }
 0x150   : > { %v492_v41 = vpop.permute.xlu1 %491 }
 0x151   : > { %v4564_v40 = vpop.permute.xlu0 %508  ;;  %v498_v47 = vsel %vm497_vm2, %v490_v25, %v492_v41 }
 0x154   : > { %v480_v45 = vpop.permute.xlu1 %479 }
 0x155   : > { %v494_v42 = vpop.permute.xlu0 %493  ;;  %v486_v51 = vsel %vm5979_vm3, %v478_v27, %v480_v45 }
 0x156   : > { %v500_v43 = vsel %vm497_vm2, %v494_v42, %v496_v24  ;;  %v499_v44 = vsel %vm497_vm2, %v492_v41, %v494_v42 }
 0x157   : > { %576 = vrot.lane.b32.xlu0 %v500_v43, %s5982_s27  ;;  %574 = vrot.lane.b32.xlu1 %v499_v44, %s5982_s27 }
 0x158   : > { %v468_v52 = vpop.permute.xlu1 %467 }
 0x159   : > { %v482_v46 = vpop.permute.xlu0 %481  ;;  %v474_v57 = vsel %vm473_vm4, %v466_v29, %v468_v52 }
 0x15a   : > { %v487_v48 = vsel %vm5979_vm3, %v480_v45, %v482_v46  ;;  %v488_v50 = vsel %vm5979_vm3, %v482_v46, %v484_v26 }
 0x15b   : > { %572 = vrot.lane.b32.xlu1 %v498_v47, %s5982_s27  ;;  %566 = vrot.lane.b32.xlu0 %v487_v48, %s5982_s27 }
 0x15c   : > { %v456_v59 = vpop.permute.xlu1 %455 }
 0x15d   : > { %v470_v49 = vpop.permute.xlu0 %469  ;;  %v462_v0 = vsel %vm5978_vm5, %v454_v31, %v456_v59 }
 0x15e   : > { %v476_v54 = vsel %vm473_vm4, %v470_v49, %v472_v28  ;;  %v475_v55 = vsel %vm473_vm4, %v468_v52, %v470_v49 }
 0x15f   : > { %568 = vrot.lane.b32.xlu1 %v488_v50, %s5982_s27  ;;  %564 = vrot.lane.b32.xlu0 %v486_v51, %s5982_s27 }
 0x160   : > { %v444_v6 = vpop.permute.xlu1 %443 }
 0x161   : > { %v458_v53 = vpop.permute.xlu0 %457  ;;  %v450_v10 = vsel %vm5977_vm6, %v4551_v33, %v444_v6 }
 0x162   : > { %v464_v58 = vsel %vm5978_vm5, %v458_v53, %v460_v30  ;;  %v463_v61 = vsel %vm5978_vm5, %v456_v59, %v458_v53 }
 0x163   : > { %560 = vrot.lane.b32.xlu1 %v476_v54, %s5982_s27  ;;  %558 = vrot.lane.b32.xlu0 %v475_v55, %s5982_s27 }
 0x164   : > { %v432_v12 = vpop.permute.xlu1 %431 }
 0x165   : > { %v446_v56 = vpop.permute.xlu0 %445  ;;  %v438_v14 = vsel %vm5976_vm7, %v4554_v35, %v432_v12 }
 0x166   : > { %v452_v62 = vsel %vm5977_vm6, %v446_v56, %v448_v32  ;;  %v451_v7 = vsel %vm5977_vm6, %v444_v6, %v446_v56 }
 0x167   : > { %556 = vrot.lane.b32.xlu0 %v474_v57, %s5982_s27  ;;  %552 = vrot.lane.b32.xlu1 %v464_v58, %s5982_s27 }
 0x168   : > { %v420_v15 = vpop.permute.xlu1 %419 }
 0x169   : > { %v434_v60 = vpop.permute.xlu0 %433  ;;  %v426_v17 = vsel %vm5988_vm8, %v4557_v37, %v420_v15 }
 0x16a   : > { %v440_v4 = vsel %vm5976_vm7, %v434_v60, %v436_v34  ;;  %v439_v13 = vsel %vm5976_vm7, %v432_v12, %v434_v60 }
 0x16b   : > { %550 = vrot.lane.b32.xlu0 %v463_v61, %s5982_s27  ;;  %544 = vrot.lane.b32.xlu1 %v452_v62, %s5982_s27 }
 0x16c   : > { %v408_v20 = vpop.permute.xlu1 %407 }
 0x16d   : > { %v422_v63 = vpop.permute.xlu0 %421  ;;  %v414_v23 = vsel %vm5975_vm9, %v4562_v39, %v408_v20 }
 0x16e   : > { %v428_v8 = vsel %vm5988_vm8, %v422_v63, %v424_v36  ;;  %v427_v16 = vsel %vm5988_vm8, %v420_v15, %v422_v63 }
 0x16f   : > { %548 = vrot.lane.b32.xlu0 %v462_v0, %s5982_s27  ;;  %536 = vrot.lane.b32.xlu1 %v440_v4, %s5982_s27 }
 0x170   : > { %v4632_v24 = vpop.permute.xlu1 %512 }
 0x171   : > { %v410_v9 = vpop.permute.xlu0 %409 }
 0x172   : > { %v416_v11 = vsel %vm5975_vm9, %v410_v9, %v4560_v38  ;;  %v415_v22 = vsel %vm5975_vm9, %v408_v20, %v410_v9 }
 0x173   : > { %542 = vrot.lane.b32.xlu0 %v451_v7, %s5982_s27  ;;  %528 = vrot.lane.b32.xlu1 %v428_v8, %s5982_s27 }
 0x175   : > { %v4634_v31 = vpop.permute.xlu0 %510 }
 0x177   : > { %540 = vrot.lane.b32.xlu0 %v450_v10, %s5982_s27  ;;  %520 = vrot.lane.b32.xlu1 %v416_v11, %s5982_s27 }
 0x17b   : > { %534 = vrot.lane.b32.xlu0 %v439_v13, %s5982_s27  ;;  %522 = vrot.lane.b32.xlu1 %v4560_v38, %s5982_s27 }
 0x17f   : > { %532 = vrot.lane.b32.xlu0 %v438_v14, %s5982_s27  ;;  %505 = vperm.xlu1 %4210, %v502_v18  }
 0x183   : > { %526 = vrot.lane.b32.xlu0 %v427_v16, %s5982_s27 }
 0x187   : > { %524 = vrot.lane.b32.xlu0 %v426_v17, %s5982_s27 }
 0x18b   : > { %518 = vrot.lane.b32.xlu0 %v415_v22, %s5982_s27 }
 0x18f   : > { %516 = vrot.lane.b32.xlu0 %v414_v23, %s5982_s27  ;;  %v582_v23 = vsel %vm5974_vm12, %v4634_v31, %v4632_v24 }
 0x193   : > { %514 = vrot.lane.b32.xlu0 %v4500_v19, %s5982_s27  ;;  %s4339_s27 = smov 64  }
 0x1a3   : > { %v579_v25 = vpop.permute.xlu1 %578 }
 0x1a7   : > { %v571_v26 = vpop.permute.xlu1 %570 }
 0x1ab   : > { %v563_v27 = vpop.permute.xlu1 %562 }
 0x1af   : > { %v555_v28 = vpop.permute.xlu1 %554 }
 0x1b3   : > { %v547_v29 = vpop.permute.xlu1 %546 }
 0x1b7   : > { %v539_v30 = vpop.permute.xlu1 %538 }
 0x1bb   : > { %v531_v32 = vpop.permute.xlu1 %530 }
 0x1c9   : > { %v575_v33 = vpop.permute.xlu1 %574  ;;  %v577_v34 = vpop.permute.xlu0 %576 }
 0x1ca   : > { %v606_v35 = vsel %vm5974_vm12, %v575_v33, %v577_v34  ;;  %v607_v36 = vsel %vm5974_vm12, %v577_v34, %v579_v25  ;;  %v501_v25 = vld [vmem:[%s5967_s2] sm:$0xff] }
 0x1cb   : > { %652 = vmatprep.subr.mxu0 %v606_v35  ;;  %3956 = vmatpush3.msra.mxu1 %v607_v36 }
 0x1cc   : > { %3957 = vmatprep.subr.mxu1 %v4319_v2 }
 0x1cd   : > { %v573_v19 = vpop.permute.xlu1 %572  ;;  %v567_v37 = vpop.permute.xlu0 %566 }
 0x1ce   : > { %v605_v38 = vsel %vm5974_vm12, %v573_v19, %v575_v33 }
 0x1cf   : > { %653 = vmatpush1.msra.mxu0 %v605_v38 }
 0x1d1   : > { %v569_v39 = vpop.permute.xlu1 %568  ;;  %v565_v41 = vpop.permute.xlu0 %564 }
 0x1d2   : > { %v603_v42 = vsel %vm5974_vm12, %v567_v37, %v569_v39  ;;  %v604_v43 = vsel %vm5974_vm12, %v569_v39, %v571_v26  ;;  %v602_v44 = vsel %vm5974_vm12, %v565_v41, %v567_v37  ;;  %v581_v26 = vsel %vm5974_vm12, %v4564_v40, %v4634_v31 }
 0x1d3   : > { %654 = vmatprep.subr.mxu0 %v603_v42  ;;  %3958 = vmatpush3.msra.mxu1 %v604_v43 }
 0x1d4   : > { %655 = vmatpush1.msra.mxu0 %v602_v44  ;;  %3959 = vmatprep.subr.mxu1 %v4319_v2 }
 0x1d5   : > { %v561_v45 = vpop.permute.xlu1 %560  ;;  %v559_v46 = vpop.permute.xlu0 %558 }
 0x1d6   : > { %v600_v47 = vsel %vm5974_vm12, %v559_v46, %v561_v45  ;;  %v601_v48 = vsel %vm5974_vm12, %v561_v45, %v563_v27 }
 0x1d7   : > { %656 = vmatprep.subr.mxu0 %v600_v47  ;;  %3960 = vmatpush3.msra.mxu1 %v601_v48 }
 0x1d8   : > { %3961 = vmatprep.subr.mxu1 %v4319_v2 }
 0x1d9   : > { %v553_v49 = vpop.permute.xlu1 %552  ;;  %v557_v50 = vpop.permute.xlu0 %556 }
 0x1da   : > { %v599_v51 = vsel %vm5974_vm12, %v557_v50, %v559_v46  ;;  %v598_v52 = vsel %vm5974_vm12, %v553_v49, %v555_v28 }
 0x1db   : > { %657 = vmatpush1.msra.mxu0 %v599_v51  ;;  %3962 = vmatpush3.msra.mxu1 %v598_v52 }
 0x1dc   : > { %3963 = vmatprep.subr.mxu1 %v4319_v2 }
 0x1dd   : > { %v545_v53 = vpop.permute.xlu1 %544  ;;  %v551_v54 = vpop.permute.xlu0 %550 }
 0x1de   : > { %v597_v55 = vsel %vm5974_vm12, %v551_v54, %v553_v49  ;;  %v595_v56 = vsel %vm5974_vm12, %v545_v53, %v547_v29  ;;  %v299_v29 = vand.u32 127, %v298_v1 }
 0x1df   : > { %658 = vmatprep.subr.mxu0 %v597_v55  ;;  %3964 = vmatpush3.msra.mxu1 %v595_v56 }
 0x1e0   : > { %3965 = vmatprep.subr.mxu1 %v4319_v2  ;;  %v300_v40 = vadd.s32 128, %v299_v29 }
 0x1e1   : > { %v537_v57 = vpop.permute.xlu1 %536  ;;  %v549_v58 = vpop.permute.xlu0 %548 }
 0x1e2   : > { %v596_v59 = vsel %vm5974_vm12, %v549_v58, %v551_v54  ;;  %v592_v60 = vsel %vm5974_vm12, %v537_v57, %v539_v30  ;;  %v4686_v30 = vmul.u32.u64.low 2863311531, %v299_v29  ;;  %v4687_v31 = vmul.u32.u64.high 2863311531, %v299_v29, %v4686_v30 }
 0x1e3   : > { %659 = vmatpush1.msra.mxu0 %v596_v59  ;;  %3966 = vmatpush3.msra.mxu1 %v592_v60  ;;  %v4689_v33 = vmul.u32.u64.low 2863311531, %v300_v40  ;;  %v4690_v34 = vmul.u32.u64.high 2863311531, %v300_v40, %v4689_v33 }
 0x1e4   : > { %3967 = vmatprep.subr.mxu1 %v4319_v2  ;;  %v308_v36 = vshrl.u32 %v4687_v31, 4 }
 0x1e5   : > { %v529_v61 = vpop.permute.xlu1 %528  ;;  %v543_v62 = vpop.permute.xlu0 %542  ;;  %v319_v19 = vshrl.u32 %v4690_v34, 4 }
 0x1e6   : > { %v594_v63 = vsel %vm5974_vm12, %v543_v62, %v545_v53  ;;  %v589_v0 = vsel %vm5974_vm12, %v529_v61, %v531_v32  ;;  %v301_v32 = vadd.s32 256, %v299_v29  ;;  %v309_v37 = vmul.u32 24, %v308_v36 }
 0x1e7   : > { %660 = vmatprep.subr.mxu0 %v594_v63  ;;  %3968 = vmatpush3.msra.mxu1 %v589_v0  ;;  %v320_v39 = vmul.u32 24, %v319_v19 }
 0x1e8   : > { %3969 = vmatprep.subr.mxu1 %v4319_v2  ;;  %v310_v41 = vsub.s32 %v299_v29, %v309_v37 }
 0x1e9   : > { %v521_v4 = vpop.permute.xlu1 %520  ;;  %v541_v6 = vpop.permute.xlu0 %540  ;;  %v321_v43 = vsub.s32 %v300_v40, %v320_v39 }
 0x1ea   : > { %v593_v7 = vsel %vm5974_vm12, %v541_v6, %v543_v62  ;;  %vm335_vm13 = vcmp.ne.s32.totalorder %v310_v41, 0  ;;  %vm338_vm14 = vcmp.lt.s32.totalorder %v310_v41, 0  ;;  %v344_v45 = vadd.s32 24, %v310_v41  ;;  %v3510_v6 = vld [vmem:[#allocation4] sm:$0x1] }
 0x1eb   : > { %661 = vmatpush1.msra.mxu0 %v593_v7  ;;  %vm336_vm15 = vcmp.ne.s32.totalorder %v321_v43, 0  ;;  %vm341_vm9 = vmand %vm338_vm14, %vm335_vm13  ;;  %v345_v46 = vadd.s32 24, %v321_v43  ;;  %vm832_vm13 = vcmask 1014784   ;;  %vm6004_vm14 = vmmov 0  }
 0x1ec   : > { %v347_v48 = vsel %vm341_vm9, %v344_v45, %v310_v41 }
 0x1ed   : > { %v523_v8 = vpop.permute.xlu1 %522  ;;  %v535_v9 = vpop.permute.xlu0 %534 }
 0x1ee   : > { %v591_v10 = vsel %vm5974_vm12, %v535_v9, %v537_v57  ;;  %v586_v11 = vsel %vm5974_vm12, %v521_v4, %v523_v8 }
 0x1ef   : > { %662 = vmatprep.subr.mxu0 %v591_v10  ;;  %3970 = vmatpush3.msra.mxu1 %v586_v11 }
 0x1f0   : > { %3971 = vmatprep.subr.mxu1 %v4319_v2 }
 0x1f1   : > { %v533_v12 = vpop.permute.xlu0 %532 }
 0x1f2   : > { %v590_v13 = vsel %vm5974_vm12, %v533_v12, %v535_v9  ;;  %v808_v9 = vld [vmem:[#allocation3 + $0x20] sm:$0xff] }
 0x1f3   : > { %663 = vmatpush1.msra.mxu0 %v590_v13 }
 0x1f5   : > { %v527_v14 = vpop.permute.xlu0 %526 }
 0x1f6   : > { %v588_v15 = vsel %vm5974_vm12, %v527_v14, %v529_v61 }
 0x1f7   : > { %664 = vmatprep.subr.mxu0 %v588_v15 }
 0x1f9   : > { %v525_v16 = vpop.permute.xlu0 %524 }
 0x1fa   : > { %v587_v17 = vsel %vm5974_vm12, %v525_v16, %v527_v14  ;;  %v506_v47 = vpop.permute.xlu1 %505 }
 0x1fb   : > { %665 = vmatpush1.msra.mxu0 %v587_v17 }
 0x1fd   : > { %v519_v18 = vpop.permute.xlu0 %518 }
 0x1fe   : > { %v585_v20 = vsel %vm5974_vm12, %v519_v18, %v521_v4 }
 0x1ff   : > { %666 = vmatprep.subr.mxu0 %v585_v20 }
 0x201   : > { %v517_v21 = vpop.permute.xlu0 %516 }
 0x202   : > { %v584_v22 = vsel %vm5974_vm12, %v517_v21, %v519_v18 }
 0x203   : > { %667 = vmatpush1.msra.mxu0 %v584_v22 }
 0x204   : > { %668 = vmatprep.subr.mxu0 %v582_v23 }
 0x205   : > { %669 = vmatpush1.msra.mxu0 %v581_v26  ;;  %v515_v27 = vpop.permute.xlu0 %514 }
 0x206   : > { %3835 = vmatmul.mubr.msk.f32.vlgmr.msra.gmra.mxu0 %vm291_vm10, %v501_v25  ;;  %v583_v28 = vsel %vm5974_vm12, %v4632_v24, %v515_v27  ;;  %v4692_v24 = vmul.u32.u64.low 2863311531, %v301_v32  ;;  %v4693_v35 = vmul.u32.u64.high 2863311531, %v301_v32, %v4692_v24  ;;  %vm339_vm12 = vcmp.lt.s32.totalorder %v321_v43, 0 }
 0x207   : > { %3972 = vmatpush3.msra.mxu1 %v583_v28  ;;  %1098 = vmatprep.mubr.f32.mxu0 %v4319_v2  ;;  %vm342_vm5 = vmand %vm339_vm12, %vm336_vm15  ;;  %vm866_vm12 = vcmask 621568   ;;  %vm1320_vm15 = vcmask 457728  }
 0x208   : > { %3974 = vmatmul.mubr.msk.f32.vlgmr.msra.gmra.mxu1 %vm291_vm10, %v501_v25  ;;  %3976 = vmatprep.subr.mxu1 %v4319_v2  ;;  %v330_v38 = vshrl.u32 %v4693_v35, 4  ;;  %v348_v53 = vsel %vm342_vm5, %v345_v46, %v321_v43 }
 0x209   : > { %3994 = vmatprep.mubr.msk.f32.mxu1 %vm5980_vm11, %v4319_v2  ;;  %vm4702_vm11 = vcmp.lt.s32.totalorder %v347_v48, 16  ;;  %vm4708_vm9 = vcmp.lt.s32.totalorder %v348_v53, 16 }
 0x20a   : > { %v331_v42 = vmul.u32 24, %v330_v38 }
 0x20c   : > { %v332_v44 = vsub.s32 %v301_v32, %v331_v42 }
 0x20e   : > { %vm337_vm7 = vcmp.ne.s32.totalorder %v332_v44, 0  ;;  %vm340_vm6 = vcmp.lt.s32.totalorder %v332_v44, 0  ;;  %v346_v49 = vadd.s32 24, %v332_v44 }
 0x20f   : > { %vm4698_vm3 = vmand %vm340_vm6, %vm337_vm7  ;;  %vm891_vm6 = vcmask 244736   ;;  %vm879_vm7 = vcmask 261120  }
 0x210   : > { %v349_v60 = vsel %vm4698_vm3, %v346_v49, %v332_v44  ;;  %vm903_vm3 = vcmask 228352  }
 0x211   : > { %vm4715_vm5 = vcmp.lt.s32.totalorder %v349_v60, 16 }
 0x2c6   : > { %v704_v50 = vpop.f32.mrf.mxu0 }
 0x2c7   : > { %v705_v52 = vadd.f32 %v704_v50, %v506_v47 }
 0x2c8   : > { %v706_v54 = vpop.f32.mrf.mxu0  ;;  %v775_v55 = vpop.f32.mrf.mxu1 }
 0x2c9   : > { %v779_v57 = vmax.f32 %v705_v52, 0.0  ;;  %v707_v58 = vadd.f32 %v706_v54, %v506_v47  ;;  %v776_v59 = vadd.f32 %v775_v55, %v506_v47 }
 0x2ca   : > { %v3975_v61 = vpop.f32.mrf.mxu1 }
 0x2cb   : > { %v780_v63 = vmax.f32 %v707_v58, 0.0  ;;  %v781_v0 = vmax.f32 %v776_v59, 0.0  ;;  %v782_v4 = vsel %vm4702_vm11, %v779_v57, 0.0 }
 0x2cc   : > { %788 = vrot.lane.b32.xlu0 %v782_v4, %s4320_s29 }
 0x2cd   : > { %v783_v7 = vsel %vm4708_vm9, %v780_v63, 0.0  ;;  %v784_v8 = vsel %vm4715_vm5, %v781_v0, 0.0 }
 0x2ce   : > { %790 = vrot.lane.b32.xlu1 %v783_v7, %s4320_s29 }
 0x2d0   : > { %792 = vrot.lane.b32.xlu0 %v784_v8, %s4320_s29 }
 0x2d2   : > { %901 = vrot.lane.b32.xlu1 %v808_v9, %s4332_s20 }
 0x2d4   : > { %877 = vrot.lane.b32.xlu0 %v808_v9, %s4333_s16 }
 0x2d6   : > { %889 = vrot.lane.b32.xlu1 %v808_v9, %s4334_s8  ;;  %v3838_v9 = vld [vmem:[%s5968_s3 + $0x8] sm:$0xff] }
 0x33e   : > { %v789_v10 = vpop.permute.xlu0 %788 }
 0x33f   : > { %800 = vst.msk [vmem:[#allocation3] sm:$0xff] %vm392_vm1, %v789_v10 }
 0x340   : > { %v791_v14 = vpop.permute.xlu1 %790 }
 0x341   : > { %v794_v15 = vsel %vm385_vm0, %v789_v10, %v791_v14 }
 0x342   : > { %v793_v11 = vpop.permute.xlu0 %792 }
 0x343   : > { %803 = vst.msk [vmem:[#allocation3 + $0x18] sm:$0xff] %vm385_vm0, %v793_v11  ;;  %v795_v16 = vsel %vm385_vm0, %v791_v14, %v793_v11 }
 0x344   : > { %v902_v17 = vpop.permute.xlu1 %901 }
 0x346   : > { %v804_v13 = vld [vmem:[#allocation3] sm:$0xff]  ;;  %v878_v20 = vpop.permute.xlu0 %877 }
 0x348   : > { %v890_v18 = vpop.permute.xlu1 %889 }
 0x34a   : > { %v807_v12 = vld [vmem:[#allocation3 + $0x18] sm:$0xff] }
 0x34b   : > { %887 = vrot.lane.b32.xlu0 %v807_v12, %s4334_s8  ;;  %899 = vrot.lane.b32.xlu1 %v807_v12, %s4332_s20 }
 0x34f   : > { %875 = vrot.lane.b32.xlu0 %v807_v12, %s4333_s16  ;;  %853 = vrot.lane.b32.xlu1 %v807_v12, %s4321_s30 }
 0x353   : > { %864 = vrot.lane.b32.xlu0 %v807_v12, %s4335_s17  ;;  %842 = vrot.lane.b32.xlu1 %v807_v12, %s4323_s13 }
 0x357   : > { %847 = vrot.lane.b32.xlu0 %v804_v13, %s4321_s30  ;;  %830 = vrot.lane.b32.xlu1 %v807_v12, %s4336_s19 }
 0x35b   : > { %836 = vrot.lane.b32.xlu0 %v804_v13, %s4323_s13  ;;  %819 = vrot.lane.b32.xlu1 %v807_v12, %s5986_s21 }
 0x35f   : > { %824 = vrot.lane.b32.xlu0 %v804_v13, %s4336_s19  ;;  %858 = vrot.lane.b32.xlu1 %v804_v13, %s4335_s17 }
 0x363   : > { %813 = vrot.lane.b32.xlu0 %v804_v13, %s5986_s21  ;;  %895 = vrot.lane.b32.xlu1 %v794_v15, %s4332_s20 }
 0x367   : > { %885 = vrot.lane.b32.xlu1 %v795_v16, %s4334_s8  ;;  %897 = vrot.lane.b32.xlu0 %v795_v16, %s4332_s20 }
 0x36b   : > { %873 = vrot.lane.b32.xlu1 %v795_v16, %s4333_s16  ;;  %883 = vrot.lane.b32.xlu0 %v794_v15, %s4334_s8  ;;  %s4337_s8 = smov 56  }
 0x36f   : > { %862 = vrot.lane.b32.xlu1 %v795_v16, %s4335_s17  ;;  %871 = vrot.lane.b32.xlu0 %v794_v15, %s4333_s16 }
 0x373   : > { %849 = vrot.lane.b32.xlu1 %v794_v15, %s4321_s30  ;;  %860 = vrot.lane.b32.xlu0 %v794_v15, %s4335_s17  ;;  %s4338_s17 = smov 60  }
 0x377   : > { %838 = vrot.lane.b32.xlu1 %v794_v15, %s4323_s13  ;;  %851 = vrot.lane.b32.xlu0 %v795_v16, %s4321_s30 }
 0x37b   : > { %826 = vrot.lane.b32.xlu1 %v794_v15, %s4336_s19  ;;  %840 = vrot.lane.b32.xlu0 %v795_v16, %s4323_s13 }
 0x37f   : > { %815 = vrot.lane.b32.xlu1 %v794_v15, %s5986_s21  ;;  %828 = vrot.lane.b32.xlu0 %v795_v16, %s4336_s19 }
 0x383   : > { %817 = vrot.lane.b32.xlu0 %v795_v16, %s5986_s21  ;;  %s4341_s21 = smov 120  }
 0x3bd   : > { %v900_v21 = vpop.permute.xlu1 %899  ;;  %v888_v22 = vpop.permute.xlu0 %887 }
 0x3be   : > { %v906_v32 = vsel %vm903_vm3, %v900_v21, %v902_v17  ;;  %v894_v24 = vsel %vm891_vm6, %v888_v22, %v890_v18 }
 0x3c1   : > { %v854_v23 = vpop.permute.xlu1 %853  ;;  %v876_v25 = vpop.permute.xlu0 %875 }
 0x3c2   : > { %v882_v19 = vsel %vm879_vm7, %v876_v25, %v878_v20 }
 0x3c5   : > { %v843_v26 = vpop.permute.xlu1 %842  ;;  %v865_v27 = vpop.permute.xlu0 %864 }
 0x3c6   : > { %954 = vrot.lane.b32.xlu1 %v865_v27, %s4321_s30 }
 0x3c9   : > { %v4758_v28 = vpop.permute.xlu1 %830  ;;  %v848_v29 = vpop.permute.xlu0 %847 }
 0x3ca   : > { %946 = vrot.lane.b32.xlu1 %v854_v23, %s4321_s30 }
 0x3cd   : > { %v4761_v40 = vpop.permute.xlu1 %819  ;;  %v4763_v30 = vpop.permute.xlu0 %836 }
 0x3ce   : > { %938 = vrot.lane.b32.xlu1 %v843_v26, %s4321_s30 }
 0x3d1   : > { %v4766_v31 = vpop.permute.xlu0 %824  ;;  %v859_v33 = vpop.permute.xlu1 %858 }
 0x3d2   : > { %978 = vrot.lane.b32.xlu1 %v906_v32, %s4321_s30 }
 0x3d5   : > { %v4770_v34 = vpop.permute.xlu0 %813  ;;  %v896_v35 = vpop.permute.xlu1 %895 }
 0x3d6   : > { %970 = vrot.lane.b32.xlu1 %v894_v24, %s4321_s30 }
 0x3d9   : > { %v898_v36 = vpop.permute.xlu0 %897  ;;  %v886_v38 = vpop.permute.xlu1 %885 }
 0x3da   : > { %962 = vrot.lane.b32.xlu1 %v882_v19, %s4321_s30  ;;  %v904_v41 = vsel %vm903_vm3, %v896_v35, %v898_v36  ;;  %v893_v44 = vsel %vm891_vm6, %v886_v38, %v888_v22  ;;  %v905_v45 = vsel %vm903_vm3, %v898_v36, %v900_v21 }
 0x3dd   : > { %v884_v37 = vpop.permute.xlu0 %883  ;;  %v874_v42 = vpop.permute.xlu1 %873 }
 0x3de   : > { %972 = vrot.lane.b32.xlu1 %v896_v35, %s4321_s30  ;;  %964 = vrot.lane.b32.xlu0 %v884_v37, %s4321_s30  ;;  %v881_v47 = vsel %vm879_vm7, %v874_v42, %v876_v25  ;;  %v892_v48 = vsel %vm891_vm6, %v884_v37, %v886_v38  ;;  %vm1305_vm6 = vcmask 490496  }
 0x3e1   : > { %v872_v39 = vpop.permute.xlu0 %871  ;;  %v863_v49 = vpop.permute.xlu1 %862 }
 0x3e2   : > { %974 = vrot.lane.b32.xlu1 %v904_v41, %s4321_s30  ;;  %956 = vrot.lane.b32.xlu0 %v872_v39, %s4321_s30  ;;  %v869_v50 = vsel %vm866_vm12, %v863_v49, %v865_v27  ;;  %v880_v51 = vsel %vm879_vm7, %v872_v39, %v874_v42 }
 0x3e5   : > { %v861_v43 = vpop.permute.xlu0 %860  ;;  %v850_v59 = vpop.permute.xlu1 %849 }
 0x3e6   : > { %968 = vrot.lane.b32.xlu1 %v893_v44, %s4321_s30  ;;  %976 = vrot.lane.b32.xlu0 %v905_v45, %s4321_s30  ;;  %v868_v53 = vsel %vm866_vm12, %v861_v43, %v863_v49  ;;  %v867_v57 = vsel %vm866_vm12, %v859_v33, %v861_v43  ;;  %v4810_v0 = vsel %vm497_vm2, %v848_v29, %v850_v59  ;;  %vm1290_vm12 = vcmask 523264  }
 0x3e9   : > { %v852_v46 = vpop.permute.xlu0 %851  ;;  %v839_v7 = vpop.permute.xlu1 %838 }
 0x3ea   : > { %960 = vrot.lane.b32.xlu1 %v881_v47, %s4321_s30  ;;  %966 = vrot.lane.b32.xlu0 %v892_v48, %s4321_s30  ;;  %v4793_v54 = vsel %vm497_vm2, %v852_v46, %v854_v23  ;;  %v4802_v60 = vsel %vm497_vm2, %v850_v59, %v852_v46  ;;  %v844_v10 = vsel %vm473_vm4, %v4763_v30, %v839_v7 }
 0x3ed   : > { %v841_v52 = vpop.permute.xlu0 %840  ;;  %v827_v11 = vpop.permute.xlu1 %826 }
 0x3ee   : > { %952 = vrot.lane.b32.xlu1 %v869_v50, %s4321_s30  ;;  %958 = vrot.lane.b32.xlu0 %v880_v51, %s4321_s30  ;;  %v846_v58 = vsel %vm473_vm4, %v841_v52, %v843_v26  ;;  %v845_v8 = vsel %vm473_vm4, %v839_v7, %v841_v52  ;;  %v833_v13 = vsel %vm832_vm13, %v4766_v31, %v827_v11 }
 0x3f1   : > { %v829_v55 = vpop.permute.xlu0 %828  ;;  %v816_v14 = vpop.permute.xlu1 %815 }
 0x3f2   : > { %950 = vrot.lane.b32.xlu0 %v868_v53, %s4321_s30  ;;  %944 = vrot.lane.b32.xlu1 %v4793_v54, %s4321_s30  ;;  %v835_v61 = vsel %vm832_vm13, %v829_v55, %v4758_v28  ;;  %v834_v12 = vsel %vm832_vm13, %v827_v11, %v829_v55  ;;  %v821_v16 = vsel %vm5988_vm8, %v4770_v34, %v816_v14 }
 0x3f5   : > { %v818_v63 = vpop.permute.xlu0 %817 }
 0x3f6   : > { %948 = vrot.lane.b32.xlu0 %v867_v57, %s4321_s30  ;;  %936 = vrot.lane.b32.xlu1 %v846_v58, %s4321_s30  ;;  %v823_v4 = vsel %vm5988_vm8, %v818_v63, %v4761_v40  ;;  %v822_v15 = vsel %vm5988_vm8, %v816_v14, %v818_v63  ;;  %vm1274_vm8 = vcmask 195584  }
 0x3fa   : > { %942 = vrot.lane.b32.xlu0 %v4802_v60, %s4321_s30  ;;  %928 = vrot.lane.b32.xlu1 %v835_v61, %s4321_s30 }
 0x3fe   : > { %940 = vrot.lane.b32.xlu0 %v4810_v0, %s4321_s30  ;;  %920 = vrot.lane.b32.xlu1 %v823_v4, %s4321_s30 }
 0x402   : > { %934 = vrot.lane.b32.xlu0 %v845_v8, %s4321_s30  ;;  %930 = vrot.lane.b32.xlu1 %v4758_v28, %s4321_s30 }
 0x406   : > { %932 = vrot.lane.b32.xlu0 %v844_v10, %s4321_s30  ;;  %913 = vperm.xlu1 %4210, %v3838_v9  }
 0x40a   : > { %926 = vrot.lane.b32.xlu0 %v834_v12, %s4321_s30 }
 0x40e   : > { %924 = vrot.lane.b32.xlu0 %v833_v13, %s4321_s30 }
 0x412   : > { %918 = vrot.lane.b32.xlu0 %v822_v15, %s4321_s30 }
 0x416   : > { %916 = vrot.lane.b32.xlu0 %v821_v16, %s4321_s30 }
 0x41a   : > { %922 = vrot.lane.b32.xlu0 %v4761_v40, %s4321_s30 }
 0x438   : > { %v955_v17 = vpop.permute.xlu1 %954 }
 0x43c   : > { %v947_v18 = vpop.permute.xlu1 %946 }
 0x440   : > { %v939_v20 = vpop.permute.xlu1 %938 }
 0x444   : > { %v979_v21 = vpop.permute.xlu1 %978 }
 0x448   : > { %v971_v22 = vpop.permute.xlu1 %970 }
 0x44c   : > { %v963_v23 = vpop.permute.xlu1 %962 }
 0x450   : > { %v973_v25 = vpop.permute.xlu1 %972  ;;  %v965_v26 = vpop.permute.xlu0 %964 }
 0x454   : > { %v975_v27 = vpop.permute.xlu1 %974  ;;  %v957_v28 = vpop.permute.xlu0 %956 }
 0x455   : > { %v1001_v40 = vsel %vm497_vm2, %v973_v25, %v975_v27 }
 0x458   : > { %v969_v29 = vpop.permute.xlu1 %968  ;;  %v977_v30 = vpop.permute.xlu0 %976 }
 0x459   : > { %v1002_v31 = vsel %vm497_vm2, %v975_v27, %v977_v30  ;;  %v1003_v32 = vsel %vm497_vm2, %v977_v30, %v979_v21  ;;  %v1000_v33 = vsel %vm497_vm2, %v969_v29, %v971_v22 }
 0x45a   : > { %1048 = vmatprep.subr.mxu0 %v1002_v31  ;;  %3977 = vmatpush3.msra.mxu1 %v1003_v32 }
 0x45b   : > { %1049 = vmatpush1.msra.mxu0 %v1001_v40  ;;  %3978 = vmatprep.subr.mxu1 %v4319_v2  ;;  %v1204_v40 = vld [vmem:[#allocation2 + $0x20] sm:$0xff] }
 0x45c   : > { %v961_v34 = vpop.permute.xlu1 %960  ;;  %3979 = vmatpush3.msra.mxu1 %v1000_v33  ;;  %v967_v24 = vpop.permute.xlu0 %966 }
 0x45d   : > { %3980 = vmatprep.subr.mxu1 %v4319_v2  ;;  %v999_v35 = vsel %vm497_vm2, %v967_v24, %v969_v29  ;;  %v997_v36 = vsel %vm497_vm2, %v961_v34, %v963_v23  ;;  %v998_v19 = vsel %vm497_vm2, %v965_v26, %v967_v24 }
 0x45e   : > { %1050 = vmatprep.subr.mxu0 %v999_v35  ;;  %3981 = vmatpush3.msra.mxu1 %v997_v36 }
 0x45f   : > { %1051 = vmatpush1.msra.mxu0 %v998_v19  ;;  %3982 = vmatprep.subr.mxu1 %v4319_v2 }
 0x460   : > { %v953_v37 = vpop.permute.xlu1 %952  ;;  %v959_v38 = vpop.permute.xlu0 %958 }
 0x461   : > { %v996_v39 = vsel %vm497_vm2, %v959_v38, %v961_v34  ;;  %v994_v41 = vsel %vm497_vm2, %v953_v37, %v955_v17  ;;  %v995_v42 = vsel %vm497_vm2, %v957_v28, %v959_v38  ;;  %v3837_v17 = vld [vmem:[%s5967_s2 + $0x8] sm:$0xff]  ;;  %v3842_v38 = vld [vmem:[%s5968_s3 + $0x10] sm:$0xff] }
 0x462   : > { %1052 = vmatprep.subr.mxu0 %v996_v39  ;;  %3983 = vmatpush3.msra.mxu1 %v994_v41 }
 0x463   : > { %1053 = vmatpush1.msra.mxu0 %v995_v42  ;;  %3984 = vmatprep.subr.mxu1 %v4319_v2 }
 0x464   : > { %v945_v43 = vpop.permute.xlu1 %944  ;;  %v951_v44 = vpop.permute.xlu0 %950 }
 0x465   : > { %v993_v45 = vsel %vm497_vm2, %v951_v44, %v953_v37  ;;  %v991_v46 = vsel %vm497_vm2, %v945_v43, %v947_v18 }
 0x466   : > { %1054 = vmatprep.subr.mxu0 %v993_v45  ;;  %3985 = vmatpush3.msra.mxu1 %v991_v46 }
 0x467   : > { %3986 = vmatprep.subr.mxu1 %v4319_v2 }
 0x468   : > { %v937_v47 = vpop.permute.xlu1 %936  ;;  %v949_v48 = vpop.permute.xlu0 %948 }
 0x469   : > { %v992_v49 = vsel %vm497_vm2, %v949_v48, %v951_v44  ;;  %v988_v50 = vsel %vm497_vm2, %v937_v47, %v939_v20 }
 0x46a   : > { %1055 = vmatpush1.msra.mxu0 %v992_v49  ;;  %3987 = vmatpush3.msra.mxu1 %v988_v50 }
 0x46b   : > { %3988 = vmatprep.subr.mxu1 %v4319_v2 }
 0x46c   : > { %v929_v51 = vpop.permute.xlu1 %928  ;;  %v943_v52 = vpop.permute.xlu0 %942 }
 0x46d   : > { %v990_v53 = vsel %vm497_vm2, %v943_v52, %v945_v43 }
 0x46e   : > { %1056 = vmatprep.subr.mxu0 %v990_v53 }
 0x470   : > { %v921_v55 = vpop.permute.xlu1 %920  ;;  %v941_v57 = vpop.permute.xlu0 %940 }
 0x471   : > { %v989_v58 = vsel %vm497_vm2, %v941_v57, %v943_v52 }
 0x472   : > { %1057 = vmatpush1.msra.mxu0 %v989_v58 }
 0x474   : > { %v931_v59 = vpop.permute.xlu1 %930  ;;  %v935_v61 = vpop.permute.xlu0 %934 }
 0x475   : > { %v985_v63 = vsel %vm497_vm2, %v929_v51, %v931_v59  ;;  %v987_v4 = vsel %vm497_vm2, %v935_v61, %v937_v47 }
 0x476   : > { %1058 = vmatprep.subr.mxu0 %v987_v4  ;;  %3989 = vmatpush3.msra.mxu1 %v985_v63 }
 0x477   : > { %3990 = vmatprep.subr.mxu1 %v4319_v2 }
 0x478   : > { %v933_v7 = vpop.permute.xlu0 %932 }
 0x479   : > { %v986_v8 = vsel %vm497_vm2, %v933_v7, %v935_v61 }
 0x47a   : > { %1059 = vmatpush1.msra.mxu0 %v986_v8 }
 0x47c   : > { %v927_v9 = vpop.permute.xlu0 %926 }
 0x47d   : > { %v984_v10 = vsel %vm497_vm2, %v927_v9, %v929_v51 }
 0x47e   : > { %1060 = vmatprep.subr.mxu0 %v984_v10 }
 0x480   : > { %v925_v11 = vpop.permute.xlu0 %924 }
 0x481   : > { %v983_v12 = vsel %vm497_vm2, %v925_v11, %v927_v9 }
 0x482   : > { %1061 = vmatpush1.msra.mxu0 %v983_v12 }
 0x484   : > { %v919_v13 = vpop.permute.xlu0 %918 }
 0x485   : > { %v981_v14 = vsel %vm497_vm2, %v919_v13, %v921_v55 }
 0x486   : > { %1062 = vmatprep.subr.mxu0 %v981_v14 }
 0x488   : > { %v917_v15 = vpop.permute.xlu0 %916 }
 0x489   : > { %v980_v16 = vsel %vm497_vm2, %v917_v15, %v919_v13 }
 0x48a   : > { %1063 = vmatpush1.msra.mxu0 %v980_v16 }
 0x48b   : > { %1064 = vmatprep.subr.mxu0 %v4802_v60 }
 0x48c   : > { %1065 = vmatpush1.msra.mxu0 %v4810_v0  ;;  %v923_v18 = vpop.permute.xlu0 %922  ;;  %v914_v0 = vpop.permute.xlu1 %913 }
 0x48d   : > { %v982_v20 = vsel %vm497_vm2, %v921_v55, %v923_v18  ;;  %3839 = vmatmul.mubr.msk.f32.vlgmr.msra.gmra.mxu0 %vm291_vm10, %v3837_v17 }
 0x48e   : > { %3991 = vmatpush3.msra.mxu1 %v982_v20  ;;  %1403 = vmatprep.mubr.f32.mxu0 %v4319_v2 }
 0x48f   : > { %3992 = vmatprep.subr.mxu1 %v4319_v2 }
 0x490   : > { %3993 = vmatpush3.msra.mxu1 %v4793_v54 }
 0x491   : > { %3995 = vmatmul.mubr.msk.f32.vlgmr.msra.gmra.mxu1 %vm291_vm10, %v3837_v17  ;;  %3997 = vmatprep.subr.mxu1 %v4319_v2 }
 0x492   : > { %4015 = vmatprep.mubr.msk.f32.mxu1 %vm6004_vm14, %v4319_v2 }
 0x54d   : > { %v1100_v60 = vpop.f32.mrf.mxu0 }
 0x54e   : > { %v1101_v22 = vadd.f32 %v1100_v60, %v914_v0 }
 0x54f   : > { %v1102_v21 = vpop.f32.mrf.mxu0 }
 0x550   : > { %v1103_v23 = vadd.f32 %v1102_v21, %v914_v0  ;;  %v1175_v29 = vmax.f32 %v1101_v22, 0.0 }
 0x551   : > { %v1171_v25 = vpop.f32.mrf.mxu1 }
 0x552   : > { %v1176_v26 = vmax.f32 %v1103_v23, 0.0  ;;  %v1172_v27 = vadd.f32 %v1171_v25, %v914_v0  ;;  %v1178_v32 = vsel %vm4702_vm11, %v1175_v29, 0.0 }
 0x553   : > { %v3996_v28 = vpop.f32.mrf.mxu1 }
 0x554   : > { %v1179_v54 = vsel %vm4708_vm9, %v1176_v26, 0.0  ;;  %v1177_v30 = vmax.f32 %v1172_v27, 0.0 }
 0x555   : > { %1186 = vrot.lane.b32.xlu0 %v1179_v54, %s4320_s29 }
 0x556   : > { %v1180_v31 = vsel %vm4715_vm5, %v1177_v30, 0.0 }
 0x557   : > { %1188 = vrot.lane.b32.xlu1 %v1180_v31, %s4320_s29 }
 0x559   : > { %1184 = vrot.lane.b32.xlu0 %v1178_v32, %s4320_s29 }
 0x55b   : > { %1318 = vrot.lane.b32.xlu1 %v1204_v40, %s4337_s8 }
 0x55f   : > { %1303 = vrot.lane.b32.xlu1 %v1204_v40, %s4338_s17 }
 0x563   : > { %1288 = vrot.lane.b32.xlu1 %v1204_v40, %s4339_s27 }
 0x5c7   : > { %v1187_v33 = vpop.permute.xlu0 %1186 }
 0x5c9   : > { %v1189_v34 = vpop.permute.xlu1 %1188 }
 0x5ca   : > { %1199 = vst.msk [vmem:[#allocation2 + $0x18] sm:$0xff] %vm385_vm0, %v1189_v34  ;;  %v4909_v19 = vsel %vm385_vm0, %v1187_v33, %v1189_v34 }
 0x5cb   : > { %v1185_v24 = vpop.permute.xlu0 %1184 }
 0x5cc   : > { %1196 = vst.msk [vmem:[#allocation2] sm:$0xff] %vm392_vm1, %v1185_v24  ;;  %v4916_v37 = vsel %vm385_vm0, %v1185_v24, %v1187_v33 }
 0x5cd   : > { %v1319_v39 = vpop.permute.xlu1 %1318 }
 0x5d1   : > { %v1203_v35 = vld [vmem:[#allocation2 + $0x18] sm:$0xff]  ;;  %v1304_v41 = vpop.permute.xlu1 %1303 }
 0x5d2   : > { %1301 = vrot.lane.b32.xlu1 %v1203_v35, %s4338_s17  ;;  %1316 = vrot.lane.b32.xlu0 %v1203_v35, %s4337_s8 }
 0x5d3   : > { %v4897_v36 = vld [vmem:[#allocation2] sm:$0xff] }
 0x5d5   : > { %v1289_v42 = vpop.permute.xlu1 %1288 }
 0x5d6   : > { %1286 = vrot.lane.b32.xlu1 %v1203_v35, %s4339_s27  ;;  %1266 = vrot.lane.b32.xlu0 %v4897_v36, %s4340_s22 }
 0x5da   : > { %1272 = vrot.lane.b32.xlu1 %v1203_v35, %s4340_s22  ;;  %1252 = vrot.lane.b32.xlu0 %v4897_v36, %s4332_s20 }
 0x5de   : > { %1258 = vrot.lane.b32.xlu1 %v1203_v35, %s4332_s20  ;;  %1238 = vrot.lane.b32.xlu0 %v4897_v36, %s4333_s16 }
 0x5e2   : > { %1244 = vrot.lane.b32.xlu1 %v1203_v35, %s4333_s16  ;;  %1223 = vrot.lane.b32.xlu0 %v4897_v36, %s4341_s21 }
 0x5e6   : > { %1314 = vrot.lane.b32.xlu1 %v4909_v19, %s4337_s8  ;;  %1209 = vrot.lane.b32.xlu0 %v4897_v36, %s4336_s19 }
 0x5ea   : > { %1299 = vrot.lane.b32.xlu0 %v4909_v19, %s4338_s17  ;;  %1312 = vrot.lane.b32.xlu1 %v4916_v37, %s4337_s8 }
 0x5ee   : > { %1297 = vrot.lane.b32.xlu0 %v4916_v37, %s4338_s17  ;;  %1270 = vrot.lane.b32.xlu1 %v4909_v19, %s4340_s22 }
 0x5f2   : > { %1284 = vrot.lane.b32.xlu0 %v4909_v19, %s4339_s27  ;;  %1256 = vrot.lane.b32.xlu1 %v4909_v19, %s4332_s20 }
 0x5f6   : > { %1282 = vrot.lane.b32.xlu0 %v4916_v37, %s4339_s27  ;;  %1242 = vrot.lane.b32.xlu1 %v4909_v19, %s4333_s16  ;;  %s6005_s27 = smov 126  }
 0x5fa   : > { %1268 = vrot.lane.b32.xlu0 %v4916_v37, %s4340_s22  ;;  %1227 = vrot.lane.b32.xlu1 %v4909_v19, %s4341_s21 }
 0x5fe   : > { %1254 = vrot.lane.b32.xlu0 %v4916_v37, %s4332_s20  ;;  %1213 = vrot.lane.b32.xlu1 %v4909_v19, %s4336_s19 }
 0x602   : > { %1240 = vrot.lane.b32.xlu0 %v4916_v37, %s4333_s16  ;;  %1229 = vrot.lane.b32.xlu1 %v1203_v35, %s4341_s21  ;;  %s6006_s16 = smov 127  }
 0x606   : > { %1225 = vrot.lane.b32.xlu0 %v4916_v37, %s4341_s21  ;;  %1333 = vperm.xlu1 %4210, %v3842_v38   ;;  %s3734_s21 = scalar_lea.sflag [#allocation7], %s4468_s18 }
 0x60a   : > { %1211 = vrot.lane.b32.xlu0 %v4916_v37, %s4336_s19 }
 0x60e   : > { %1215 = vrot.lane.b32.xlu0 %v1203_v35, %s4336_s19  ;;  %s6007_s19 = smov 53  }
 0x644   : > { %v1302_v43 = vpop.permute.xlu1 %1301  ;;  %v1317_v44 = vpop.permute.xlu0 %1316 }
 0x645   : > { %v1323_v45 = vsel %vm1320_vm15, %v1317_v44, %v1319_v39  ;;  %v1308_v46 = vsel %vm1305_vm6, %v1302_v43, %v1304_v41  ;;  %v3841_v39 = vld [vmem:[%s5967_s2 + $0x10] sm:$0xff] }
 0x646   : > { %3998 = vmatpush3.msra.mxu1 %v1323_v45 }
 0x647   : > { %3999 = vmatprep.subr.mxu1 %v4319_v2 }
 0x648   : > { %v1287_v47 = vpop.permute.xlu1 %1286  ;;  %4000 = vmatpush3.msra.mxu1 %v1308_v46  ;;  %v1267_v48 = vpop.permute.xlu0 %1266 }
 0x649   : > { %4001 = vmatprep.subr.mxu1 %v4319_v2  ;;  %v1293_v49 = vsel %vm1290_vm12, %v1287_v47, %v1289_v42 }
 0x64a   : > { %4002 = vmatpush3.msra.mxu1 %v1293_v49 }
 0x64b   : > { %4003 = vmatprep.subr.mxu1 %v4319_v2 }
 0x64c   : > { %v1273_v50 = vpop.permute.xlu1 %1272  ;;  %v1253_v51 = vpop.permute.xlu0 %1252 }
 0x650   : > { %v1259_v52 = vpop.permute.xlu1 %1258  ;;  %v1239_v53 = vpop.permute.xlu0 %1238 }
 0x654   : > { %v1245_v55 = vpop.permute.xlu1 %1244  ;;  %v1224_v57 = vpop.permute.xlu0 %1223 }
 0x658   : > { %v1315_v58 = vpop.permute.xlu1 %1314  ;;  %v1210_v59 = vpop.permute.xlu0 %1209 }
 0x659   : > { %v1322_v61 = vsel %vm1320_vm15, %v1315_v58, %v1317_v44 }
 0x65a   : > { %1353 = vmatprep.subr.mxu0 %v1322_v61 }
 0x65c   : > { %v1313_v63 = vpop.permute.xlu1 %1312  ;;  %v1300_v4 = vpop.permute.xlu0 %1299 }
 0x65d   : > { %v1321_v7 = vsel %vm1320_vm15, %v1313_v63, %v1315_v58  ;;  %v1307_v8 = vsel %vm1305_vm6, %v1300_v4, %v1302_v43  ;;  %vm1231_vm15 = vcmask 982016  }
 0x65e   : > { %1354 = vmatpush1.msra.mxu0 %v1321_v7 }
 0x65f   : > { %1355 = vmatprep.subr.mxu0 %v1307_v8 }
 0x660   : > { %v1271_v9 = vpop.permute.xlu1 %1270  ;;  %v1298_v10 = vpop.permute.xlu0 %1297 }
 0x661   : > { %v1306_v11 = vsel %vm1305_vm6, %v1298_v10, %v1300_v4  ;;  %v1277_v12 = vsel %vm1274_vm8, %v1271_v9, %v1273_v50  ;;  %vm6011_vm6 = vcmask 834560  }
 0x662   : > { %1356 = vmatpush1.msra.mxu0 %v1306_v11  ;;  %4004 = vmatpush3.msra.mxu1 %v1277_v12 }
 0x663   : > { %4005 = vmatprep.subr.mxu1 %v4319_v2 }
 0x664   : > { %v1257_v13 = vpop.permute.xlu1 %1256  ;;  %v1285_v14 = vpop.permute.xlu0 %1284 }
 0x665   : > { %v1292_v15 = vsel %vm1290_vm12, %v1285_v14, %v1287_v47  ;;  %v1262_v16 = vsel %vm903_vm3, %v1257_v13, %v1259_v52 }
 0x666   : > { %1357 = vmatprep.subr.mxu0 %v1292_v15  ;;  %4006 = vmatpush3.msra.mxu1 %v1262_v16 }
 0x667   : > { %4007 = vmatprep.subr.mxu1 %v4319_v2 }
 0x668   : > { %v1243_v17 = vpop.permute.xlu1 %1242  ;;  %v1283_v18 = vpop.permute.xlu0 %1282 }
 0x669   : > { %v1291_v20 = vsel %vm1290_vm12, %v1283_v18, %v1285_v14  ;;  %v1248_v60 = vsel %vm879_vm7, %v1243_v17, %v1245_v55  ;;  %vm6012_vm12 = vmmov %vm6011_vm6 }
 0x66a   : > { %1358 = vmatpush1.msra.mxu0 %v1291_v20  ;;  %4008 = vmatpush3.msra.mxu1 %v1248_v60 }
 0x66b   : > { %4009 = vmatprep.subr.mxu1 %v4319_v2 }
 0x66c   : > { %v1228_v0 = vpop.permute.xlu1 %1227  ;;  %v1269_v21 = vpop.permute.xlu0 %1268 }
 0x66d   : > { %v1276_v22 = vsel %vm1274_vm8, %v1269_v21, %v1271_v9  ;;  %v1275_v23 = vsel %vm1274_vm8, %v1267_v48, %v1269_v21  ;;  %vm6008_vm8 = vcmask 646144  }
 0x66e   : > { %1359 = vmatprep.subr.mxu0 %v1276_v22 }
 0x66f   : > { %1360 = vmatpush1.msra.mxu0 %v1275_v23 }
 0x670   : > { %v1214_v25 = vpop.permute.xlu1 %1213  ;;  %v1255_v26 = vpop.permute.xlu0 %1254 }
 0x671   : > { %v1261_v27 = vsel %vm903_vm3, %v1255_v26, %v1257_v13  ;;  %v1260_v28 = vsel %vm903_vm3, %v1253_v51, %v1255_v26 }
 0x672   : > { %1361 = vmatprep.subr.mxu0 %v1261_v27 }
 0x673   : > { %1362 = vmatpush1.msra.mxu0 %v1260_v28 }
 0x674   : > { %v1230_v29 = vpop.permute.xlu1 %1229  ;;  %v1241_v54 = vpop.permute.xlu0 %1240 }
 0x675   : > { %v1234_v30 = vsel %vm1231_vm15, %v1228_v0, %v1230_v29  ;;  %v1247_v31 = vsel %vm879_vm7, %v1241_v54, %v1243_v17  ;;  %v1246_v32 = vsel %vm879_vm7, %v1239_v53, %v1241_v54  ;;  %vm6009_vm7 = vmmov %vm6008_vm8 }
 0x676   : > { %1363 = vmatprep.subr.mxu0 %v1247_v31  ;;  %4010 = vmatpush3.msra.mxu1 %v1234_v30 }
 0x677   : > { %1364 = vmatpush1.msra.mxu0 %v1246_v32  ;;  %4011 = vmatprep.subr.mxu1 %v4319_v2 }
 0x678   : > { %v1226_v40 = vpop.permute.xlu0 %1225 }
 0x679   : > { %v1233_v33 = vsel %vm1231_vm15, %v1226_v40, %v1228_v0  ;;  %v1232_v34 = vsel %vm1231_vm15, %v1224_v57, %v1226_v40  ;;  %vm6013_vm15 = vcmask 842752  }
 0x67a   : > { %1365 = vmatprep.subr.mxu0 %v1233_v33 }
 0x67b   : > { %1366 = vmatpush1.msra.mxu0 %v1232_v34 }
 0x67c   : > { %v1212_v24 = vpop.permute.xlu0 %1211 }
 0x67d   : > { %v1218_v35 = vsel %vm832_vm13, %v1212_v24, %v1214_v25  ;;  %v1217_v38 = vsel %vm832_vm13, %v1210_v59, %v1212_v24 }
 0x67e   : > { %1367 = vmatprep.subr.mxu0 %v1218_v35 }
 0x67f   : > { %1368 = vmatpush1.msra.mxu0 %v1217_v38 }
 0x680   : > { %1369 = vmatprep.subr.mxu0 %v4916_v37  ;;  %v1216_v41 = vpop.permute.xlu0 %1215 }
 0x681   : > { %v1219_v42 = vsel %vm832_vm13, %v1214_v25, %v1216_v41  ;;  %1370 = vmatpush1.msra.mxu0 %v4897_v36  ;;  %v1334_v37 = vpop.permute.xlu1 %1333  ;;  %vm6010_vm13 = vmmov %vm6009_vm7 }
 0x682   : > { %3843 = vmatmul.mubr.msk.f32.vlgmr.msra.gmra.mxu0 %vm291_vm10, %v3841_v39  ;;  %4012 = vmatpush3.msra.mxu1 %v1219_v42 }
 0x683   : > { %4013 = vmatprep.subr.mxu1 %v4319_v2  ;;  %1803 = vmatprep.mubr.f32.mxu0 %v4319_v2 }
 0x684   : > { %4014 = vmatpush3.msra.mxu1 %v4909_v19 }
 0x685   : > { %4016 = vmatmul.mubr.msk.f32.vlgmr.msra.gmra.mxu1 %vm291_vm10, %v3841_v39  ;;  %4018 = vmatprep.subr.mxu1 %v4319_v2 }
 0x686   : > { %4036 = vmatprep.mubr.msk.f32.mxu1 %vm6004_vm14, %v4319_v2 }
 0x742   : > { %v1405_v43 = vpop.f32.mrf.mxu0 }
 0x743   : > { %v1406_v44 = vadd.f32 %v1405_v43, %v1334_v37 }
 0x744   : > { %v1407_v36 = vpop.f32.mrf.mxu0 }
 0x745   : > { %v1480_v45 = vmax.f32 %v1406_v44, 0.0  ;;  %v1408_v46 = vadd.f32 %v1407_v36, %v1334_v37  ;;  %v1476_v47 = vpop.f32.mrf.mxu1 }
 0x746   : > { %v1477_v48 = vadd.f32 %v1476_v47, %v1334_v37 }
 0x747   : > { %v1483_v49 = vsel %vm4702_vm11, %v1480_v45, 0.0  ;;  %v1481_v50 = vmax.f32 %v1408_v46, 0.0  ;;  %v4017_v19 = vpop.f32.mrf.mxu1 }
 0x748   : > { %v1482_v51 = vmax.f32 %v1477_v48, 0.0  ;;  %1489 = vrot.lane.b32.xlu0 %v1483_v49, %s4320_s29 }
 0x749   : > { %v1484_v52 = vsel %vm4708_vm9, %v1481_v50, 0.0 }
 0x74a   : > { %v1485_v53 = vsel %vm4715_vm5, %v1482_v51, 0.0  ;;  %1491 = vrot.lane.b32.xlu1 %v1484_v52, %s4320_s29 }
 0x74c   : > { %1493 = vrot.lane.b32.xlu0 %v1485_v53, %s4320_s29 }
 0x7ba   : > { %v1490_v55 = vpop.permute.xlu0 %1489 }
 0x7bb   : > { %1501 = vst.msk [vmem:[#allocation3] sm:$0xff] %vm392_vm1, %v1490_v55 }
 0x7bc   : > { %v1492_v61 = vpop.permute.xlu1 %1491 }
 0x7bd   : > { %v1495_v63 = vsel %vm385_vm0, %v1490_v55, %v1492_v61  ;;  %v3846_v55 = vld [vmem:[%s5968_s3 + $0x18] sm:$0xff] }
 0x7be   : > { %v1494_v57 = vpop.permute.xlu0 %1493 }
 0x7bf   : > { %1504 = vst.msk [vmem:[#allocation3 + $0x18] sm:$0xff] %vm385_vm0, %v1494_v57  ;;  %v1496_v4 = vsel %vm385_vm0, %v1492_v61, %v1494_v57 }
 0x7c2   : > { %v1505_v58 = vld [vmem:[#allocation3] sm:$0xff] }
 0x7c3   : > { %1590 = vrot.lane.b32.xlu0 %v1505_v58, %s4321_s30 }
 0x7c6   : > { %v4999_v59 = vld [vmem:[#allocation3 + $0x18] sm:$0xff] }
 0x7c7   : > { %1579 = vrot.lane.b32.xlu0 %v1505_v58, %s4322_s12  ;;  %1596 = vrot.lane.b32.xlu1 %v4999_v59, %s4321_s30 }
 0x7cb   : > { %1568 = vrot.lane.b32.xlu0 %v1505_v58, %s4323_s13  ;;  %1585 = vrot.lane.b32.xlu1 %v4999_v59, %s4322_s12 }
 0x7cf   : > { %1557 = vrot.lane.b32.xlu0 %v1505_v58, %s4324_s11  ;;  %1574 = vrot.lane.b32.xlu1 %v4999_v59, %s4323_s13 }
 0x7d3   : > { %1546 = vrot.lane.b32.xlu0 %v1505_v58, %s4325_s14  ;;  %1563 = vrot.lane.b32.xlu1 %v4999_v59, %s4324_s11 }
 0x7d7   : > { %1535 = vrot.lane.b32.xlu0 %v1505_v58, %s4326_s15  ;;  %1552 = vrot.lane.b32.xlu1 %v4999_v59, %s4325_s14 }
 0x7db   : > { %1524 = vrot.lane.b32.xlu0 %v1505_v58, %s6005_s27  ;;  %1541 = vrot.lane.b32.xlu1 %v4999_v59, %s4326_s15 }
 0x7df   : > { %1513 = vrot.lane.b32.xlu0 %v1505_v58, %s6006_s16  ;;  %1530 = vrot.lane.b32.xlu1 %v4999_v59, %s6005_s27 }
 0x7e3   : > { %1610 = vrot.lane.b32.xlu0 %v1505_v58, %s6007_s19  ;;  %1519 = vrot.lane.b32.xlu1 %v4999_v59, %s6006_s16 }
 0x7e7   : > { %1592 = vrot.lane.b32.xlu1 %v1495_v63, %s4321_s30  ;;  %1594 = vrot.lane.b32.xlu0 %v1496_v4, %s4321_s30 }
 0x7eb   : > { %1581 = vrot.lane.b32.xlu1 %v1495_v63, %s4322_s12  ;;  %1583 = vrot.lane.b32.xlu0 %v1496_v4, %s4322_s12 }
 0x7ef   : > { %1570 = vrot.lane.b32.xlu1 %v1495_v63, %s4323_s13  ;;  %1572 = vrot.lane.b32.xlu0 %v1496_v4, %s4323_s13 }
 0x7f3   : > { %1559 = vrot.lane.b32.xlu1 %v1495_v63, %s4324_s11  ;;  %1561 = vrot.lane.b32.xlu0 %v1496_v4, %s4324_s11 }
 0x7f7   : > { %1548 = vrot.lane.b32.xlu1 %v1495_v63, %s4325_s14  ;;  %1550 = vrot.lane.b32.xlu0 %v1496_v4, %s4325_s14 }
 0x7fb   : > { %1537 = vrot.lane.b32.xlu1 %v1495_v63, %s4326_s15  ;;  %1539 = vrot.lane.b32.xlu0 %v1496_v4, %s4326_s15 }
 0x7ff   : > { %1526 = vrot.lane.b32.xlu1 %v1495_v63, %s6005_s27  ;;  %1528 = vrot.lane.b32.xlu0 %v1496_v4, %s6005_s27 }
 0x803   : > { %1515 = vrot.lane.b32.xlu1 %v1495_v63, %s6006_s16  ;;  %1517 = vrot.lane.b32.xlu0 %v1496_v4, %s6006_s16 }
 0x807   : > { %1614 = vrot.lane.b32.xlu1 %v1496_v4, %s6007_s19  ;;  %1612 = vrot.lane.b32.xlu0 %v1495_v63, %s6007_s19 }
 0x835   : > { %v1591_v7 = vpop.permute.xlu0 %1590 }
 0x839   : > { %v1597_v8 = vpop.permute.xlu1 %1596  ;;  %v1580_v9 = vpop.permute.xlu0 %1579 }
 0x83a   : > { %1680 = vrot.lane.b32.xlu1 %v1597_v8, %s6007_s19 }
 0x83d   : > { %v1586_v10 = vpop.permute.xlu1 %1585  ;;  %v1569_v11 = vpop.permute.xlu0 %1568 }
 0x83e   : > { %1672 = vrot.lane.b32.xlu1 %v1586_v10, %s6007_s19 }
 0x841   : > { %v1575_v12 = vpop.permute.xlu1 %1574  ;;  %v1558_v13 = vpop.permute.xlu0 %1557 }
 0x842   : > { %1664 = vrot.lane.b32.xlu1 %v1575_v12, %s6007_s19 }
 0x845   : > { %v1564_v14 = vpop.permute.xlu1 %1563  ;;  %v1547_v15 = vpop.permute.xlu0 %1546 }
 0x846   : > { %1656 = vrot.lane.b32.xlu1 %v1564_v14, %s6007_s19 }
 0x849   : > { %v1553_v16 = vpop.permute.xlu1 %1552  ;;  %v5049_v17 = vpop.permute.xlu0 %1535 }
 0x84a   : > { %1648 = vrot.lane.b32.xlu1 %v1553_v16, %s6007_s19 }
 0x84d   : > { %v1542_v18 = vpop.permute.xlu1 %1541  ;;  %v5052_v20 = vpop.permute.xlu0 %1524 }
 0x84e   : > { %1640 = vrot.lane.b32.xlu1 %v1542_v18, %s6007_s19 }
 0x851   : > { %v1531_v60 = vpop.permute.xlu1 %1530  ;;  %v5055_v0 = vpop.permute.xlu0 %1513 }
 0x852   : > { %1632 = vrot.lane.b32.xlu1 %v1531_v60, %s6007_s19 }
 0x855   : > { %v1520_v21 = vpop.permute.xlu1 %1519  ;;  %v5058_v22 = vpop.permute.xlu0 %1610 }
 0x859   : > { %v1593_v23 = vpop.permute.xlu1 %1592  ;;  %v1595_v25 = vpop.permute.xlu0 %1594 }
 0x85a   : > { %v1600_v26 = vsel %vm497_vm2, %v1595_v25, %v1597_v8  ;;  %v1599_v27 = vsel %vm497_vm2, %v1593_v23, %v1595_v25  ;;  %v1598_v54 = vsel %vm497_vm2, %v1591_v7, %v1593_v23 }
 0x85b   : > { %1678 = vrot.lane.b32.xlu0 %v1600_v26, %s6007_s19  ;;  %1676 = vrot.lane.b32.xlu1 %v1599_v27, %s6007_s19 }
 0x85d   : > { %v1582_v28 = vpop.permute.xlu1 %1581  ;;  %v1584_v29 = vpop.permute.xlu0 %1583 }
 0x85e   : > { %v1588_v30 = vsel %vm6008_vm8, %v1582_v28, %v1584_v29  ;;  %v1589_v32 = vsel %vm6009_vm7, %v1584_v29, %v1586_v10  ;;  %v1587_v40 = vsel %vm6010_vm13, %v1580_v9, %v1582_v28  ;;  %vm6014_vm8 = vmmov %vm6011_vm6  ;;  %vm6015_vm7 = vcmask 850944  }
 0x85f   : > { %1674 = vrot.lane.b32.xlu1 %v1598_v54, %s6007_s19  ;;  %1668 = vrot.lane.b32.xlu0 %v1588_v30, %s6007_s19  ;;  %vm6016_vm13 = vmmov %vm6013_vm15 }
 0x861   : > { %v1573_v31 = vpop.permute.xlu0 %1572  ;;  %v1571_v33 = vpop.permute.xlu1 %1570 }
 0x862   : > { %v1578_v24 = vsel %vm473_vm4, %v1573_v31, %v1575_v12  ;;  %v1577_v35 = vsel %vm473_vm4, %v1571_v33, %v1573_v31  ;;  %v1576_v39 = vsel %vm473_vm4, %v1569_v11, %v1571_v33 }
 0x863   : > { %1670 = vrot.lane.b32.xlu1 %v1589_v32, %s6007_s19  ;;  %1666 = vrot.lane.b32.xlu0 %v1587_v40, %s6007_s19 }
 0x865   : > { %v1562_v34 = vpop.permute.xlu0 %1561  ;;  %v1560_v42 = vpop.permute.xlu1 %1559 }
 0x866   : > { %v1567_v41 = vsel %vm6011_vm6, %v1562_v34, %v1564_v14  ;;  %v1566_v43 = vsel %vm6012_vm12, %v1560_v42, %v1562_v34  ;;  %v1565_v45 = vsel %vm6014_vm8, %v1558_v13, %v1560_v42  ;;  %vm6017_vm6 = vcmask 1031168   ;;  %vm6018_vm12 = vmmov %vm6016_vm13 }
 0x867   : > { %1662 = vrot.lane.b32.xlu1 %v1578_v24, %s6007_s19  ;;  %1660 = vrot.lane.b32.xlu0 %v1577_v35, %s6007_s19  ;;  %vm6020_vm8 = vmmov %vm6015_vm7 }
 0x869   : > { %v1551_v38 = vpop.permute.xlu0 %1550  ;;  %v1549_v47 = vpop.permute.xlu1 %1548 }
 0x86a   : > { %v1556_v44 = vsel %vm6013_vm15, %v1551_v38, %v1553_v16  ;;  %v1555_v48 = vsel %vm6016_vm13, %v1549_v47, %v1551_v38  ;;  %v1554_v19 = vsel %vm6018_vm12, %v1547_v15, %v1549_v47  ;;  %vm6019_vm15 = vcmask 1039360   ;;  %vm6021_vm13 = vmmov %vm6017_vm6 }
 0x86b   : > { %1658 = vrot.lane.b32.xlu0 %v1576_v39, %s6007_s19  ;;  %1654 = vrot.lane.b32.xlu1 %v1567_v41, %s6007_s19  ;;  %vm6022_vm12 = vmmov %vm6019_vm15 }
 0x86d   : > { %v1540_v37 = vpop.permute.xlu0 %1539  ;;  %v1538_v52 = vpop.permute.xlu1 %1537 }
 0x86e   : > { %v1545_v46 = vsel %vm6015_vm7, %v1540_v37, %v1542_v18  ;;  %v1544_v53 = vsel %vm6020_vm8, %v1538_v52, %v1540_v37  ;;  %v1543_v57 = vsel %vm6015_vm7, %v5049_v17, %v1538_v52  ;;  %vm6024_vm8 = vcmask 433152  }
 0x86f   : > { %1652 = vrot.lane.b32.xlu0 %v1566_v43, %s6007_s19  ;;  %1646 = vrot.lane.b32.xlu1 %v1556_v44, %s6007_s19  ;;  %vm6025_vm7 = vmmov %vm6024_vm8 }
 0x871   : > { %v1529_v36 = vpop.permute.xlu0 %1528  ;;  %v1527_v58 = vpop.permute.xlu1 %1526 }
 0x872   : > { %v1534_v49 = vsel %vm6017_vm6, %v1529_v36, %v1531_v60  ;;  %v1533_v61 = vsel %vm6021_vm13, %v1527_v58, %v1529_v36  ;;  %v1532_v63 = vsel %vm6017_vm6, %v5052_v20, %v1527_v58  ;;  %vm6026_vm13 = vmmov %vm6025_vm7 }
 0x873   : > { %1650 = vrot.lane.b32.xlu0 %v1565_v45, %s6007_s19  ;;  %1638 = vrot.lane.b32.xlu1 %v1545_v46, %s6007_s19  ;;  %vm6027_vm6 = vmmov %vm6025_vm7 }
 0x875   : > { %v1518_v50 = vpop.permute.xlu0 %1517  ;;  %v1516_v4 = vpop.permute.xlu1 %1515 }
 0x876   : > { %v1523_v51 = vsel %vm6019_vm15, %v1518_v50, %v1520_v21  ;;  %v1522_v7 = vsel %vm6022_vm12, %v1516_v4, %v1518_v50  ;;  %vm6023_vm15 = vmmov %vm6022_vm12 }
 0x877   : > { %1644 = vrot.lane.b32.xlu0 %v1555_v48, %s6007_s19  ;;  %1630 = vrot.lane.b32.xlu1 %v1534_v49, %s6007_s19  ;;  %v1521_v8 = vsel %vm6023_vm15, %v5055_v0, %v1516_v4  ;;  %vm6028_vm12 = vmmov %vm6027_vm6 }
 0x878   : > { %vm6029_vm15 = vmmov %vm6027_vm6 }
 0x879   : > { %v5117_v9 = vpop.permute.xlu1 %1614  ;;  %v5119_v16 = vpop.permute.xlu0 %1612 }
 0x87b   : > { %1642 = vrot.lane.b32.xlu0 %v1554_v19, %s6007_s19  ;;  %1622 = vrot.lane.b32.xlu1 %v1523_v51, %s6007_s19 }
 0x87f   : > { %1636 = vrot.lane.b32.xlu0 %v1544_v53, %s6007_s19  ;;  %1624 = vrot.lane.b32.xlu1 %v1520_v21, %s6007_s19 }
 0x883   : > { %1634 = vrot.lane.b32.xlu0 %v1543_v57, %s6007_s19  ;;  %1607 = vperm.xlu1 %4210, %v3846_v55  }
 0x887   : > { %1628 = vrot.lane.b32.xlu0 %v1533_v61, %s6007_s19 }
 0x88b   : > { %1626 = vrot.lane.b32.xlu0 %v1532_v63, %s6007_s19 }
 0x88f   : > { %1620 = vrot.lane.b32.xlu0 %v1522_v7, %s6007_s19 }
 0x893   : > { %1618 = vrot.lane.b32.xlu0 %v1521_v8, %s6007_s19 }
 0x897   : > { %1616 = vrot.lane.b32.xlu0 %v4999_v59, %s6007_s19 }
 0x8ac   : > { %v1681_v10 = vpop.permute.xlu1 %1680 }
 0x8b0   : > { %v1673_v11 = vpop.permute.xlu1 %1672 }
 0x8b4   : > { %v1665_v12 = vpop.permute.xlu1 %1664 }
 0x8b8   : > { %v1657_v13 = vpop.permute.xlu1 %1656 }
 0x8bc   : > { %v1649_v14 = vpop.permute.xlu1 %1648 }
 0x8c0   : > { %v1641_v15 = vpop.permute.xlu1 %1640 }
 0x8c4   : > { %v1633_v17 = vpop.permute.xlu1 %1632 }
 0x8cd   : > { %v1677_v18 = vpop.permute.xlu1 %1676  ;;  %v1679_v20 = vpop.permute.xlu0 %1678 }
 0x8ce   : > { %v1707_v60 = vsel %vm6024_vm8, %v1677_v18, %v1679_v20  ;;  %v1708_v0 = vsel %vm6025_vm7, %v1679_v20, %v1681_v10  ;;  %vm6030_vm8 = vmmov %vm6027_vm6 }
 0x8cf   : > { %1753 = vmatprep.subr.mxu0 %v1707_v60  ;;  %4019 = vmatpush3.msra.mxu1 %v1708_v0  ;;  %vm6031_vm7 = vmmov %vm6027_vm6 }
 0x8d0   : > { %4020 = vmatprep.subr.mxu1 %v4319_v2 }
 0x8d1   : > { %v1675_v59 = vpop.permute.xlu1 %1674  ;;  %v1669_v21 = vpop.permute.xlu0 %1668 }
 0x8d2   : > { %v1706_v23 = vsel %vm6026_vm13, %v1675_v59, %v1677_v18  ;;  %vm6032_vm13 = vmmov %vm6027_vm6 }
 0x8d3   : > { %1754 = vmatpush1.msra.mxu0 %v1706_v23 }
 0x8d5   : > { %v1671_v25 = vpop.permute.xlu1 %1670  ;;  %v1667_v26 = vpop.permute.xlu0 %1666 }
 0x8d6   : > { %v1703_v27 = vsel %vm6027_vm6, %v1667_v26, %v1669_v21  ;;  %v1704_v28 = vsel %vm6028_vm12, %v1669_v21, %v1671_v25  ;;  %v1705_v29 = vsel %vm6029_vm15, %v1671_v25, %v1673_v11  ;;  %vm6033_vm12 = vmmov %vm6027_vm6 }
 0x8d7   : > { %1755 = vmatprep.subr.mxu0 %v1704_v28  ;;  %4021 = vmatpush3.msra.mxu1 %v1705_v29  ;;  %vm6034_vm15 = vmmov %vm6027_vm6 }
 0x8d8   : > { %1756 = vmatpush1.msra.mxu0 %v1703_v27  ;;  %4022 = vmatprep.subr.mxu1 %v4319_v2 }
 0x8d9   : > { %v1663_v54 = vpop.permute.xlu1 %1662  ;;  %v1661_v30 = vpop.permute.xlu0 %1660 }
 0x8da   : > { %v1701_v31 = vsel %vm6030_vm8, %v1661_v30, %v1663_v54  ;;  %v1702_v32 = vsel %vm6031_vm7, %v1663_v54, %v1665_v12  ;;  %vm6035_vm8 = vmmov %vm6027_vm6 }
 0x8db   : > { %1757 = vmatprep.subr.mxu0 %v1701_v31  ;;  %4023 = vmatpush3.msra.mxu1 %v1702_v32  ;;  %vm6036_vm7 = vmmov %vm6027_vm6 }
 0x8dc   : > { %4024 = vmatprep.subr.mxu1 %v4319_v2 }
 0x8dd   : > { %v1655_v40 = vpop.permute.xlu1 %1654  ;;  %v1659_v33 = vpop.permute.xlu0 %1658 }
 0x8de   : > { %v1700_v34 = vsel %vm6032_vm13, %v1659_v33, %v1661_v30  ;;  %v1699_v24 = vsel %vm6027_vm6, %v1655_v40, %v1657_v13  ;;  %vm6037_vm13 = vmmov %vm6027_vm6  ;;  %v3845_v13 = vld [vmem:[%s5967_s2 + $0x18] sm:$0xff] }
 0x8df   : > { %1758 = vmatpush1.msra.mxu0 %v1700_v34  ;;  %4025 = vmatpush3.msra.mxu1 %v1699_v24 }
 0x8e0   : > { %4026 = vmatprep.subr.mxu1 %v4319_v2 }
 0x8e1   : > { %v1647_v35 = vpop.permute.xlu1 %1646  ;;  %v1653_v38 = vpop.permute.xlu0 %1652 }
 0x8e2   : > { %v1698_v39 = vsel %vm6033_vm12, %v1653_v38, %v1655_v40  ;;  %v1696_v41 = vsel %vm6034_vm15, %v1647_v35, %v1649_v14  ;;  %vm6038_vm12 = vmmov %vm6027_vm6 }
 0x8e3   : > { %1759 = vmatprep.subr.mxu0 %v1698_v39  ;;  %4027 = vmatpush3.msra.mxu1 %v1696_v41  ;;  %vm6039_vm15 = vmmov %vm6027_vm6 }
 0x8e4   : > { %4028 = vmatprep.subr.mxu1 %v4319_v2 }
 0x8e5   : > { %v1639_v42 = vpop.permute.xlu1 %1638  ;;  %v1651_v37 = vpop.permute.xlu0 %1650 }
 0x8e6   : > { %v1697_v43 = vsel %vm6035_vm8, %v1651_v37, %v1653_v38  ;;  %v1693_v44 = vsel %vm6036_vm7, %v1639_v42, %v1641_v15  ;;  %vm6040_vm8 = vmmov %vm6027_vm6 }
 0x8e7   : > { %1760 = vmatpush1.msra.mxu0 %v1697_v43  ;;  %4029 = vmatpush3.msra.mxu1 %v1693_v44  ;;  %vm6041_vm7 = vmmov %vm6027_vm6 }
 0x8e8   : > { %4030 = vmatprep.subr.mxu1 %v4319_v2 }
 0x8e9   : > { %v1631_v36 = vpop.permute.xlu1 %1630  ;;  %v1645_v45 = vpop.permute.xlu0 %1644 }
 0x8ea   : > { %v1695_v46 = vsel %vm6037_vm13, %v1645_v45, %v1647_v35  ;;  %v1690_v47 = vsel %vm6027_vm6, %v1631_v36, %v1633_v17  ;;  %vm6042_vm13 = vmmov %vm6027_vm6 }
 0x8eb   : > { %1761 = vmatprep.subr.mxu0 %v1695_v46  ;;  %4031 = vmatpush3.msra.mxu1 %v1690_v47 }
 0x8ec   : > { %4032 = vmatprep.subr.mxu1 %v4319_v2 }
 0x8ed   : > { %v1623_v48 = vpop.permute.xlu1 %1622  ;;  %v1643_v49 = vpop.permute.xlu0 %1642 }
 0x8ee   : > { %v1694_v50 = vsel %vm6038_vm12, %v1643_v49, %v1645_v45  ;;  %vm6043_vm12 = vmmov %vm6027_vm6 }
 0x8ef   : > { %1762 = vmatpush1.msra.mxu0 %v1694_v50 }
 0x8f1   : > { %v1625_v19 = vpop.permute.xlu1 %1624  ;;  %v1637_v51 = vpop.permute.xlu0 %1636 }
 0x8f2   : > { %v1687_v52 = vsel %vm6039_vm15, %v1623_v48, %v1625_v19  ;;  %v1692_v53 = vsel %vm6040_vm8, %v1637_v51, %v1639_v42  ;;  %vm6044_vm15 = vmmov %vm6027_vm6 }
 0x8f3   : > { %1763 = vmatprep.subr.mxu0 %v1692_v53  ;;  %4033 = vmatpush3.msra.mxu1 %v1687_v52  ;;  %vm6045_vm8 = vmmov %vm6027_vm6 }
 0x8f4   : > { %4034 = vmatprep.subr.mxu1 %v4319_v2  ;;  %v1683_v12 = vsel %vm6045_vm8, %v5119_v16, %v5117_v9  ;;  %vm6051_vm8 = vcmask 834560  }
 0x8f5   : > { %v1635_v55 = vpop.permute.xlu0 %1634 }
 0x8f6   : > { %v1691_v57 = vsel %vm6041_vm7, %v1635_v55, %v1637_v51  ;;  %vm6046_vm7 = vmmov %vm6027_vm6 }
 0x8f7   : > { %1764 = vmatpush1.msra.mxu0 %v1691_v57  ;;  %v1682_v14 = vsel %vm6046_vm7, %v5058_v22, %v5119_v16  ;;  %vm6052_vm7 = vmmov %vm6051_vm8 }
 0x8f9   : > { %v1629_v58 = vpop.permute.xlu0 %1628 }
 0x8fa   : > { %v1689_v61 = vsel %vm6042_vm13, %v1629_v58, %v1631_v36  ;;  %vm6047_vm13 = vmmov %vm6027_vm6 }
 0x8fb   : > { %1765 = vmatprep.subr.mxu0 %v1689_v61 }
 0x8fd   : > { %v1627_v63 = vpop.permute.xlu0 %1626 }
 0x8fe   : > { %v1688_v4 = vsel %vm6027_vm6, %v1627_v63, %v1629_v58  ;;  %v1608_v18 = vpop.permute.xlu1 %1607  ;;  %vm6048_vm6 = vcmask 646144  }
 0x8ff   : > { %1766 = vmatpush1.msra.mxu0 %v1688_v4 }
 0x901   : > { %v1621_v7 = vpop.permute.xlu0 %1620 }
 0x902   : > { %v1686_v8 = vsel %vm6043_vm12, %v1621_v7, %v1623_v48  ;;  %vm6049_vm12 = vmmov %vm6048_vm6 }
 0x903   : > { %1767 = vmatprep.subr.mxu0 %v1686_v8 }
 0x905   : > { %v1619_v10 = vpop.permute.xlu0 %1618 }
 0x906   : > { %v1685_v11 = vsel %vm6044_vm15, %v1619_v10, %v1621_v7  ;;  %vm6050_vm15 = vmmov %vm6048_vm6 }
 0x907   : > { %1768 = vmatpush1.msra.mxu0 %v1685_v11 }
 0x908   : > { %1769 = vmatprep.subr.mxu0 %v1683_v12 }
 0x909   : > { %1770 = vmatpush1.msra.mxu0 %v1682_v14  ;;  %v1617_v15 = vpop.permute.xlu0 %1616 }
 0x90a   : > { %v1684_v17 = vsel %vm6047_vm13, %v5117_v9, %v1617_v15  ;;  %3847 = vmatmul.mubr.msk.f32.vlgmr.msra.gmra.mxu0 %vm291_vm10, %v3845_v13  ;;  %vm6053_vm13 = vcmask 842752  }
 0x90b   : > { %4035 = vmatpush3.msra.mxu1 %v1684_v17  ;;  %2203 = vmatprep.mubr.f32.mxu0 %v4319_v2 }
 0x90c   : > { %4037 = vmatmul.mubr.msk.f32.vlgmr.msra.gmra.mxu1 %vm291_vm10, %v3845_v13  ;;  %4039 = vmatprep.subr.mxu1 %v4319_v2 }
 0x90d   : > { %4057 = vmatprep.mubr.msk.f32.mxu1 %vm6004_vm14, %v4319_v2 }
 0x9ca   : > { %v1805_v20 = vpop.f32.mrf.mxu0 }
 0x9cb   : > { %v1806_v22 = vadd.f32 %v1805_v20, %v1608_v18 }
 0x9cc   : > { %v1807_v16 = vpop.f32.mrf.mxu0  ;;  %v1876_v60 = vpop.f32.mrf.mxu1 }
 0x9cd   : > { %v1880_v0 = vmax.f32 %v1806_v22, 0.0  ;;  %v1808_v59 = vadd.f32 %v1807_v16, %v1608_v18  ;;  %v1877_v9 = vadd.f32 %v1876_v60, %v1608_v18 }
 0x9ce   : > { %v4038_v21 = vpop.f32.mrf.mxu1 }
 0x9cf   : > { %v1883_v23 = vsel %vm4702_vm11, %v1880_v0, 0.0  ;;  %v1881_v25 = vmax.f32 %v1808_v59, 0.0  ;;  %v1882_v26 = vmax.f32 %v1877_v9, 0.0 }
 0x9d0   : > { %1889 = vrot.lane.b32.xlu0 %v1883_v23, %s4320_s29 }
 0x9d1   : > { %v1884_v27 = vsel %vm4708_vm9, %v1881_v25, 0.0  ;;  %v1885_v28 = vsel %vm4715_vm5, %v1882_v26, 0.0 }
 0x9d2   : > { %1891 = vrot.lane.b32.xlu1 %v1884_v27, %s4320_s29 }
 0x9d4   : > { %1893 = vrot.lane.b32.xlu0 %v1885_v28, %s4320_s29 }
 0xa42   : > { %v1890_v29 = vpop.permute.xlu0 %1889 }
 0xa43   : > { %1901 = vst.msk [vmem:[#allocation2] sm:$0xff] %vm392_vm1, %v1890_v29 }
 0xa44   : > { %v1892_v32 = vpop.permute.xlu1 %1891 }
 0xa45   : > { %v1895_v40 = vsel %vm385_vm0, %v1890_v29, %v1892_v32  ;;  %v3850_v29 = vld [vmem:[%s5968_s3 + $0x20] sm:$0xff] }
 0xa46   : > { %v1894_v54 = vpop.permute.xlu0 %1893 }
 0xa47   : > { %1904 = vst.msk [vmem:[#allocation2 + $0x18] sm:$0xff] %vm385_vm0, %v1894_v54  ;;  %v1896_v33 = vsel %vm385_vm0, %v1892_v32, %v1894_v54 }
 0xa4a   : > { %v1905_v30 = vld [vmem:[#allocation2] sm:$0xff] }
 0xa4b   : > { %1990 = vrot.lane.b32.xlu0 %v1905_v30, %s4321_s30 }
 0xa4e   : > { %v5182_v31 = vld [vmem:[#allocation2 + $0x18] sm:$0xff] }
 0xa4f   : > { %1979 = vrot.lane.b32.xlu0 %v1905_v30, %s4322_s12  ;;  %1996 = vrot.lane.b32.xlu1 %v5182_v31, %s4321_s30 }
 0xa53   : > { %1968 = vrot.lane.b32.xlu0 %v1905_v30, %s4323_s13  ;;  %1985 = vrot.lane.b32.xlu1 %v5182_v31, %s4322_s12 }
 0xa57   : > { %1957 = vrot.lane.b32.xlu0 %v1905_v30, %s4324_s11  ;;  %1974 = vrot.lane.b32.xlu1 %v5182_v31, %s4323_s13 }
 0xa5b   : > { %1946 = vrot.lane.b32.xlu0 %v1905_v30, %s4325_s14  ;;  %1963 = vrot.lane.b32.xlu1 %v5182_v31, %s4324_s11 }
 0xa5f   : > { %1935 = vrot.lane.b32.xlu0 %v1905_v30, %s4326_s15  ;;  %1952 = vrot.lane.b32.xlu1 %v5182_v31, %s4325_s14 }
 0xa63   : > { %1924 = vrot.lane.b32.xlu0 %v1905_v30, %s6005_s27  ;;  %1941 = vrot.lane.b32.xlu1 %v5182_v31, %s4326_s15 }
 0xa67   : > { %1913 = vrot.lane.b32.xlu0 %v1905_v30, %s6006_s16  ;;  %1930 = vrot.lane.b32.xlu1 %v5182_v31, %s6005_s27 }
 0xa6b   : > { %2010 = vrot.lane.b32.xlu0 %v1905_v30, %s6007_s19  ;;  %1919 = vrot.lane.b32.xlu1 %v5182_v31, %s6006_s16 }
 0xa6f   : > { %1992 = vrot.lane.b32.xlu1 %v1895_v40, %s4321_s30  ;;  %1994 = vrot.lane.b32.xlu0 %v1896_v33, %s4321_s30 }
 0xa73   : > { %1981 = vrot.lane.b32.xlu1 %v1895_v40, %s4322_s12  ;;  %1983 = vrot.lane.b32.xlu0 %v1896_v33, %s4322_s12 }
 0xa77   : > { %1970 = vrot.lane.b32.xlu1 %v1895_v40, %s4323_s13  ;;  %1972 = vrot.lane.b32.xlu0 %v1896_v33, %s4323_s13 }
 0xa7b   : > { %1959 = vrot.lane.b32.xlu1 %v1895_v40, %s4324_s11  ;;  %1961 = vrot.lane.b32.xlu0 %v1896_v33, %s4324_s11 }
 0xa7f   : > { %1948 = vrot.lane.b32.xlu1 %v1895_v40, %s4325_s14  ;;  %1950 = vrot.lane.b32.xlu0 %v1896_v33, %s4325_s14 }
 0xa83   : > { %1937 = vrot.lane.b32.xlu1 %v1895_v40, %s4326_s15  ;;  %1939 = vrot.lane.b32.xlu0 %v1896_v33, %s4326_s15 }
 0xa87   : > { %1926 = vrot.lane.b32.xlu1 %v1895_v40, %s6005_s27  ;;  %1928 = vrot.lane.b32.xlu0 %v1896_v33, %s6005_s27 }
 0xa8b   : > { %1915 = vrot.lane.b32.xlu1 %v1895_v40, %s6006_s16  ;;  %1917 = vrot.lane.b32.xlu0 %v1896_v33, %s6006_s16 }
 0xa8f   : > { %2014 = vrot.lane.b32.xlu1 %v1896_v33, %s6007_s19  ;;  %2012 = vrot.lane.b32.xlu0 %v1895_v40, %s6007_s19 }
 0xabd   : > { %v1991_v34 = vpop.permute.xlu0 %1990 }
 0xac1   : > { %v1997_v24 = vpop.permute.xlu1 %1996  ;;  %v1980_v35 = vpop.permute.xlu0 %1979 }
 0xac2   : > { %2080 = vrot.lane.b32.xlu1 %v1997_v24, %s6007_s19 }
 0xac5   : > { %v1986_v38 = vpop.permute.xlu1 %1985  ;;  %v1969_v39 = vpop.permute.xlu0 %1968 }
 0xac6   : > { %2072 = vrot.lane.b32.xlu1 %v1986_v38, %s6007_s19 }
 0xac9   : > { %v1975_v41 = vpop.permute.xlu1 %1974  ;;  %v1958_v42 = vpop.permute.xlu0 %1957 }
 0xaca   : > { %2064 = vrot.lane.b32.xlu1 %v1975_v41, %s6007_s19 }
 0xacd   : > { %v1964_v37 = vpop.permute.xlu1 %1963  ;;  %v1947_v43 = vpop.permute.xlu0 %1946 }
 0xace   : > { %2056 = vrot.lane.b32.xlu1 %v1964_v37, %s6007_s19 }
 0xad1   : > { %v1953_v44 = vpop.permute.xlu1 %1952  ;;  %v5232_v36 = vpop.permute.xlu0 %1935 }
 0xad2   : > { %2048 = vrot.lane.b32.xlu1 %v1953_v44, %s6007_s19 }
 0xad5   : > { %v1942_v45 = vpop.permute.xlu1 %1941  ;;  %v5235_v46 = vpop.permute.xlu0 %1924 }
 0xad6   : > { %2040 = vrot.lane.b32.xlu1 %v1942_v45, %s6007_s19 }
 0xad9   : > { %v1931_v47 = vpop.permute.xlu1 %1930  ;;  %v5238_v48 = vpop.permute.xlu0 %1913 }
 0xada   : > { %2032 = vrot.lane.b32.xlu1 %v1931_v47, %s6007_s19 }
 0xadd   : > { %v1920_v49 = vpop.permute.xlu1 %1919  ;;  %v5241_v50 = vpop.permute.xlu0 %2010 }
 0xae1   : > { %v1993_v19 = vpop.permute.xlu1 %1992  ;;  %v1995_v51 = vpop.permute.xlu0 %1994 }
 0xae2   : > { %v2000_v52 = vsel %vm497_vm2, %v1995_v51, %v1997_v24  ;;  %v1999_v53 = vsel %vm497_vm2, %v1993_v19, %v1995_v51  ;;  %v1998_v58 = vsel %vm497_vm2, %v1991_v34, %v1993_v19 }
 0xae3   : > { %2078 = vrot.lane.b32.xlu0 %v2000_v52, %s6007_s19  ;;  %2076 = vrot.lane.b32.xlu1 %v1999_v53, %s6007_s19 }
 0xae5   : > { %v1982_v55 = vpop.permute.xlu1 %1981  ;;  %v1984_v57 = vpop.permute.xlu0 %1983 }
 0xae6   : > { %v1988_v61 = vsel %vm6048_vm6, %v1982_v55, %v1984_v57  ;;  %v1989_v4 = vsel %vm6049_vm12, %v1984_v57, %v1986_v38  ;;  %v1987_v7 = vsel %vm6050_vm15, %v1980_v35, %v1982_v55  ;;  %vm6054_vm6 = vmmov %vm6052_vm7  ;;  %vm6055_vm12 = vcmask 850944  }
 0xae7   : > { %2074 = vrot.lane.b32.xlu1 %v1998_v58, %s6007_s19  ;;  %2068 = vrot.lane.b32.xlu0 %v1988_v61, %s6007_s19  ;;  %vm6056_vm15 = vmmov %vm6053_vm13 }
 0xae9   : > { %v1973_v63 = vpop.permute.xlu0 %1972  ;;  %v1971_v8 = vpop.permute.xlu1 %1970 }
 0xaea   : > { %v1978_v11 = vsel %vm473_vm4, %v1973_v63, %v1975_v41  ;;  %v1977_v12 = vsel %vm473_vm4, %v1971_v8, %v1973_v63  ;;  %v1976_v14 = vsel %vm473_vm4, %v1969_v39, %v1971_v8 }
 0xaeb   : > { %2070 = vrot.lane.b32.xlu1 %v1989_v4, %s6007_s19  ;;  %2066 = vrot.lane.b32.xlu0 %v1987_v7, %s6007_s19 }
 0xaed   : > { %v1962_v10 = vpop.permute.xlu0 %1961  ;;  %v1960_v17 = vpop.permute.xlu1 %1959 }
 0xaee   : > { %v1967_v15 = vsel %vm6051_vm8, %v1962_v10, %v1964_v37  ;;  %v1966_v20 = vsel %vm6052_vm7, %v1960_v17, %v1962_v10  ;;  %v1965_v60 = vsel %vm6054_vm6, %v1958_v42, %v1960_v17  ;;  %vm6057_vm8 = vcmask 1031168   ;;  %vm6058_vm7 = vmmov %vm6053_vm13 }
 0xaef   : > { %2062 = vrot.lane.b32.xlu1 %v1978_v11, %s6007_s19  ;;  %2060 = vrot.lane.b32.xlu0 %v1977_v12, %s6007_s19  ;;  %vm6060_vm6 = vmmov %vm6055_vm12 }
 0xaf1   : > { %v1951_v13 = vpop.permute.xlu0 %1950  ;;  %v1949_v59 = vpop.permute.xlu1 %1948 }
 0xaf2   : > { %v1956_v22 = vsel %vm6053_vm13, %v1951_v13, %v1953_v44  ;;  %v1955_v9 = vsel %vm6056_vm15, %v1949_v59, %v1951_v13  ;;  %v1954_v25 = vsel %vm6058_vm7, %v1947_v43, %v1949_v59  ;;  %vm6059_vm13 = vcmask 1039360   ;;  %vm6062_vm15 = vmmov %vm6057_vm8 }
 0xaf3   : > { %2058 = vrot.lane.b32.xlu0 %v1976_v14, %s6007_s19  ;;  %2054 = vrot.lane.b32.xlu1 %v1967_v15, %s6007_s19  ;;  %vm6063_vm7 = vmmov %vm6059_vm13 }
 0xaf5   : > { %v1940_v18 = vpop.permute.xlu0 %1939  ;;  %v1938_v27 = vpop.permute.xlu1 %1937 }
 0xaf6   : > { %v1945_v0 = vsel %vm6055_vm12, %v1940_v18, %v1942_v45  ;;  %v1944_v28 = vsel %vm6060_vm6, %v1938_v27, %v1940_v18  ;;  %vm6061_vm12 = vmmov %vm6060_vm6  ;;  %vm6065_vm6 = vcmask 433152  }
 0xaf7   : > { %2052 = vrot.lane.b32.xlu0 %v1966_v20, %s6007_s19  ;;  %2046 = vrot.lane.b32.xlu1 %v1956_v22, %s6007_s19  ;;  %v1943_v54 = vsel %vm6061_vm12, %v5232_v36, %v1938_v27  ;;  %vm6066_vm12 = vmmov %vm6065_vm6 }
 0xaf9   : > { %v1929_v16 = vpop.permute.xlu0 %1928  ;;  %v1927_v30 = vpop.permute.xlu1 %1926 }
 0xafa   : > { %v1934_v21 = vsel %vm6057_vm8, %v1929_v16, %v1931_v47  ;;  %v1933_v32 = vsel %vm6062_vm15, %v1927_v30, %v1929_v16  ;;  %v1932_v40 = vsel %vm6057_vm8, %v5235_v46, %v1927_v30  ;;  %vm6067_vm15 = vmmov %vm6065_vm6 }
 0xafb   : > { %2050 = vrot.lane.b32.xlu0 %v1965_v60, %s6007_s19  ;;  %2038 = vrot.lane.b32.xlu1 %v1945_v0, %s6007_s19  ;;  %vm6068_vm8 = vmmov %vm6065_vm6 }
 0xafd   : > { %v1918_v23 = vpop.permute.xlu0 %1917  ;;  %v1916_v33 = vpop.permute.xlu1 %1915 }
 0xafe   : > { %v1923_v26 = vsel %vm6059_vm13, %v1918_v23, %v1920_v49  ;;  %v1922_v34 = vsel %vm6063_vm7, %v1916_v33, %v1918_v23  ;;  %vm6064_vm13 = vmmov %vm6063_vm7 }
 0xaff   : > { %2044 = vrot.lane.b32.xlu0 %v1955_v9, %s6007_s19  ;;  %2030 = vrot.lane.b32.xlu1 %v1934_v21, %s6007_s19  ;;  %v1921_v24 = vsel %vm6064_vm13, %v5238_v48, %v1916_v33  ;;  %vm6069_vm7 = vmmov %vm6065_vm6 }
 0xb00   : > { %vm6070_vm13 = vmmov %vm6065_vm6 }
 0xb01   : > { %v5300_v35 = vpop.permute.xlu1 %2014  ;;  %v5302_v44 = vpop.permute.xlu0 %2012 }
 0xb03   : > { %2042 = vrot.lane.b32.xlu0 %v1954_v25, %s6007_s19  ;;  %2022 = vrot.lane.b32.xlu1 %v1923_v26, %s6007_s19 }
 0xb07   : > { %2036 = vrot.lane.b32.xlu0 %v1944_v28, %s6007_s19  ;;  %2024 = vrot.lane.b32.xlu1 %v1920_v49, %s6007_s19 }
 0xb0b   : > { %2034 = vrot.lane.b32.xlu0 %v1943_v54, %s6007_s19  ;;  %2007 = vperm.xlu1 %4210, %v3850_v29  }
 0xb0f   : > { %2028 = vrot.lane.b32.xlu0 %v1933_v32, %s6007_s19 }
 0xb13   : > { %2026 = vrot.lane.b32.xlu0 %v1932_v40, %s6007_s19 }
 0xb17   : > { %2020 = vrot.lane.b32.xlu0 %v1922_v34, %s6007_s19 }
 0xb1b   : > { %2018 = vrot.lane.b32.xlu0 %v1921_v24, %s6007_s19 }
 0xb1f   : > { %2016 = vrot.lane.b32.xlu0 %v5182_v31, %s6007_s19 }
 0xb34   : > { %v2081_v38 = vpop.permute.xlu1 %2080 }
 0xb38   : > { %v2073_v39 = vpop.permute.xlu1 %2072 }
 0xb3c   : > { %v2065_v41 = vpop.permute.xlu1 %2064 }
 0xb40   : > { %v2057_v42 = vpop.permute.xlu1 %2056 }
 0xb44   : > { %v2049_v37 = vpop.permute.xlu1 %2048 }
 0xb48   : > { %v2041_v43 = vpop.permute.xlu1 %2040 }
 0xb4c   : > { %v2033_v36 = vpop.permute.xlu1 %2032 }
 0xb55   : > { %v2077_v45 = vpop.permute.xlu1 %2076  ;;  %v2079_v46 = vpop.permute.xlu0 %2078 }
 0xb56   : > { %v2107_v47 = vsel %vm6065_vm6, %v2077_v45, %v2079_v46  ;;  %v2108_v48 = vsel %vm6066_vm12, %v2079_v46, %v2081_v38  ;;  %vm6071_vm12 = vmmov %vm6065_vm6 }
 0xb57   : > { %2153 = vmatprep.subr.mxu0 %v2107_v47  ;;  %4040 = vmatpush3.msra.mxu1 %v2108_v48 }
 0xb58   : > { %4041 = vmatprep.subr.mxu1 %v4319_v2 }
 0xb59   : > { %v2075_v31 = vpop.permute.xlu1 %2074  ;;  %v2069_v49 = vpop.permute.xlu0 %2068 }
 0xb5a   : > { %v2106_v19 = vsel %vm6067_vm15, %v2075_v31, %v2077_v45  ;;  %vm6072_vm15 = vmmov %vm6065_vm6 }
 0xb5b   : > { %2154 = vmatpush1.msra.mxu0 %v2106_v19 }
 0xb5d   : > { %v2071_v51 = vpop.permute.xlu1 %2070  ;;  %v2067_v52 = vpop.permute.xlu0 %2066 }
 0xb5e   : > { %v2103_v53 = vsel %vm6068_vm8, %v2067_v52, %v2069_v49  ;;  %v2104_v55 = vsel %vm6069_vm7, %v2069_v49, %v2071_v51  ;;  %v2105_v57 = vsel %vm6070_vm13, %v2071_v51, %v2073_v39  ;;  %vm6073_vm8 = vmmov %vm6065_vm6 }
 0xb5f   : > { %2155 = vmatprep.subr.mxu0 %v2104_v55  ;;  %4042 = vmatpush3.msra.mxu1 %v2105_v57  ;;  %vm6074_vm7 = vmmov %vm6065_vm6 }
 0xb60   : > { %2156 = vmatpush1.msra.mxu0 %v2103_v53  ;;  %4043 = vmatprep.subr.mxu1 %v4319_v2  ;;  %vm6075_vm13 = vmmov %vm6065_vm6 }
 0xb61   : > { %v2063_v58 = vpop.permute.xlu1 %2062  ;;  %v2061_v61 = vpop.permute.xlu0 %2060 }
 0xb62   : > { %v2101_v63 = vsel %vm6065_vm6, %v2061_v61, %v2063_v58  ;;  %v2102_v4 = vsel %vm6071_vm12, %v2063_v58, %v2065_v41  ;;  %vm6076_vm12 = vmmov %vm6065_vm6  ;;  %v2083_v41 = vsel %vm6065_vm6, %v5302_v44, %v5300_v35 }
 0xb63   : > { %2157 = vmatprep.subr.mxu0 %v2101_v63  ;;  %4044 = vmatpush3.msra.mxu1 %v2102_v4 }
 0xb64   : > { %4045 = vmatprep.subr.mxu1 %v4319_v2 }
 0xb65   : > { %v2055_v7 = vpop.permute.xlu1 %2054  ;;  %v2059_v8 = vpop.permute.xlu0 %2058 }
 0xb66   : > { %v2100_v10 = vsel %vm6072_vm15, %v2059_v8, %v2061_v61  ;;  %v2099_v11 = vsel %vm6073_vm8, %v2055_v7, %v2057_v42  ;;  %vm6077_vm15 = vmmov %vm6065_vm6  ;;  %v3849_v42 = vld [vmem:[%s5967_s2 + $0x20] sm:$0xff] }
 0xb67   : > { %2158 = vmatpush1.msra.mxu0 %v2100_v10  ;;  %4046 = vmatpush3.msra.mxu1 %v2099_v11  ;;  %vm6078_vm8 = vmmov %vm6065_vm6 }
 0xb68   : > { %4047 = vmatprep.subr.mxu1 %v4319_v2 }
 0xb69   : > { %v2047_v12 = vpop.permute.xlu1 %2046  ;;  %v2053_v13 = vpop.permute.xlu0 %2052 }
 0xb6a   : > { %v2098_v14 = vsel %vm6074_vm7, %v2053_v13, %v2055_v7  ;;  %v2096_v15 = vsel %vm6075_vm13, %v2047_v12, %v2049_v37  ;;  %vm6079_vm7 = vmmov %vm6065_vm6 }
 0xb6b   : > { %2159 = vmatprep.subr.mxu0 %v2098_v14  ;;  %4048 = vmatpush3.msra.mxu1 %v2096_v15  ;;  %vm6080_vm13 = vmmov %vm6065_vm6 }
 0xb6c   : > { %4049 = vmatprep.subr.mxu1 %v4319_v2 }
 0xb6d   : > { %v2039_v17 = vpop.permute.xlu1 %2038  ;;  %v2051_v18 = vpop.permute.xlu0 %2050 }
 0xb6e   : > { %v2097_v20 = vsel %vm6065_vm6, %v2051_v18, %v2053_v13  ;;  %v2093_v22 = vsel %vm6076_vm12, %v2039_v17, %v2041_v43  ;;  %vm6081_vm12 = vmmov %vm6065_vm6 }
 0xb6f   : > { %2160 = vmatpush1.msra.mxu0 %v2097_v20  ;;  %4050 = vmatpush3.msra.mxu1 %v2093_v22 }
 0xb70   : > { %4051 = vmatprep.subr.mxu1 %v4319_v2 }
 0xb71   : > { %v2031_v16 = vpop.permute.xlu1 %2030  ;;  %v2045_v60 = vpop.permute.xlu0 %2044 }
 0xb72   : > { %v2095_v0 = vsel %vm6077_vm15, %v2045_v60, %v2047_v12  ;;  %v2090_v59 = vsel %vm6078_vm8, %v2031_v16, %v2033_v36  ;;  %vm6082_vm15 = vmmov %vm6065_vm6 }
 0xb73   : > { %2161 = vmatprep.subr.mxu0 %v2095_v0  ;;  %4052 = vmatpush3.msra.mxu1 %v2090_v59  ;;  %vm6083_vm8 = vmmov %vm6065_vm6 }
 0xb74   : > { %4053 = vmatprep.subr.mxu1 %v4319_v2 }
 0xb75   : > { %v2023_v9 = vpop.permute.xlu1 %2022  ;;  %v2043_v21 = vpop.permute.xlu0 %2042 }
 0xb76   : > { %v2094_v23 = vsel %vm6079_vm7, %v2043_v21, %v2045_v60  ;;  %vm6084_vm7 = vmmov %vm6065_vm6 }
 0xb77   : > { %2162 = vmatpush1.msra.mxu0 %v2094_v23 }
 0xb79   : > { %v2025_v25 = vpop.permute.xlu1 %2024  ;;  %v2037_v26 = vpop.permute.xlu0 %2036 }
 0xb7a   : > { %v2087_v27 = vsel %vm6080_vm13, %v2023_v9, %v2025_v25  ;;  %v2092_v28 = vsel %vm6065_vm6, %v2037_v26, %v2039_v17  ;;  %vm6085_vm13 = vmmov %vm6065_vm6 }
 0xb7b   : > { %2163 = vmatprep.subr.mxu0 %v2092_v28  ;;  %4054 = vmatpush3.msra.mxu1 %v2087_v27 }
 0xb7c   : > { %4055 = vmatprep.subr.mxu1 %v4319_v2 }
 0xb7d   : > { %v2035_v29 = vpop.permute.xlu0 %2034 }
 0xb7e   : > { %v2091_v54 = vsel %vm6081_vm12, %v2035_v29, %v2037_v26  ;;  %vm6086_vm12 = vmmov %vm6065_vm6 }
 0xb7f   : > { %2164 = vmatpush1.msra.mxu0 %v2091_v54  ;;  %v2082_v37 = vsel %vm6086_vm12, %v5241_v50, %v5302_v44 }
 0xb81   : > { %v2029_v30 = vpop.permute.xlu0 %2028 }
 0xb82   : > { %v2089_v32 = vsel %vm6082_vm15, %v2029_v30, %v2031_v16  ;;  %vm6087_vm15 = vmmov %vm6065_vm6  ;;  %vm6091_vm6 = vcmask 834560  }
 0xb83   : > { %2165 = vmatprep.subr.mxu0 %v2089_v32  ;;  %vm6092_vm12 = vmmov %vm6091_vm6 }
 0xb85   : > { %v2027_v40 = vpop.permute.xlu0 %2026 }
 0xb86   : > { %v2088_v33 = vsel %vm6083_vm8, %v2027_v40, %v2029_v30  ;;  %v2008_v45 = vpop.permute.xlu1 %2007  ;;  %vm6088_vm8 = vcmask 646144  }
 0xb87   : > { %2166 = vmatpush1.msra.mxu0 %v2088_v33 }
 0xb89   : > { %v2021_v34 = vpop.permute.xlu0 %2020 }
 0xb8a   : > { %v2086_v24 = vsel %vm6084_vm7, %v2021_v34, %v2023_v9  ;;  %vm6089_vm7 = vmmov %vm6088_vm8 }
 0xb8b   : > { %2167 = vmatprep.subr.mxu0 %v2086_v24 }
 0xb8d   : > { %v2019_v38 = vpop.permute.xlu0 %2018 }
 0xb8e   : > { %v2085_v39 = vsel %vm6085_vm13, %v2019_v38, %v2021_v34  ;;  %vm6090_vm13 = vmmov %vm6089_vm7 }
 0xb8f   : > { %2168 = vmatpush1.msra.mxu0 %v2085_v39 }
 0xb90   : > { %2169 = vmatprep.subr.mxu0 %v2083_v41 }
 0xb91   : > { %2170 = vmatpush1.msra.mxu0 %v2082_v37  ;;  %v2017_v43 = vpop.permute.xlu0 %2016 }
 0xb92   : > { %v2084_v36 = vsel %vm6087_vm15, %v5300_v35, %v2017_v43  ;;  %3851 = vmatmul.mubr.msk.f32.vlgmr.msra.gmra.mxu0 %vm291_vm10, %v3849_v42  ;;  %vm6093_vm15 = vcmask 842752  }
 0xb93   : > { %4056 = vmatpush3.msra.mxu1 %v2084_v36  ;;  %2603 = vmatprep.mubr.f32.mxu0 %v4319_v2 }
 0xb94   : > { %4058 = vmatmul.mubr.msk.f32.vlgmr.msra.gmra.mxu1 %vm291_vm10, %v3849_v42  ;;  %4060 = vmatprep.subr.mxu1 %v4319_v2 }
 0xb95   : > { %4078 = vmatprep.mubr.msk.f32.mxu1 %vm6004_vm14, %v4319_v2 }
 0xc52   : > { %v2205_v46 = vpop.f32.mrf.mxu0 }
 0xc53   : > { %v2206_v50 = vadd.f32 %v2205_v46, %v2008_v45 }
 0xc54   : > { %v2207_v44 = vpop.f32.mrf.mxu0  ;;  %v2276_v47 = vpop.f32.mrf.mxu1 }
 0xc55   : > { %v2280_v48 = vmax.f32 %v2206_v50, 0.0  ;;  %v2208_v31 = vadd.f32 %v2207_v44, %v2008_v45  ;;  %v2277_v35 = vadd.f32 %v2276_v47, %v2008_v45 }
 0xc56   : > { %v4059_v49 = vpop.f32.mrf.mxu1 }
 0xc57   : > { %v2283_v19 = vsel %vm4702_vm11, %v2280_v48, 0.0  ;;  %v2281_v51 = vmax.f32 %v2208_v31, 0.0  ;;  %v2282_v52 = vmax.f32 %v2277_v35, 0.0 }
 0xc58   : > { %2289 = vrot.lane.b32.xlu0 %v2283_v19, %s4320_s29 }
 0xc59   : > { %v2284_v53 = vsel %vm4708_vm9, %v2281_v51, 0.0  ;;  %v2285_v55 = vsel %vm4715_vm5, %v2282_v52, 0.0 }
 0xc5a   : > { %2291 = vrot.lane.b32.xlu1 %v2284_v53, %s4320_s29 }
 0xc5c   : > { %2293 = vrot.lane.b32.xlu0 %v2285_v55, %s4320_s29 }
 0xcca   : > { %v2290_v57 = vpop.permute.xlu0 %2289 }
 0xccb   : > { %2301 = vst.msk [vmem:[#allocation3] sm:$0xff] %vm392_vm1, %v2290_v57 }
 0xccc   : > { %v2292_v4 = vpop.permute.xlu1 %2291 }
 0xccd   : > { %v2295_v7 = vsel %vm385_vm0, %v2290_v57, %v2292_v4  ;;  %v3854_v57 = vld [vmem:[%s5968_s3 + $0x28] sm:$0xff] }
 0xcce   : > { %v2294_v58 = vpop.permute.xlu0 %2293 }
 0xccf   : > { %2304 = vst.msk [vmem:[#allocation3 + $0x18] sm:$0xff] %vm385_vm0, %v2294_v58  ;;  %v2296_v8 = vsel %vm385_vm0, %v2292_v4, %v2294_v58 }
 0xcd2   : > { %v2305_v61 = vld [vmem:[#allocation3] sm:$0xff] }
 0xcd3   : > { %2390 = vrot.lane.b32.xlu0 %v2305_v61, %s4321_s30 }
 0xcd6   : > { %v5365_v63 = vld [vmem:[#allocation3 + $0x18] sm:$0xff] }
 0xcd7   : > { %2379 = vrot.lane.b32.xlu0 %v2305_v61, %s4322_s12  ;;  %2396 = vrot.lane.b32.xlu1 %v5365_v63, %s4321_s30 }
 0xcdb   : > { %2368 = vrot.lane.b32.xlu0 %v2305_v61, %s4323_s13  ;;  %2385 = vrot.lane.b32.xlu1 %v5365_v63, %s4322_s12 }
 0xcdf   : > { %2357 = vrot.lane.b32.xlu0 %v2305_v61, %s4324_s11  ;;  %2374 = vrot.lane.b32.xlu1 %v5365_v63, %s4323_s13 }
 0xce3   : > { %2346 = vrot.lane.b32.xlu0 %v2305_v61, %s4325_s14  ;;  %2363 = vrot.lane.b32.xlu1 %v5365_v63, %s4324_s11 }
 0xce7   : > { %2335 = vrot.lane.b32.xlu0 %v2305_v61, %s4326_s15  ;;  %2352 = vrot.lane.b32.xlu1 %v5365_v63, %s4325_s14 }
 0xceb   : > { %2324 = vrot.lane.b32.xlu0 %v2305_v61, %s6005_s27  ;;  %2341 = vrot.lane.b32.xlu1 %v5365_v63, %s4326_s15 }
 0xcef   : > { %2313 = vrot.lane.b32.xlu0 %v2305_v61, %s6006_s16  ;;  %2330 = vrot.lane.b32.xlu1 %v5365_v63, %s6005_s27 }
 0xcf3   : > { %2410 = vrot.lane.b32.xlu0 %v2305_v61, %s6007_s19  ;;  %2319 = vrot.lane.b32.xlu1 %v5365_v63, %s6006_s16 }
 0xcf7   : > { %2392 = vrot.lane.b32.xlu1 %v2295_v7, %s4321_s30  ;;  %2394 = vrot.lane.b32.xlu0 %v2296_v8, %s4321_s30 }
 0xcfb   : > { %2381 = vrot.lane.b32.xlu1 %v2295_v7, %s4322_s12  ;;  %2383 = vrot.lane.b32.xlu0 %v2296_v8, %s4322_s12 }
 0xcff   : > { %2370 = vrot.lane.b32.xlu1 %v2295_v7, %s4323_s13  ;;  %2372 = vrot.lane.b32.xlu0 %v2296_v8, %s4323_s13 }
 0xd03   : > { %2359 = vrot.lane.b32.xlu1 %v2295_v7, %s4324_s11  ;;  %2361 = vrot.lane.b32.xlu0 %v2296_v8, %s4324_s11 }
 0xd07   : > { %2348 = vrot.lane.b32.xlu1 %v2295_v7, %s4325_s14  ;;  %2350 = vrot.lane.b32.xlu0 %v2296_v8, %s4325_s14 }
 0xd0b   : > { %2337 = vrot.lane.b32.xlu1 %v2295_v7, %s4326_s15  ;;  %2339 = vrot.lane.b32.xlu0 %v2296_v8, %s4326_s15 }
 0xd0f   : > { %2326 = vrot.lane.b32.xlu1 %v2295_v7, %s6005_s27  ;;  %2328 = vrot.lane.b32.xlu0 %v2296_v8, %s6005_s27 }
 0xd13   : > { %2315 = vrot.lane.b32.xlu1 %v2295_v7, %s6006_s16  ;;  %2317 = vrot.lane.b32.xlu0 %v2296_v8, %s6006_s16 }
 0xd17   : > { %2414 = vrot.lane.b32.xlu1 %v2296_v8, %s6007_s19  ;;  %2412 = vrot.lane.b32.xlu0 %v2295_v7, %s6007_s19 }
 0xd45   : > { %v2391_v10 = vpop.permute.xlu0 %2390 }
 0xd49   : > { %v2397_v11 = vpop.permute.xlu1 %2396  ;;  %v2380_v12 = vpop.permute.xlu0 %2379 }
 0xd4a   : > { %2480 = vrot.lane.b32.xlu1 %v2397_v11, %s6007_s19 }
 0xd4d   : > { %v2386_v13 = vpop.permute.xlu1 %2385  ;;  %v2369_v14 = vpop.permute.xlu0 %2368 }
 0xd4e   : > { %2472 = vrot.lane.b32.xlu1 %v2386_v13, %s6007_s19 }
 0xd51   : > { %v2375_v15 = vpop.permute.xlu1 %2374  ;;  %v2358_v17 = vpop.permute.xlu0 %2357 }
 0xd52   : > { %2464 = vrot.lane.b32.xlu1 %v2375_v15, %s6007_s19 }
 0xd55   : > { %v2364_v18 = vpop.permute.xlu1 %2363  ;;  %v2347_v20 = vpop.permute.xlu0 %2346 }
 0xd56   : > { %2456 = vrot.lane.b32.xlu1 %v2364_v18, %s6007_s19 }
 0xd59   : > { %v2353_v22 = vpop.permute.xlu1 %2352  ;;  %v5415_v16 = vpop.permute.xlu0 %2335 }
 0xd5a   : > { %2448 = vrot.lane.b32.xlu1 %v2353_v22, %s6007_s19 }
 0xd5d   : > { %v2342_v60 = vpop.permute.xlu1 %2341  ;;  %v5418_v0 = vpop.permute.xlu0 %2324 }
 0xd5e   : > { %2440 = vrot.lane.b32.xlu1 %v2342_v60, %s6007_s19 }
 0xd61   : > { %v2331_v59 = vpop.permute.xlu1 %2330  ;;  %v5421_v9 = vpop.permute.xlu0 %2313 }
 0xd62   : > { %2432 = vrot.lane.b32.xlu1 %v2331_v59, %s6007_s19 }
 0xd65   : > { %v2320_v21 = vpop.permute.xlu1 %2319  ;;  %v5424_v23 = vpop.permute.xlu0 %2410 }
 0xd69   : > { %v2393_v25 = vpop.permute.xlu1 %2392  ;;  %v2395_v26 = vpop.permute.xlu0 %2394 }
 0xd6a   : > { %v2400_v27 = vsel %vm497_vm2, %v2395_v26, %v2397_v11  ;;  %v2399_v28 = vsel %vm497_vm2, %v2393_v25, %v2395_v26  ;;  %v2398_v30 = vsel %vm497_vm2, %v2391_v10, %v2393_v25 }
 0xd6b   : > { %2478 = vrot.lane.b32.xlu0 %v2400_v27, %s6007_s19  ;;  %2476 = vrot.lane.b32.xlu1 %v2399_v28, %s6007_s19 }
 0xd6d   : > { %v2382_v29 = vpop.permute.xlu1 %2381  ;;  %v2384_v54 = vpop.permute.xlu0 %2383 }
 0xd6e   : > { %v2388_v32 = vsel %vm6088_vm8, %v2382_v29, %v2384_v54  ;;  %v2389_v33 = vsel %vm6089_vm7, %v2384_v54, %v2386_v13  ;;  %v2387_v34 = vsel %vm6090_vm13, %v2380_v12, %v2382_v29  ;;  %vm6094_vm8 = vmmov %vm6091_vm6  ;;  %vm6095_vm7 = vcmask 850944  }
 0xd6f   : > { %2474 = vrot.lane.b32.xlu1 %v2398_v30, %s6007_s19  ;;  %2468 = vrot.lane.b32.xlu0 %v2388_v32, %s6007_s19  ;;  %vm6096_vm13 = vmmov %vm6093_vm15 }
 0xd71   : > { %v2373_v40 = vpop.permute.xlu0 %2372  ;;  %v2371_v24 = vpop.permute.xlu1 %2370 }
 0xd72   : > { %v2378_v39 = vsel %vm473_vm4, %v2373_v40, %v2375_v15  ;;  %v2377_v41 = vsel %vm473_vm4, %v2371_v24, %v2373_v40  ;;  %v2376_v37 = vsel %vm473_vm4, %v2369_v14, %v2371_v24 }
 0xd73   : > { %2470 = vrot.lane.b32.xlu1 %v2389_v33, %s6007_s19  ;;  %2466 = vrot.lane.b32.xlu0 %v2387_v34, %s6007_s19 }
 0xd75   : > { %v2362_v38 = vpop.permute.xlu0 %2361  ;;  %v2360_v36 = vpop.permute.xlu1 %2359 }
 0xd76   : > { %v2367_v43 = vsel %vm6091_vm6, %v2362_v38, %v2364_v18  ;;  %v2366_v46 = vsel %vm6092_vm12, %v2360_v36, %v2362_v38  ;;  %v2365_v47 = vsel %vm6094_vm8, %v2358_v17, %v2360_v36  ;;  %vm6097_vm6 = vcmask 1031168   ;;  %vm6098_vm12 = vmmov %vm6096_vm13 }
 0xd77   : > { %2462 = vrot.lane.b32.xlu1 %v2378_v39, %s6007_s19  ;;  %2460 = vrot.lane.b32.xlu0 %v2377_v41, %s6007_s19  ;;  %vm6100_vm8 = vmmov %vm6095_vm7 }
 0xd79   : > { %v2351_v42 = vpop.permute.xlu0 %2350  ;;  %v2349_v31 = vpop.permute.xlu1 %2348 }
 0xd7a   : > { %v2356_v50 = vsel %vm6093_vm15, %v2351_v42, %v2353_v22  ;;  %v2355_v35 = vsel %vm6096_vm13, %v2349_v31, %v2351_v42  ;;  %v2354_v51 = vsel %vm6098_vm12, %v2347_v20, %v2349_v31  ;;  %vm6099_vm15 = vcmask 1039360   ;;  %vm6101_vm13 = vmmov %vm6097_vm6 }
 0xd7b   : > { %2458 = vrot.lane.b32.xlu0 %v2376_v37, %s6007_s19  ;;  %2454 = vrot.lane.b32.xlu1 %v2367_v43, %s6007_s19  ;;  %vm6102_vm12 = vmmov %vm6099_vm15 }
 0xd7d   : > { %v2340_v45 = vpop.permute.xlu0 %2339  ;;  %v2338_v53 = vpop.permute.xlu1 %2337 }
 0xd7e   : > { %v2345_v48 = vsel %vm6095_vm7, %v2340_v45, %v2342_v60  ;;  %v2344_v55 = vsel %vm6100_vm8, %v2338_v53, %v2340_v45  ;;  %v2343_v58 = vsel %vm6095_vm7, %v5415_v16, %v2338_v53  ;;  %vm6104_vm8 = vcmask 433152  }
 0xd7f   : > { %2452 = vrot.lane.b32.xlu0 %v2366_v46, %s6007_s19  ;;  %2446 = vrot.lane.b32.xlu1 %v2356_v50, %s6007_s19  ;;  %vm6105_vm7 = vmmov %vm6104_vm8 }
 0xd81   : > { %v2329_v44 = vpop.permute.xlu0 %2328  ;;  %v2327_v61 = vpop.permute.xlu1 %2326 }
 0xd82   : > { %v2334_v49 = vsel %vm6097_vm6, %v2329_v44, %v2331_v59  ;;  %v2333_v4 = vsel %vm6101_vm13, %v2327_v61, %v2329_v44  ;;  %v2332_v7 = vsel %vm6097_vm6, %v5418_v0, %v2327_v61  ;;  %vm6106_vm13 = vmmov %vm6105_vm7 }
 0xd83   : > { %2450 = vrot.lane.b32.xlu0 %v2365_v47, %s6007_s19  ;;  %2438 = vrot.lane.b32.xlu1 %v2345_v48, %s6007_s19  ;;  %vm6107_vm6 = vmmov %vm6105_vm7 }
 0xd85   : > { %v2318_v19 = vpop.permute.xlu0 %2317  ;;  %v2316_v8 = vpop.permute.xlu1 %2315 }
 0xd86   : > { %v2323_v52 = vsel %vm6099_vm15, %v2318_v19, %v2320_v21  ;;  %v2322_v10 = vsel %vm6102_vm12, %v2316_v8, %v2318_v19  ;;  %vm6103_vm15 = vmmov %vm6102_vm12 }
 0xd87   : > { %2444 = vrot.lane.b32.xlu0 %v2355_v35, %s6007_s19  ;;  %2430 = vrot.lane.b32.xlu1 %v2334_v49, %s6007_s19  ;;  %v2321_v11 = vsel %vm6103_vm15, %v5421_v9, %v2316_v8  ;;  %vm6108_vm12 = vmmov %vm6107_vm6 }
 0xd88   : > { %vm6109_vm15 = vmmov %vm6107_vm6 }
 0xd89   : > { %v5483_v12 = vpop.permute.xlu1 %2414  ;;  %v5485_v22 = vpop.permute.xlu0 %2412 }
 0xd8b   : > { %2442 = vrot.lane.b32.xlu0 %v2354_v51, %s6007_s19  ;;  %2422 = vrot.lane.b32.xlu1 %v2323_v52, %s6007_s19 }
 0xd8f   : > { %2436 = vrot.lane.b32.xlu0 %v2344_v55, %s6007_s19  ;;  %2424 = vrot.lane.b32.xlu1 %v2320_v21, %s6007_s19 }
 0xd93   : > { %2434 = vrot.lane.b32.xlu0 %v2343_v58, %s6007_s19  ;;  %2407 = vperm.xlu1 %4210, %v3854_v57  }
 0xd97   : > { %2428 = vrot.lane.b32.xlu0 %v2333_v4, %s6007_s19 }
 0xd9b   : > { %2426 = vrot.lane.b32.xlu0 %v2332_v7, %s6007_s19 }
 0xd9f   : > { %2420 = vrot.lane.b32.xlu0 %v2322_v10, %s6007_s19 }
 0xda3   : > { %2418 = vrot.lane.b32.xlu0 %v2321_v11, %s6007_s19 }
 0xda7   : > { %2416 = vrot.lane.b32.xlu0 %v5365_v63, %s6007_s19 }
 0xdbc   : > { %v2481_v13 = vpop.permute.xlu1 %2480 }
 0xdc0   : > { %v2473_v14 = vpop.permute.xlu1 %2472 }
 0xdc4   : > { %v2465_v15 = vpop.permute.xlu1 %2464 }
 0xdc8   : > { %v2457_v17 = vpop.permute.xlu1 %2456 }
 0xdcc   : > { %v2449_v18 = vpop.permute.xlu1 %2448 }
 0xdd0   : > { %v2441_v20 = vpop.permute.xlu1 %2440 }
 0xdd4   : > { %v2433_v16 = vpop.permute.xlu1 %2432 }
 0xddd   : > { %v2477_v60 = vpop.permute.xlu1 %2476  ;;  %v2479_v0 = vpop.permute.xlu0 %2478 }
 0xdde   : > { %v2507_v59 = vsel %vm6104_vm8, %v2477_v60, %v2479_v0  ;;  %v2508_v9 = vsel %vm6105_vm7, %v2479_v0, %v2481_v13  ;;  %vm6110_vm8 = vmmov %vm6107_vm6 }
 0xddf   : > { %2553 = vmatprep.subr.mxu0 %v2507_v59  ;;  %4061 = vmatpush3.msra.mxu1 %v2508_v9  ;;  %vm6111_vm7 = vmmov %vm6107_vm6 }
 0xde0   : > { %4062 = vmatprep.subr.mxu1 %v4319_v2 }
 0xde1   : > { %v2475_v63 = vpop.permute.xlu1 %2474  ;;  %v2469_v21 = vpop.permute.xlu0 %2468 }
 0xde2   : > { %v2506_v25 = vsel %vm6106_vm13, %v2475_v63, %v2477_v60  ;;  %vm6112_vm13 = vmmov %vm6107_vm6 }
 0xde3   : > { %2554 = vmatpush1.msra.mxu0 %v2506_v25 }
 0xde5   : > { %v2471_v26 = vpop.permute.xlu1 %2470  ;;  %v2467_v27 = vpop.permute.xlu0 %2466 }
 0xde6   : > { %v2503_v28 = vsel %vm6107_vm6, %v2467_v27, %v2469_v21  ;;  %v2504_v29 = vsel %vm6108_vm12, %v2469_v21, %v2471_v26  ;;  %v2505_v54 = vsel %vm6109_vm15, %v2471_v26, %v2473_v14  ;;  %vm6113_vm12 = vmmov %vm6107_vm6 }
 0xde7   : > { %2555 = vmatprep.subr.mxu0 %v2504_v29  ;;  %4063 = vmatpush3.msra.mxu1 %v2505_v54  ;;  %vm6114_vm15 = vmmov %vm6107_vm6 }
 0xde8   : > { %2556 = vmatpush1.msra.mxu0 %v2503_v28  ;;  %4064 = vmatprep.subr.mxu1 %v4319_v2 }
 0xde9   : > { %v2463_v30 = vpop.permute.xlu1 %2462  ;;  %v2461_v32 = vpop.permute.xlu0 %2460 }
 0xdea   : > { %v2501_v40 = vsel %vm6110_vm8, %v2461_v32, %v2463_v30  ;;  %v2502_v33 = vsel %vm6111_vm7, %v2463_v30, %v2465_v15  ;;  %vm6115_vm8 = vmmov %vm6107_vm6 }
 0xdeb   : > { %2557 = vmatprep.subr.mxu0 %v2501_v40  ;;  %4065 = vmatpush3.msra.mxu1 %v2502_v33  ;;  %vm6116_vm7 = vmmov %vm6107_vm6 }
 0xdec   : > { %4066 = vmatprep.subr.mxu1 %v4319_v2 }
 0xded   : > { %v2455_v34 = vpop.permute.xlu1 %2454  ;;  %v2459_v24 = vpop.permute.xlu0 %2458 }
 0xdee   : > { %v2500_v38 = vsel %vm6112_vm13, %v2459_v24, %v2461_v32  ;;  %v2499_v39 = vsel %vm6107_vm6, %v2455_v34, %v2457_v17  ;;  %vm6117_vm13 = vmmov %vm6107_vm6  ;;  %v3853_v17 = vld [vmem:[%s5967_s2 + $0x28] sm:$0xff] }
 0xdef   : > { %2558 = vmatpush1.msra.mxu0 %v2500_v38  ;;  %4067 = vmatpush3.msra.mxu1 %v2499_v39 }
 0xdf0   : > { %4068 = vmatprep.subr.mxu1 %v4319_v2 }
 0xdf1   : > { %v2447_v41 = vpop.permute.xlu1 %2446  ;;  %v2453_v42 = vpop.permute.xlu0 %2452 }
 0xdf2   : > { %v2498_v37 = vsel %vm6113_vm12, %v2453_v42, %v2455_v34  ;;  %v2496_v43 = vsel %vm6114_vm15, %v2447_v41, %v2449_v18  ;;  %vm6118_vm12 = vmmov %vm6107_vm6 }
 0xdf3   : > { %2559 = vmatprep.subr.mxu0 %v2498_v37  ;;  %4069 = vmatpush3.msra.mxu1 %v2496_v43  ;;  %vm6119_vm15 = vmmov %vm6107_vm6 }
 0xdf4   : > { %4070 = vmatprep.subr.mxu1 %v4319_v2 }
 0xdf5   : > { %v2439_v36 = vpop.permute.xlu1 %2438  ;;  %v2451_v45 = vpop.permute.xlu0 %2450 }
 0xdf6   : > { %v2497_v46 = vsel %vm6115_vm8, %v2451_v45, %v2453_v42  ;;  %v2493_v50 = vsel %vm6116_vm7, %v2439_v36, %v2441_v20  ;;  %vm6120_vm8 = vmmov %vm6107_vm6 }
 0xdf7   : > { %2560 = vmatpush1.msra.mxu0 %v2497_v46  ;;  %4071 = vmatpush3.msra.mxu1 %v2493_v50  ;;  %vm6121_vm7 = vmmov %vm6107_vm6 }
 0xdf8   : > { %4072 = vmatprep.subr.mxu1 %v4319_v2 }
 0xdf9   : > { %v2431_v44 = vpop.permute.xlu1 %2430  ;;  %v2445_v47 = vpop.permute.xlu0 %2444 }
 0xdfa   : > { %v2495_v48 = vsel %vm6117_vm13, %v2445_v47, %v2447_v41  ;;  %v2490_v31 = vsel %vm6107_vm6, %v2431_v44, %v2433_v16  ;;  %vm6122_vm13 = vmmov %vm6107_vm6 }
 0xdfb   : > { %2561 = vmatprep.subr.mxu0 %v2495_v48  ;;  %4073 = vmatpush3.msra.mxu1 %v2490_v31 }
 0xdfc   : > { %4074 = vmatprep.subr.mxu1 %v4319_v2 }
 0xdfd   : > { %v2423_v35 = vpop.permute.xlu1 %2422  ;;  %v2443_v49 = vpop.permute.xlu0 %2442 }
 0xdfe   : > { %v2494_v19 = vsel %vm6118_vm12, %v2443_v49, %v2445_v47  ;;  %vm6123_vm12 = vmmov %vm6107_vm6 }
 0xdff   : > { %2562 = vmatpush1.msra.mxu0 %v2494_v19 }
 0xe01   : > { %v2425_v51 = vpop.permute.xlu1 %2424  ;;  %v2437_v52 = vpop.permute.xlu0 %2436 }
 0xe02   : > { %v2487_v53 = vsel %vm6119_vm15, %v2423_v35, %v2425_v51  ;;  %v2492_v55 = vsel %vm6120_vm8, %v2437_v52, %v2439_v36  ;;  %vm6124_vm15 = vmmov %vm6107_vm6 }
 0xe03   : > { %2563 = vmatprep.subr.mxu0 %v2492_v55  ;;  %4075 = vmatpush3.msra.mxu1 %v2487_v53  ;;  %vm6125_vm8 = vmmov %vm6107_vm6 }
 0xe04   : > { %4076 = vmatprep.subr.mxu1 %v4319_v2  ;;  %v2483_v15 = vsel %vm6125_vm8, %v5485_v22, %v5483_v12  ;;  %vm6131_vm8 = vcmask 834560  }
 0xe05   : > { %v2435_v57 = vpop.permute.xlu0 %2434 }
 0xe06   : > { %v2491_v58 = vsel %vm6121_vm7, %v2435_v57, %v2437_v52  ;;  %vm6126_vm7 = vmmov %vm6107_vm6 }
 0xe07   : > { %2564 = vmatpush1.msra.mxu0 %v2491_v58  ;;  %v2482_v18 = vsel %vm6126_vm7, %v5424_v23, %v5485_v22  ;;  %vm6132_vm7 = vmmov %vm6131_vm8 }
 0xe09   : > { %v2429_v61 = vpop.permute.xlu0 %2428 }
 0xe0a   : > { %v2489_v4 = vsel %vm6122_vm13, %v2429_v61, %v2431_v44  ;;  %vm6127_vm13 = vmmov %vm6107_vm6 }
 0xe0b   : > { %2565 = vmatprep.subr.mxu0 %v2489_v4 }
 0xe0d   : > { %v2427_v7 = vpop.permute.xlu0 %2426 }
 0xe0e   : > { %v2488_v8 = vsel %vm6107_vm6, %v2427_v7, %v2429_v61  ;;  %v2408_v60 = vpop.permute.xlu1 %2407  ;;  %vm6128_vm6 = vcmask 646144  }
 0xe0f   : > { %2566 = vmatpush1.msra.mxu0 %v2488_v8 }
 0xe11   : > { %v2421_v10 = vpop.permute.xlu0 %2420 }
 0xe12   : > { %v2486_v11 = vsel %vm6123_vm12, %v2421_v10, %v2423_v35  ;;  %vm6129_vm12 = vmmov %vm6128_vm6 }
 0xe13   : > { %2567 = vmatprep.subr.mxu0 %v2486_v11 }
 0xe15   : > { %v2419_v13 = vpop.permute.xlu0 %2418 }
 0xe16   : > { %v2485_v14 = vsel %vm6124_vm15, %v2419_v13, %v2421_v10  ;;  %vm6130_vm15 = vmmov %vm6128_vm6 }
 0xe17   : > { %2568 = vmatpush1.msra.mxu0 %v2485_v14 }
 0xe18   : > { %2569 = vmatprep.subr.mxu0 %v2483_v15 }
 0xe19   : > { %2570 = vmatpush1.msra.mxu0 %v2482_v18  ;;  %v2417_v20 = vpop.permute.xlu0 %2416 }
 0xe1a   : > { %v2484_v16 = vsel %vm6127_vm13, %v5483_v12, %v2417_v20  ;;  %3855 = vmatmul.mubr.msk.f32.vlgmr.msra.gmra.mxu0 %vm291_vm10, %v3853_v17  ;;  %vm6133_vm13 = vcmask 842752  }
 0xe1b   : > { %4077 = vmatpush3.msra.mxu1 %v2484_v16  ;;  %3003 = vmatprep.mubr.f32.mxu0 %v4319_v2 }
 0xe1c   : > { %4079 = vmatmul.mubr.msk.f32.vlgmr.msra.gmra.mxu1 %vm291_vm10, %v3853_v17  ;;  %4081 = vmatprep.subr.mxu1 %v4319_v2 }
 0xe1d   : > { %4099 = vmatprep.mubr.msk.f32.mxu1 %vm6004_vm14, %v4319_v2 }
 0xeda   : > { %v2605_v0 = vpop.f32.mrf.mxu0 }
 0xedb   : > { %v2606_v23 = vadd.f32 %v2605_v0, %v2408_v60 }
 0xedc   : > { %v2607_v22 = vpop.f32.mrf.mxu0  ;;  %v2676_v59 = vpop.f32.mrf.mxu1 }
 0xedd   : > { %v2680_v9 = vmax.f32 %v2606_v23, 0.0  ;;  %v2608_v63 = vadd.f32 %v2607_v22, %v2408_v60  ;;  %v2677_v12 = vadd.f32 %v2676_v59, %v2408_v60 }
 0xede   : > { %v4080_v21 = vpop.f32.mrf.mxu1 }
 0xedf   : > { %v2683_v25 = vsel %vm4702_vm11, %v2680_v9, 0.0  ;;  %v2681_v26 = vmax.f32 %v2608_v63, 0.0  ;;  %v2682_v27 = vmax.f32 %v2677_v12, 0.0 }
 0xee0   : > { %2689 = vrot.lane.b32.xlu0 %v2683_v25, %s4320_s29 }
 0xee1   : > { %v2684_v28 = vsel %vm4708_vm9, %v2681_v26, 0.0  ;;  %v2685_v29 = vsel %vm4715_vm5, %v2682_v27, 0.0 }
 0xee2   : > { %2691 = vrot.lane.b32.xlu1 %v2684_v28, %s4320_s29 }
 0xee4   : > { %2693 = vrot.lane.b32.xlu0 %v2685_v29, %s4320_s29 }
 0xf52   : > { %v2690_v54 = vpop.permute.xlu0 %2689 }
 0xf53   : > { %2701 = vst.msk [vmem:[#allocation2] sm:$0xff] %vm392_vm1, %v2690_v54 }
 0xf54   : > { %v2692_v33 = vpop.permute.xlu1 %2691 }
 0xf55   : > { %v2695_v34 = vsel %vm385_vm0, %v2690_v54, %v2692_v33  ;;  %v3858_v54 = vld [vmem:[%s5968_s3 + $0x30] sm:$0xff] }
 0xf56   : > { %v2694_v30 = vpop.permute.xlu0 %2693 }
 0xf57   : > { %2704 = vst.msk [vmem:[#allocation2 + $0x18] sm:$0xff] %vm385_vm0, %v2694_v30  ;;  %v2696_v24 = vsel %vm385_vm0, %v2692_v33, %v2694_v30 }
 0xf5a   : > { %v2705_v32 = vld [vmem:[#allocation2] sm:$0xff] }
 0xf5b   : > { %2790 = vrot.lane.b32.xlu0 %v2705_v32, %s4321_s30 }
 0xf5e   : > { %v5548_v40 = vld [vmem:[#allocation2 + $0x18] sm:$0xff] }
 0xf5f   : > { %2779 = vrot.lane.b32.xlu0 %v2705_v32, %s4322_s12  ;;  %2796 = vrot.lane.b32.xlu1 %v5548_v40, %s4321_s30 }
 0xf63   : > { %2768 = vrot.lane.b32.xlu0 %v2705_v32, %s4323_s13  ;;  %2785 = vrot.lane.b32.xlu1 %v5548_v40, %s4322_s12 }
 0xf67   : > { %2757 = vrot.lane.b32.xlu0 %v2705_v32, %s4324_s11  ;;  %2774 = vrot.lane.b32.xlu1 %v5548_v40, %s4323_s13 }
 0xf6b   : > { %2746 = vrot.lane.b32.xlu0 %v2705_v32, %s4325_s14  ;;  %2763 = vrot.lane.b32.xlu1 %v5548_v40, %s4324_s11 }
 0xf6f   : > { %2735 = vrot.lane.b32.xlu0 %v2705_v32, %s4326_s15  ;;  %2752 = vrot.lane.b32.xlu1 %v5548_v40, %s4325_s14 }
 0xf73   : > { %2724 = vrot.lane.b32.xlu0 %v2705_v32, %s6005_s27  ;;  %2741 = vrot.lane.b32.xlu1 %v5548_v40, %s4326_s15 }
 0xf77   : > { %2713 = vrot.lane.b32.xlu0 %v2705_v32, %s6006_s16  ;;  %2730 = vrot.lane.b32.xlu1 %v5548_v40, %s6005_s27 }
 0xf7b   : > { %2810 = vrot.lane.b32.xlu0 %v2705_v32, %s6007_s19  ;;  %2719 = vrot.lane.b32.xlu1 %v5548_v40, %s6006_s16 }
 0xf7f   : > { %2792 = vrot.lane.b32.xlu1 %v2695_v34, %s4321_s30  ;;  %2794 = vrot.lane.b32.xlu0 %v2696_v24, %s4321_s30 }
 0xf83   : > { %2781 = vrot.lane.b32.xlu1 %v2695_v34, %s4322_s12  ;;  %2783 = vrot.lane.b32.xlu0 %v2696_v24, %s4322_s12 }
 0xf87   : > { %2770 = vrot.lane.b32.xlu1 %v2695_v34, %s4323_s13  ;;  %2772 = vrot.lane.b32.xlu0 %v2696_v24, %s4323_s13 }
 0xf8b   : > { %2759 = vrot.lane.b32.xlu1 %v2695_v34, %s4324_s11  ;;  %2761 = vrot.lane.b32.xlu0 %v2696_v24, %s4324_s11 }
 0xf8f   : > { %2748 = vrot.lane.b32.xlu1 %v2695_v34, %s4325_s14  ;;  %2750 = vrot.lane.b32.xlu0 %v2696_v24, %s4325_s14 }
 0xf93   : > { %2737 = vrot.lane.b32.xlu1 %v2695_v34, %s4326_s15  ;;  %2739 = vrot.lane.b32.xlu0 %v2696_v24, %s4326_s15 }
 0xf97   : > { %2726 = vrot.lane.b32.xlu1 %v2695_v34, %s6005_s27  ;;  %2728 = vrot.lane.b32.xlu0 %v2696_v24, %s6005_s27 }
 0xf9b   : > { %2715 = vrot.lane.b32.xlu1 %v2695_v34, %s6006_s16  ;;  %2717 = vrot.lane.b32.xlu0 %v2696_v24, %s6006_s16 }
 0xf9f   : > { %2814 = vrot.lane.b32.xlu1 %v2696_v24, %s6007_s19  ;;  %2812 = vrot.lane.b32.xlu0 %v2695_v34, %s6007_s19 }
 0xfcd   : > { %v2791_v38 = vpop.permute.xlu0 %2790 }
 0xfd1   : > { %v2797_v39 = vpop.permute.xlu1 %2796  ;;  %v2780_v41 = vpop.permute.xlu0 %2779 }
 0xfd2   : > { %2880 = vrot.lane.b32.xlu1 %v2797_v39, %s6007_s19 }
 0xfd5   : > { %v2786_v42 = vpop.permute.xlu1 %2785  ;;  %v2769_v37 = vpop.permute.xlu0 %2768 }
 0xfd6   : > { %2872 = vrot.lane.b32.xlu1 %v2786_v42, %s6007_s19 }
 0xfd9   : > { %v2775_v43 = vpop.permute.xlu1 %2774  ;;  %v2758_v36 = vpop.permute.xlu0 %2757 }
 0xfda   : > { %2864 = vrot.lane.b32.xlu1 %v2775_v43, %s6007_s19 }
 0xfdd   : > { %v2764_v45 = vpop.permute.xlu1 %2763  ;;  %v2747_v46 = vpop.permute.xlu0 %2746 }
 0xfde   : > { %2856 = vrot.lane.b32.xlu1 %v2764_v45, %s6007_s19 }
 0xfe1   : > { %v2753_v50 = vpop.permute.xlu1 %2752  ;;  %v5598_v44 = vpop.permute.xlu0 %2735 }
 0xfe2   : > { %2848 = vrot.lane.b32.xlu1 %v2753_v50, %s6007_s19 }
 0xfe5   : > { %v2742_v47 = vpop.permute.xlu1 %2741  ;;  %v5601_v48 = vpop.permute.xlu0 %2724 }
 0xfe6   : > { %2840 = vrot.lane.b32.xlu1 %v2742_v47, %s6007_s19 }
 0xfe9   : > { %v2731_v31 = vpop.permute.xlu1 %2730  ;;  %v5604_v35 = vpop.permute.xlu0 %2713 }
 0xfea   : > { %2832 = vrot.lane.b32.xlu1 %v2731_v31, %s6007_s19 }
 0xfed   : > { %v2720_v49 = vpop.permute.xlu1 %2719  ;;  %v5607_v19 = vpop.permute.xlu0 %2810 }
 0xff1   : > { %v2793_v51 = vpop.permute.xlu1 %2792  ;;  %v2795_v52 = vpop.permute.xlu0 %2794 }
 0xff2   : > { %v2800_v53 = vsel %vm497_vm2, %v2795_v52, %v2797_v39  ;;  %v2799_v55 = vsel %vm497_vm2, %v2793_v51, %v2795_v52  ;;  %v2798_v61 = vsel %vm497_vm2, %v2791_v38, %v2793_v51 }
 0xff3   : > { %2878 = vrot.lane.b32.xlu0 %v2800_v53, %s6007_s19  ;;  %2876 = vrot.lane.b32.xlu1 %v2799_v55, %s6007_s19 }
 0xff5   : > { %v2782_v57 = vpop.permute.xlu1 %2781  ;;  %v2784_v58 = vpop.permute.xlu0 %2783 }
 0xff6   : > { %v2788_v4 = vsel %vm6128_vm6, %v2782_v57, %v2784_v58  ;;  %v2789_v8 = vsel %vm6129_vm12, %v2784_v58, %v2786_v42  ;;  %v2787_v10 = vsel %vm6130_vm15, %v2780_v41, %v2782_v57  ;;  %vm6134_vm6 = vmmov %vm6132_vm7  ;;  %vm6135_vm12 = vcmask 850944  }
 0xff7   : > { %2874 = vrot.lane.b32.xlu1 %v2798_v61, %s6007_s19  ;;  %2868 = vrot.lane.b32.xlu0 %v2788_v4, %s6007_s19  ;;  %vm6136_vm15 = vmmov %vm6133_vm13 }
 0xff9   : > { %v2773_v7 = vpop.permute.xlu0 %2772  ;;  %v2771_v11 = vpop.permute.xlu1 %2770 }
 0xffa   : > { %v2778_v14 = vsel %vm473_vm4, %v2773_v7, %v2775_v43  ;;  %v2777_v15 = vsel %vm473_vm4, %v2771_v11, %v2773_v7  ;;  %v2776_v18 = vsel %vm473_vm4, %v2769_v37, %v2771_v11 }
 0xffb   : > { %2870 = vrot.lane.b32.xlu1 %v2789_v8, %s6007_s19  ;;  %2866 = vrot.lane.b32.xlu0 %v2787_v10, %s6007_s19 }
 0xffd   : > { %v2762_v13 = vpop.permute.xlu0 %2761  ;;  %v2760_v16 = vpop.permute.xlu1 %2759 }
 0xffe   : > { %v2767_v20 = vsel %vm6131_vm8, %v2762_v13, %v2764_v45  ;;  %v2766_v0 = vsel %vm6132_vm7, %v2760_v16, %v2762_v13  ;;  %v2765_v59 = vsel %vm6134_vm6, %v2758_v36, %v2760_v16  ;;  %vm6137_vm8 = vcmask 1031168   ;;  %vm6138_vm7 = vmmov %vm6133_vm13 }
 0xfff   : > { %2862 = vrot.lane.b32.xlu1 %v2778_v14, %s6007_s19  ;;  %2860 = vrot.lane.b32.xlu0 %v2777_v15, %s6007_s19  ;;  %vm6140_vm6 = vmmov %vm6135_vm12 }
0x1001   : > { %v2751_v17 = vpop.permute.xlu0 %2750  ;;  %v2749_v63 = vpop.permute.xlu1 %2748 }
0x1002   : > { %v2756_v23 = vsel %vm6133_vm13, %v2751_v17, %v2753_v50  ;;  %v2755_v12 = vsel %vm6136_vm15, %v2749_v63, %v2751_v17  ;;  %v2754_v26 = vsel %vm6138_vm7, %v2747_v46, %v2749_v63  ;;  %vm6139_vm13 = vcmask 1039360   ;;  %vm6142_vm15 = vmmov %vm6137_vm8 }
0x1003   : > { %2858 = vrot.lane.b32.xlu0 %v2776_v18, %s6007_s19  ;;  %2854 = vrot.lane.b32.xlu1 %v2767_v20, %s6007_s19  ;;  %vm6143_vm7 = vmmov %vm6139_vm13 }
0x1005   : > { %v2740_v60 = vpop.permute.xlu0 %2739  ;;  %v2738_v28 = vpop.permute.xlu1 %2737 }
0x1006   : > { %v2745_v9 = vsel %vm6135_vm12, %v2740_v60, %v2742_v47  ;;  %v2744_v29 = vsel %vm6140_vm6, %v2738_v28, %v2740_v60  ;;  %vm6141_vm12 = vmmov %vm6140_vm6  ;;  %vm6145_vm6 = vcmask 433152  }
0x1007   : > { %2852 = vrot.lane.b32.xlu0 %v2766_v0, %s6007_s19  ;;  %2846 = vrot.lane.b32.xlu1 %v2756_v23, %s6007_s19  ;;  %v2743_v30 = vsel %vm6141_vm12, %v5598_v44, %v2738_v28  ;;  %vm6146_vm12 = vmmov %vm6145_vm6 }
0x1009   : > { %v2729_v22 = vpop.permute.xlu0 %2728  ;;  %v2727_v32 = vpop.permute.xlu1 %2726 }
0x100a   : > { %v2734_v21 = vsel %vm6137_vm8, %v2729_v22, %v2731_v31  ;;  %v2733_v33 = vsel %vm6142_vm15, %v2727_v32, %v2729_v22  ;;  %v2732_v34 = vsel %vm6137_vm8, %v5601_v48, %v2727_v32  ;;  %vm6147_vm15 = vmmov %vm6145_vm6 }
0x100b   : > { %2850 = vrot.lane.b32.xlu0 %v2765_v59, %s6007_s19  ;;  %2838 = vrot.lane.b32.xlu1 %v2745_v9, %s6007_s19  ;;  %vm6148_vm8 = vmmov %vm6145_vm6 }
0x100d   : > { %v2718_v25 = vpop.permute.xlu0 %2717  ;;  %v2716_v24 = vpop.permute.xlu1 %2715 }
0x100e   : > { %v2723_v27 = vsel %vm6139_vm13, %v2718_v25, %v2720_v49  ;;  %v2722_v38 = vsel %vm6143_vm7, %v2716_v24, %v2718_v25  ;;  %vm6144_vm13 = vmmov %vm6143_vm7 }
0x100f   : > { %2844 = vrot.lane.b32.xlu0 %v2755_v12, %s6007_s19  ;;  %2830 = vrot.lane.b32.xlu1 %v2734_v21, %s6007_s19  ;;  %v2721_v39 = vsel %vm6144_vm13, %v5604_v35, %v2716_v24  ;;  %vm6149_vm7 = vmmov %vm6145_vm6 }
0x1010   : > { %vm6150_vm13 = vmmov %vm6145_vm6 }
0x1011   : > { %v5666_v41 = vpop.permute.xlu1 %2814  ;;  %v5668_v50 = vpop.permute.xlu0 %2812 }
0x1013   : > { %2842 = vrot.lane.b32.xlu0 %v2754_v26, %s6007_s19  ;;  %2822 = vrot.lane.b32.xlu1 %v2723_v27, %s6007_s19 }
0x1017   : > { %2836 = vrot.lane.b32.xlu0 %v2744_v29, %s6007_s19  ;;  %2824 = vrot.lane.b32.xlu1 %v2720_v49, %s6007_s19 }
0x101b   : > { %2834 = vrot.lane.b32.xlu0 %v2743_v30, %s6007_s19  ;;  %2807 = vperm.xlu1 %4210, %v3858_v54  }
0x101f   : > { %2828 = vrot.lane.b32.xlu0 %v2733_v33, %s6007_s19 }
0x1023   : > { %2826 = vrot.lane.b32.xlu0 %v2732_v34, %s6007_s19 }
0x1027   : > { %2820 = vrot.lane.b32.xlu0 %v2722_v38, %s6007_s19 }
0x102b   : > { %2818 = vrot.lane.b32.xlu0 %v2721_v39, %s6007_s19 }
0x102f   : > { %2816 = vrot.lane.b32.xlu0 %v5548_v40, %s6007_s19 }
0x1044   : > { %v2881_v42 = vpop.permute.xlu1 %2880 }
0x1048   : > { %v2873_v37 = vpop.permute.xlu1 %2872 }
0x104c   : > { %v2865_v43 = vpop.permute.xlu1 %2864 }
0x1050   : > { %v2857_v36 = vpop.permute.xlu1 %2856 }
0x1054   : > { %v2849_v45 = vpop.permute.xlu1 %2848 }
0x1058   : > { %v2841_v46 = vpop.permute.xlu1 %2840 }
0x105c   : > { %v2833_v44 = vpop.permute.xlu1 %2832 }
0x1065   : > { %v2877_v47 = vpop.permute.xlu1 %2876  ;;  %v2879_v48 = vpop.permute.xlu0 %2878 }
0x1066   : > { %v2907_v31 = vsel %vm6145_vm6, %v2877_v47, %v2879_v48  ;;  %v2908_v35 = vsel %vm6146_vm12, %v2879_v48, %v2881_v42  ;;  %vm6151_vm12 = vmmov %vm6145_vm6 }
0x1067   : > { %2953 = vmatprep.subr.mxu0 %v2907_v31  ;;  %4082 = vmatpush3.msra.mxu1 %v2908_v35 }
0x1068   : > { %4083 = vmatprep.subr.mxu1 %v4319_v2 }
0x1069   : > { %v2875_v40 = vpop.permute.xlu1 %2874  ;;  %v2869_v49 = vpop.permute.xlu0 %2868 }
0x106a   : > { %v2906_v51 = vsel %vm6147_vm15, %v2875_v40, %v2877_v47  ;;  %vm6152_vm15 = vmmov %vm6145_vm6 }
0x106b   : > { %2954 = vmatpush1.msra.mxu0 %v2906_v51 }
0x106d   : > { %v2871_v52 = vpop.permute.xlu1 %2870  ;;  %v2867_v53 = vpop.permute.xlu0 %2866 }
0x106e   : > { %v2905_v55 = vsel %vm6148_vm8, %v2871_v52, %v2873_v37  ;;  %v2903_v57 = vsel %vm6149_vm7, %v2867_v53, %v2869_v49  ;;  %v2904_v58 = vsel %vm6150_vm13, %v2869_v49, %v2871_v52  ;;  %vm6153_vm8 = vmmov %vm6145_vm6 }
0x106f   : > { %2955 = vmatprep.subr.mxu0 %v2904_v58  ;;  %4084 = vmatpush3.msra.mxu1 %v2905_v55  ;;  %vm6154_vm7 = vmmov %vm6145_vm6 }
0x1070   : > { %2956 = vmatpush1.msra.mxu0 %v2903_v57  ;;  %4085 = vmatprep.subr.mxu1 %v4319_v2  ;;  %vm6155_vm13 = vmmov %vm6145_vm6 }
0x1071   : > { %v2863_v61 = vpop.permute.xlu1 %2862  ;;  %v2861_v4 = vpop.permute.xlu0 %2860 }
0x1072   : > { %v2902_v7 = vsel %vm6145_vm6, %v2863_v61, %v2865_v43  ;;  %v2901_v8 = vsel %vm6151_vm12, %v2861_v4, %v2863_v61  ;;  %vm6156_vm12 = vmmov %vm6145_vm6  ;;  %v2883_v43 = vsel %vm6145_vm6, %v5668_v50, %v5666_v41 }
0x1073   : > { %2957 = vmatprep.subr.mxu0 %v2901_v8  ;;  %4086 = vmatpush3.msra.mxu1 %v2902_v7 }
0x1074   : > { %4087 = vmatprep.subr.mxu1 %v4319_v2 }
0x1075   : > { %v2855_v10 = vpop.permute.xlu1 %2854  ;;  %v2859_v11 = vpop.permute.xlu0 %2858 }
0x1076   : > { %v2899_v13 = vsel %vm6152_vm15, %v2855_v10, %v2857_v36  ;;  %v2900_v14 = vsel %vm6153_vm8, %v2859_v11, %v2861_v4  ;;  %vm6157_vm15 = vmmov %vm6145_vm6  ;;  %v3857_v36 = vld [vmem:[%s5967_s2 + $0x30] sm:$0xff] }
0x1077   : > { %2958 = vmatpush1.msra.mxu0 %v2900_v14  ;;  %4088 = vmatpush3.msra.mxu1 %v2899_v13  ;;  %vm6158_vm8 = vmmov %vm6145_vm6 }
0x1078   : > { %4089 = vmatprep.subr.mxu1 %v4319_v2 }
0x1079   : > { %v2847_v15 = vpop.permute.xlu1 %2846  ;;  %v2853_v17 = vpop.permute.xlu0 %2852 }
0x107a   : > { %v2896_v18 = vsel %vm6154_vm7, %v2847_v15, %v2849_v45  ;;  %v2898_v20 = vsel %vm6155_vm13, %v2853_v17, %v2855_v10  ;;  %vm6159_vm7 = vmmov %vm6145_vm6 }
0x107b   : > { %2959 = vmatprep.subr.mxu0 %v2898_v20  ;;  %4090 = vmatpush3.msra.mxu1 %v2896_v18  ;;  %vm6160_vm13 = vmmov %vm6145_vm6 }
0x107c   : > { %4091 = vmatprep.subr.mxu1 %v4319_v2 }
0x107d   : > { %v2839_v16 = vpop.permute.xlu1 %2838  ;;  %v2851_v60 = vpop.permute.xlu0 %2850 }
0x107e   : > { %v2893_v0 = vsel %vm6145_vm6, %v2839_v16, %v2841_v46  ;;  %v2897_v23 = vsel %vm6156_vm12, %v2851_v60, %v2853_v17  ;;  %vm6161_vm12 = vmmov %vm6145_vm6 }
0x107f   : > { %2960 = vmatpush1.msra.mxu0 %v2897_v23  ;;  %4092 = vmatpush3.msra.mxu1 %v2893_v0 }
0x1080   : > { %4093 = vmatprep.subr.mxu1 %v4319_v2 }
0x1081   : > { %v2831_v22 = vpop.permute.xlu1 %2830  ;;  %v2845_v59 = vpop.permute.xlu0 %2844 }
0x1082   : > { %v2890_v9 = vsel %vm6157_vm15, %v2831_v22, %v2833_v44  ;;  %v2895_v63 = vsel %vm6158_vm8, %v2845_v59, %v2847_v15  ;;  %vm6162_vm15 = vmmov %vm6145_vm6 }
0x1083   : > { %2961 = vmatprep.subr.mxu0 %v2895_v63  ;;  %4094 = vmatpush3.msra.mxu1 %v2890_v9  ;;  %vm6163_vm8 = vmmov %vm6145_vm6 }
0x1084   : > { %4095 = vmatprep.subr.mxu1 %v4319_v2 }
0x1085   : > { %v2823_v12 = vpop.permute.xlu1 %2822  ;;  %v2843_v21 = vpop.permute.xlu0 %2842 }
0x1086   : > { %v2894_v25 = vsel %vm6159_vm7, %v2843_v21, %v2845_v59  ;;  %vm6164_vm7 = vmmov %vm6145_vm6 }
0x1087   : > { %2962 = vmatpush1.msra.mxu0 %v2894_v25 }
0x1089   : > { %v2825_v26 = vpop.permute.xlu1 %2824  ;;  %v2837_v27 = vpop.permute.xlu0 %2836 }
0x108a   : > { %v2887_v28 = vsel %vm6160_vm13, %v2823_v12, %v2825_v26  ;;  %v2892_v29 = vsel %vm6145_vm6, %v2837_v27, %v2839_v16  ;;  %vm6165_vm13 = vmmov %vm6145_vm6 }
0x108b   : > { %2963 = vmatprep.subr.mxu0 %v2892_v29  ;;  %4096 = vmatpush3.msra.mxu1 %v2887_v28 }
0x108c   : > { %4097 = vmatprep.subr.mxu1 %v4319_v2 }
0x108d   : > { %v2835_v54 = vpop.permute.xlu0 %2834 }
0x108e   : > { %v2891_v30 = vsel %vm6161_vm12, %v2835_v54, %v2837_v27  ;;  %vm6166_vm12 = vmmov %vm6145_vm6 }
0x108f   : > { %2964 = vmatpush1.msra.mxu0 %v2891_v30  ;;  %v2882_v45 = vsel %vm6166_vm12, %v5607_v19, %v5668_v50  ;;  %vm6173_vm12 = vcmask 842752  }
0x1091   : > { %v2829_v32 = vpop.permute.xlu0 %2828 }
0x1092   : > { %v2889_v33 = vsel %vm6162_vm15, %v2829_v32, %v2831_v22  ;;  %vm6167_vm15 = vmmov %vm6145_vm6 }
0x1093   : > { %2965 = vmatprep.subr.mxu0 %v2889_v33 }
0x1095   : > { %v2827_v34 = vpop.permute.xlu0 %2826 }
0x1096   : > { %v2888_v24 = vsel %vm6163_vm8, %v2827_v34, %v2829_v32  ;;  %v2808_v47 = vpop.permute.xlu1 %2807  ;;  %vm6168_vm8 = vcmask 646144  }
0x1097   : > { %2966 = vmatpush1.msra.mxu0 %v2888_v24 }
0x1099   : > { %v2821_v38 = vpop.permute.xlu0 %2820 }
0x109a   : > { %v2886_v39 = vsel %vm6164_vm7, %v2821_v38, %v2823_v12  ;;  %vm6169_vm7 = vmmov %vm6168_vm8 }
0x109b   : > { %2967 = vmatprep.subr.mxu0 %v2886_v39 }
0x109d   : > { %v2819_v42 = vpop.permute.xlu0 %2818 }
0x109e   : > { %v2885_v37 = vsel %vm6165_vm13, %v2819_v42, %v2821_v38  ;;  %vm6170_vm13 = vmmov %vm6169_vm7 }
0x109f   : > { %2968 = vmatpush1.msra.mxu0 %v2885_v37 }
0x10a0   : > { %2969 = vmatprep.subr.mxu0 %v2883_v43 }
0x10a1   : > { %2970 = vmatpush1.msra.mxu0 %v2882_v45  ;;  %v2817_v46 = vpop.permute.xlu0 %2816 }
0x10a2   : > { %v2884_v44 = vsel %vm6167_vm15, %v5666_v41, %v2817_v46  ;;  %3859 = vmatmul.mubr.msk.f32.vlgmr.msra.gmra.mxu0 %vm291_vm10, %v3857_v36 }
0x10a3   : > { %4098 = vmatpush3.msra.mxu1 %v2884_v44  ;;  %3403 = vmatprep.mubr.f32.mxu0 %v4319_v2 }
0x10a4   : > { %4100 = vmatmul.mubr.msk.f32.vlgmr.msra.gmra.mxu1 %vm291_vm10, %v3857_v36  ;;  %4102 = vmatprep.subr.mxu1 %v4319_v2 }
0x10a5   : > { %4120 = vmatprep.mubr.msk.f32.mxu1 %vm6004_vm14, %v4319_v2 }
0x1162   : > { %v3005_v48 = vpop.f32.mrf.mxu0 }
0x1163   : > { %v3006_v19 = vadd.f32 %v3005_v48, %v2808_v47 }
0x1164   : > { %v3007_v50 = vpop.f32.mrf.mxu0  ;;  %v3076_v31 = vpop.f32.mrf.mxu1 }
0x1165   : > { %v3080_v35 = vmax.f32 %v3006_v19, 0.0  ;;  %v3008_v40 = vadd.f32 %v3007_v50, %v2808_v47  ;;  %v3077_v41 = vadd.f32 %v3076_v31, %v2808_v47 }
0x1166   : > { %v4101_v49 = vpop.f32.mrf.mxu1 }
0x1167   : > { %v3083_v51 = vsel %vm4702_vm11, %v3080_v35, 0.0  ;;  %v3081_v52 = vmax.f32 %v3008_v40, 0.0  ;;  %v3082_v53 = vmax.f32 %v3077_v41, 0.0 }
0x1168   : > { %3089 = vrot.lane.b32.xlu0 %v3083_v51, %s4320_s29 }
0x1169   : > { %v3084_v55 = vsel %vm4708_vm9, %v3081_v52, 0.0  ;;  %v3085_v57 = vsel %vm4715_vm5, %v3082_v53, 0.0 }
0x116a   : > { %3091 = vrot.lane.b32.xlu1 %v3084_v55, %s4320_s29 }
0x116c   : > { %3093 = vrot.lane.b32.xlu0 %v3085_v57, %s4320_s29 }
0x11da   : > { %v3090_v58 = vpop.permute.xlu0 %3089 }
0x11db   : > { %3101 = vst.msk [vmem:[#allocation3] sm:$0xff] %vm392_vm1, %v3090_v58 }
0x11dc   : > { %v3092_v61 = vpop.permute.xlu1 %3091 }
0x11dd   : > { %v3095_v4 = vsel %vm385_vm0, %v3090_v58, %v3092_v61  ;;  %v3862_v58 = vld [vmem:[%s5968_s3 + $0x38] sm:$0xff] }
0x11de   : > { %v3094_v7 = vpop.permute.xlu0 %3093 }
0x11df   : > { %v3096_v8 = vsel %vm385_vm0, %v3092_v61, %v3094_v7  ;;  %3104 = vst.msk [vmem:[#allocation3 + $0x18] sm:$0xff] %vm385_vm0, %v3094_v7 }
0x11e2   : > { %v3105_v10 = vld [vmem:[#allocation3] sm:$0xff] }
0x11e3   : > { %3190 = vrot.lane.b32.xlu0 %v3105_v10, %s4321_s30 }
0x11e6   : > { %v5733_v11 = vld [vmem:[#allocation3 + $0x18] sm:$0xff] }
0x11e7   : > { %3179 = vrot.lane.b32.xlu0 %v3105_v10, %s4322_s12  ;;  %3196 = vrot.lane.b32.xlu1 %v5733_v11, %s4321_s30 }
0x11eb   : > { %3168 = vrot.lane.b32.xlu0 %v3105_v10, %s4323_s13  ;;  %3185 = vrot.lane.b32.xlu1 %v5733_v11, %s4322_s12 }
0x11ef   : > { %3157 = vrot.lane.b32.xlu0 %v3105_v10, %s4324_s11  ;;  %3174 = vrot.lane.b32.xlu1 %v5733_v11, %s4323_s13 }
0x11f3   : > { %3146 = vrot.lane.b32.xlu0 %v3105_v10, %s4325_s14  ;;  %3163 = vrot.lane.b32.xlu1 %v5733_v11, %s4324_s11 }
0x11f7   : > { %3135 = vrot.lane.b32.xlu0 %v3105_v10, %s4326_s15  ;;  %3152 = vrot.lane.b32.xlu1 %v5733_v11, %s4325_s14 }
0x11fb   : > { %3124 = vrot.lane.b32.xlu0 %v3105_v10, %s6005_s27  ;;  %3141 = vrot.lane.b32.xlu1 %v5733_v11, %s4326_s15 }
0x11ff   : > { %3113 = vrot.lane.b32.xlu0 %v3105_v10, %s6006_s16  ;;  %3130 = vrot.lane.b32.xlu1 %v5733_v11, %s6005_s27 }
0x1203   : > { %3210 = vrot.lane.b32.xlu0 %v3105_v10, %s6007_s19  ;;  %3119 = vrot.lane.b32.xlu1 %v5733_v11, %s6006_s16 }
0x1207   : > { %3192 = vrot.lane.b32.xlu1 %v3095_v4, %s4321_s30  ;;  %3194 = vrot.lane.b32.xlu0 %v3096_v8, %s4321_s30  ;;  %s4343_s30 = smov [#allocation8]  }
0x120b   : > { %3181 = vrot.lane.b32.xlu1 %v3095_v4, %s4322_s12  ;;  %3183 = vrot.lane.b32.xlu0 %v3096_v8, %s4322_s12 }
0x120f   : > { %3170 = vrot.lane.b32.xlu1 %v3095_v4, %s4323_s13  ;;  %3172 = vrot.lane.b32.xlu0 %v3096_v8, %s4323_s13 }
0x1213   : > { %3159 = vrot.lane.b32.xlu1 %v3095_v4, %s4324_s11  ;;  %3161 = vrot.lane.b32.xlu0 %v3096_v8, %s4324_s11 }
0x1217   : > { %3148 = vrot.lane.b32.xlu1 %v3095_v4, %s4325_s14  ;;  %3150 = vrot.lane.b32.xlu0 %v3096_v8, %s4325_s14 }
0x121b   : > { %3137 = vrot.lane.b32.xlu1 %v3095_v4, %s4326_s15  ;;  %3139 = vrot.lane.b32.xlu0 %v3096_v8, %s4326_s15  ;;  %s4131_s15 = smul.u32 3, %s4468_s18 }
0x121f   : > { %3126 = vrot.lane.b32.xlu1 %v3095_v4, %s6005_s27  ;;  %3128 = vrot.lane.b32.xlu0 %v3096_v8, %s6005_s27  ;;  %s282_s27 = scalar_lea.vmem [#allocation8], %s4131_s15 }
0x1223   : > { %3115 = vrot.lane.b32.xlu1 %v3095_v4, %s6006_s16  ;;  %3117 = vrot.lane.b32.xlu0 %v3096_v8, %s6006_s16  ;;  %s3748_s16 = sshll.u32 %s282_s27, 4  ;;  %s3749_s16 = int_to_ptr.vmem [resolvable:$true] %s3748_s16 }
0x1224   : > { %s4252_s22 = scalar_lea.vmem %s3749_s16, 48 }
0x1225   : > { %p4253_p12 = scmp.ne.s32.totalorder %s3749_s16, %s4252_s22 }
0x1227   : > { %3214 = vrot.lane.b32.xlu1 %v3096_v8, %s6007_s19  ;;  %3212 = vrot.lane.b32.xlu0 %v3095_v4, %s6007_s19  ;;  %p4254_p0 = pnand %p4253_p12, %p6210_p13 }
0x1229   : > { %p4255_p1 = pneg %p4254_p0 }
0x1255   : > { %v3191_v13 = vpop.permute.xlu0 %3190 }
0x1259   : > { %v3197_v14 = vpop.permute.xlu1 %3196  ;;  %v3180_v15 = vpop.permute.xlu0 %3179 }
0x125a   : > { %3280 = vrot.lane.b32.xlu1 %v3197_v14, %s6007_s19 }
0x125d   : > { %v3186_v17 = vpop.permute.xlu1 %3185  ;;  %v3169_v18 = vpop.permute.xlu0 %3168 }
0x125e   : > { %3272 = vrot.lane.b32.xlu1 %v3186_v17, %s6007_s19 }
0x1261   : > { %v3175_v20 = vpop.permute.xlu1 %3174  ;;  %v3158_v16 = vpop.permute.xlu0 %3157 }
0x1262   : > { %3264 = vrot.lane.b32.xlu1 %v3175_v20, %s6007_s19 }
0x1265   : > { %v3164_v60 = vpop.permute.xlu1 %3163  ;;  %v3147_v0 = vpop.permute.xlu0 %3146 }
0x1266   : > { %3256 = vrot.lane.b32.xlu1 %v3164_v60, %s6007_s19 }
0x1269   : > { %v3153_v23 = vpop.permute.xlu1 %3152  ;;  %v5781_v22 = vpop.permute.xlu0 %3135 }
0x126a   : > { %3248 = vrot.lane.b32.xlu1 %v3153_v23, %s6007_s19 }
0x126d   : > { %v3142_v59 = vpop.permute.xlu1 %3141  ;;  %v5784_v9 = vpop.permute.xlu0 %3124 }
0x126e   : > { %3240 = vrot.lane.b32.xlu1 %v3142_v59, %s6007_s19 }
0x1271   : > { %v3131_v63 = vpop.permute.xlu1 %3130  ;;  %v5787_v12 = vpop.permute.xlu0 %3113 }
0x1272   : > { %3232 = vrot.lane.b32.xlu1 %v3131_v63, %s6007_s19 }
0x1275   : > { %v3120_v21 = vpop.permute.xlu1 %3119  ;;  %v5790_v25 = vpop.permute.xlu0 %3210 }
0x1279   : > { %v3193_v26 = vpop.permute.xlu1 %3192  ;;  %v3195_v27 = vpop.permute.xlu0 %3194 }
0x127a   : > { %v3199_v28 = vsel %vm497_vm2, %v3193_v26, %v3195_v27  ;;  %v3200_v29 = vsel %vm497_vm2, %v3195_v27, %v3197_v14  ;;  %v3198_v32 = vsel %vm497_vm2, %v3191_v13, %v3193_v26  ;;  %vm6171_vm2 = vcmask 834560  }
0x127b   : > { %3278 = vrot.lane.b32.xlu0 %v3200_v29, %s6007_s19  ;;  %3276 = vrot.lane.b32.xlu1 %v3199_v28, %s6007_s19  ;;  %vm6172_vm6 = vmmov %vm6171_vm2 }
0x127c   : > { %vm6174_vm15 = vmmov %vm6171_vm2 }
0x127d   : > { %v3182_v54 = vpop.permute.xlu1 %3181  ;;  %v3184_v30 = vpop.permute.xlu0 %3183 }
0x127e   : > { %v3188_v33 = vsel %vm6168_vm8, %v3182_v54, %v3184_v30  ;;  %v3187_v24 = vsel %vm6169_vm7, %v3180_v15, %v3182_v54  ;;  %v3189_v38 = vsel %vm6170_vm13, %v3184_v30, %v3186_v17  ;;  %vm6176_vm8 = vmmov %vm6173_vm12  ;;  %vm6177_vm7 = vcmask 1031168  }
0x127f   : > { %3274 = vrot.lane.b32.xlu1 %v3198_v32, %s6007_s19  ;;  %3268 = vrot.lane.b32.xlu0 %v3188_v33, %s6007_s19  ;;  %vm6178_vm13 = vmmov %vm6176_vm8 }
0x1281   : > { %v3173_v34 = vpop.permute.xlu0 %3172  ;;  %v3171_v39 = vpop.permute.xlu1 %3170 }
0x1282   : > { %v3177_v37 = vsel %vm473_vm4, %v3171_v39, %v3173_v34  ;;  %v3178_v43 = vsel %vm473_vm4, %v3173_v34, %v3175_v20  ;;  %v3176_v45 = vsel %vm473_vm4, %v3169_v18, %v3171_v39  ;;  %vm6175_vm4 = vcmask 850944  }
0x1283   : > { %3270 = vrot.lane.b32.xlu1 %v3189_v38, %s6007_s19  ;;  %3266 = vrot.lane.b32.xlu0 %v3187_v24, %s6007_s19 }
0x1285   : > { %v3162_v42 = vpop.permute.xlu0 %3161  ;;  %v3160_v44 = vpop.permute.xlu1 %3159 }
0x1286   : > { %v3167_v46 = vsel %vm6171_vm2, %v3162_v42, %v3164_v60  ;;  %v3166_v48 = vsel %vm6172_vm6, %v3160_v44, %v3162_v42  ;;  %v3165_v31 = vsel %vm6174_vm15, %v3158_v16, %v3160_v44  ;;  %vm6179_vm2 = vcmask 1039360   ;;  %vm6180_vm6 = vmmov %vm6175_vm4 }
0x1287   : > { %3262 = vrot.lane.b32.xlu1 %v3178_v43, %s6007_s19  ;;  %3260 = vrot.lane.b32.xlu0 %v3177_v37, %s6007_s19  ;;  %vm6182_vm15 = vmmov %vm6177_vm7 }
0x1289   : > { %v3151_v36 = vpop.permute.xlu0 %3150  ;;  %v3149_v40 = vpop.permute.xlu1 %3148 }
0x128a   : > { %v3156_v19 = vsel %vm6173_vm12, %v3151_v36, %v3153_v23  ;;  %v3155_v41 = vsel %vm6176_vm8, %v3149_v40, %v3151_v36  ;;  %v3154_v52 = vsel %vm6178_vm13, %v3147_v0, %v3149_v40  ;;  %vm6181_vm12 = vmmov %vm6175_vm4  ;;  %vm6186_vm13 = vcmask 433152  }
0x128b   : > { %3258 = vrot.lane.b32.xlu0 %v3176_v45, %s6007_s19  ;;  %3254 = vrot.lane.b32.xlu1 %v3167_v46, %s6007_s19  ;;  %vm6184_vm8 = vmmov %vm6179_vm2 }
0x128d   : > { %v3140_v47 = vpop.permute.xlu0 %3139  ;;  %v3138_v55 = vpop.permute.xlu1 %3137 }
0x128e   : > { %v3145_v35 = vsel %vm6175_vm4, %v3140_v47, %v3142_v59  ;;  %v3144_v57 = vsel %vm6180_vm6, %v3138_v55, %v3140_v47  ;;  %v3143_v61 = vsel %vm6181_vm12, %v5781_v22, %v3138_v55  ;;  %vm6183_vm4 = vmmov %vm6177_vm7 }
0x128f   : > { %3252 = vrot.lane.b32.xlu0 %v3166_v48, %s6007_s19  ;;  %3246 = vrot.lane.b32.xlu1 %v3156_v19, %s6007_s19 }
0x1291   : > { %v3129_v50 = vpop.permute.xlu0 %3128  ;;  %v3127_v4 = vpop.permute.xlu1 %3126 }
0x1292   : > { %v3134_v49 = vsel %vm6177_vm7, %v3129_v50, %v3131_v63  ;;  %v3133_v7 = vsel %vm6182_vm15, %v3127_v4, %v3129_v50  ;;  %v3132_v8 = vsel %vm6183_vm4, %v5784_v9, %v3127_v4  ;;  %vm6185_vm7 = vmmov %vm6179_vm2 }
0x1293   : > { %3250 = vrot.lane.b32.xlu0 %v3165_v31, %s6007_s19  ;;  %3238 = vrot.lane.b32.xlu1 %v3145_v35, %s6007_s19 }
0x1295   : > { %v3118_v51 = vpop.permute.xlu0 %3117  ;;  %v3116_v10 = vpop.permute.xlu1 %3115 }
0x1296   : > { %v3123_v53 = vsel %vm6179_vm2, %v3118_v51, %v3120_v21  ;;  %v3122_v13 = vsel %vm6184_vm8, %v3116_v10, %v3118_v51  ;;  %v3121_v14 = vsel %vm6185_vm7, %v5787_v12, %v3116_v10  ;;  %vm6187_vm2 = vmmov %vm6186_vm13 }
0x1297   : > { %3244 = vrot.lane.b32.xlu0 %v3155_v41, %s6007_s19  ;;  %3230 = vrot.lane.b32.xlu1 %v3134_v49, %s6007_s19  ;;  %vm6188_vm6 = vmmov %vm6187_vm2 }
0x1298   : > { %vm6189_vm12 = vmmov %vm6187_vm2 }
0x1299   : > { %v5849_v15 = vpop.permute.xlu1 %3214  ;;  %v5851_v23 = vpop.permute.xlu0 %3212  ;;  %vm6190_vm15 = vmmov %vm6187_vm2 }
0x129a   : > { %vm6191_vm4 = vmmov %vm6187_vm2 }
0x129b   : > { %3242 = vrot.lane.b32.xlu0 %v3154_v52, %s6007_s19  ;;  %3222 = vrot.lane.b32.xlu1 %v3123_v53, %s6007_s19  ;;  %vm6192_vm8 = vmmov %vm6187_vm2 }
0x129c   : > { %vm6193_vm7 = vmmov %vm6187_vm2 }
0x129f   : > { %3236 = vrot.lane.b32.xlu0 %v3144_v57, %s6007_s19  ;;  %3224 = vrot.lane.b32.xlu1 %v3120_v21, %s6007_s19 }
0x12a3   : > { %3234 = vrot.lane.b32.xlu0 %v3143_v61, %s6007_s19  ;;  %3207 = vperm.xlu1 %4210, %v3862_v58  }
0x12a7   : > { %3228 = vrot.lane.b32.xlu0 %v3133_v7, %s6007_s19 }
0x12ab   : > { %3226 = vrot.lane.b32.xlu0 %v3132_v8, %s6007_s19 }
0x12af   : > { %3220 = vrot.lane.b32.xlu0 %v3122_v13, %s6007_s19 }
0x12b3   : > { %3218 = vrot.lane.b32.xlu0 %v3121_v14, %s6007_s19 }
0x12b7   : > { %3216 = vrot.lane.b32.xlu0 %v5733_v11, %s6007_s19 }
0x12cc   : > { %v3281_v17 = vpop.permute.xlu1 %3280 }
0x12d0   : > { %v3273_v18 = vpop.permute.xlu1 %3272 }
0x12d4   : > { %v3265_v20 = vpop.permute.xlu1 %3264 }
0x12d8   : > { %v3257_v16 = vpop.permute.xlu1 %3256 }
0x12dc   : > { %v3249_v60 = vpop.permute.xlu1 %3248 }
0x12e0   : > { %v3241_v0 = vpop.permute.xlu1 %3240 }
0x12e4   : > { %v3233_v22 = vpop.permute.xlu1 %3232 }
0x12ed   : > { %v3277_v59 = vpop.permute.xlu1 %3276  ;;  %v3279_v9 = vpop.permute.xlu0 %3278 }
0x12ee   : > { %v3308_v63 = vsel %vm6186_vm13, %v3279_v9, %v3281_v17  ;;  %v3307_v12 = vsel %vm6187_vm2, %v3277_v59, %v3279_v9  ;;  %vm6194_vm13 = vmmov %vm6187_vm2 }
0x12ef   : > { %3353 = vmatprep.subr.mxu0 %v3307_v12  ;;  %4103 = vmatpush3.msra.mxu1 %v3308_v63 }
0x12f0   : > { %4104 = vmatprep.subr.mxu1 %v4319_v2 }
0x12f1   : > { %v3275_v11 = vpop.permute.xlu1 %3274  ;;  %v3269_v21 = vpop.permute.xlu0 %3268 }
0x12f2   : > { %v3306_v26 = vsel %vm6188_vm6, %v3275_v11, %v3277_v59  ;;  %vm6195_vm6 = vmmov %vm6187_vm2 }
0x12f3   : > { %3354 = vmatpush1.msra.mxu0 %v3306_v26 }
0x12f5   : > { %v3271_v27 = vpop.permute.xlu1 %3270  ;;  %v3267_v28 = vpop.permute.xlu0 %3266 }
0x12f6   : > { %v3305_v29 = vsel %vm6189_vm12, %v3271_v27, %v3273_v18  ;;  %v3303_v54 = vsel %vm6190_vm15, %v3267_v28, %v3269_v21  ;;  %v3304_v30 = vsel %vm6191_vm4, %v3269_v21, %v3271_v27  ;;  %vm6196_vm12 = vmmov %vm6187_vm2 }
0x12f7   : > { %3355 = vmatprep.subr.mxu0 %v3304_v30  ;;  %4105 = vmatpush3.msra.mxu1 %v3305_v29  ;;  %vm6197_vm15 = vmmov %vm6187_vm2 }
0x12f8   : > { %3356 = vmatpush1.msra.mxu0 %v3303_v54  ;;  %4106 = vmatprep.subr.mxu1 %v4319_v2  ;;  %vm6198_vm4 = vmmov %vm6187_vm2 }
0x12f9   : > { %v3263_v32 = vpop.permute.xlu1 %3262  ;;  %v3261_v33 = vpop.permute.xlu0 %3260 }
0x12fa   : > { %v3302_v34 = vsel %vm6192_vm8, %v3263_v32, %v3265_v20  ;;  %v3301_v24 = vsel %vm6193_vm7, %v3261_v33, %v3263_v32  ;;  %vm6199_vm8 = vmmov %vm6187_vm2 }
0x12fb   : > { %3357 = vmatprep.subr.mxu0 %v3301_v24  ;;  %4107 = vmatpush3.msra.mxu1 %v3302_v34  ;;  %vm6200_vm7 = vmmov %vm6187_vm2 }
0x12fc   : > { %4108 = vmatprep.subr.mxu1 %v4319_v2 }
0x12fd   : > { %v3255_v38 = vpop.permute.xlu1 %3254  ;;  %v3259_v39 = vpop.permute.xlu0 %3258 }
0x12fe   : > { %v3299_v42 = vsel %vm6194_vm13, %v3255_v38, %v3257_v16  ;;  %v3300_v37 = vsel %vm6187_vm2, %v3259_v39, %v3261_v33  ;;  %vm6201_vm13 = vmmov %vm6187_vm2  ;;  %v3861_v16 = vld [vmem:[%s5967_s2 + $0x38] sm:$0xff] }
0x12ff   : > { %3358 = vmatpush1.msra.mxu0 %v3300_v37  ;;  %4109 = vmatpush3.msra.mxu1 %v3299_v42  ;;  %v3509_v37 = vld [vmem:[%s5969_s4] sm:$0x1] }
0x1300   : > { %4110 = vmatprep.subr.mxu1 %v4319_v2 }
0x1301   : > { %v3247_v43 = vpop.permute.xlu1 %3246  ;;  %v3253_v36 = vpop.permute.xlu0 %3252 }
0x1302   : > { %v3296_v45 = vsel %vm6195_vm6, %v3247_v43, %v3249_v60  ;;  %v3298_v46 = vsel %vm6196_vm12, %v3253_v36, %v3255_v38  ;;  %vm6202_vm6 = vmmov %vm6187_vm2  ;;  %v3282_v60 = vsel %vm6187_vm2, %v5790_v25, %v5851_v23 }
0x1303   : > { %3359 = vmatprep.subr.mxu0 %v3298_v46  ;;  %4111 = vmatpush3.msra.mxu1 %v3296_v45  ;;  %vm6203_vm12 = vmmov %vm6187_vm2 }
0x1304   : > { %4112 = vmatprep.subr.mxu1 %v4319_v2 }
0x1305   : > { %v3239_v44 = vpop.permute.xlu1 %3238  ;;  %v3251_v47 = vpop.permute.xlu0 %3250 }
0x1306   : > { %v3293_v48 = vsel %vm6197_vm15, %v3239_v44, %v3241_v0  ;;  %v3297_v19 = vsel %vm6198_vm4, %v3251_v47, %v3253_v36  ;;  %vm6204_vm15 = vmmov %vm6187_vm2 }
0x1307   : > { %3360 = vmatpush1.msra.mxu0 %v3297_v19  ;;  %4113 = vmatpush3.msra.mxu1 %v3293_v48  ;;  %vm6205_vm4 = vmmov %vm6187_vm2 }
0x1308   : > { %4114 = vmatprep.subr.mxu1 %v4319_v2 }
0x1309   : > { %v3231_v50 = vpop.permute.xlu1 %3230  ;;  %v3245_v31 = vpop.permute.xlu0 %3244 }
0x130a   : > { %v3290_v35 = vsel %vm6199_vm8, %v3231_v50, %v3233_v22  ;;  %v3295_v40 = vsel %vm6200_vm7, %v3245_v31, %v3247_v43  ;;  %vm6206_vm8 = vmmov %vm6187_vm2 }
0x130b   : > { %3361 = vmatprep.subr.mxu0 %v3295_v40  ;;  %4115 = vmatpush3.msra.mxu1 %v3290_v35  ;;  %vm6207_vm7 = vmmov %vm6187_vm2 }
0x130c   : > { %4116 = vmatprep.subr.mxu1 %v4319_v2 }
0x130d   : > { %v3223_v41 = vpop.permute.xlu1 %3222  ;;  %v3243_v49 = vpop.permute.xlu0 %3242 }
0x130e   : > { %v3294_v51 = vsel %vm6201_vm13, %v3243_v49, %v3245_v31  ;;  %vm6208_vm13 = vmmov %vm6187_vm2 }
0x130f   : > { %3362 = vmatpush1.msra.mxu0 %v3294_v51  ;;  %v3283_v20 = vsel %vm6208_vm13, %v5851_v23, %v5849_v15 }
0x1311   : > { %v3225_v52 = vpop.permute.xlu1 %3224  ;;  %v3237_v53 = vpop.permute.xlu0 %3236 }
0x1312   : > { %v3287_v55 = vsel %vm6187_vm2, %v3223_v41, %v3225_v52  ;;  %v3292_v57 = vsel %vm6202_vm6, %v3237_v53, %v3239_v44  ;;  %vm6209_vm6 = vmmov %vm6187_vm2 }
0x1313   : > { %3363 = vmatprep.subr.mxu0 %v3292_v57  ;;  %4117 = vmatpush3.msra.mxu1 %v3287_v55 }
0x1314   : > { %4118 = vmatprep.subr.mxu1 %v4319_v2 }
0x1315   : > { %v3235_v58 = vpop.permute.xlu0 %3234 }
0x1316   : > { %v3291_v61 = vsel %vm6203_vm12, %v3235_v58, %v3237_v53 }
0x1317   : > { %3364 = vmatpush1.msra.mxu0 %v3291_v61  ;;  %v4342_v61 = vmov 1966171168  }
0x1319   : > { %v3229_v4 = vpop.permute.xlu0 %3228 }
0x131a   : > { %v3289_v7 = vsel %vm6204_vm15, %v3229_v4, %v3231_v50 }
0x131b   : > { %3365 = vmatprep.subr.mxu0 %v3289_v7 }
0x131d   : > { %v3227_v8 = vpop.permute.xlu0 %3226 }
0x131e   : > { %v3288_v10 = vsel %vm6205_vm4, %v3227_v8, %v3229_v4  ;;  %v3208_v59 = vpop.permute.xlu1 %3207  ;;  %v3706_v4 = vunpack.c.l.s4 %v4342_v61 }
0x131f   : > { %3366 = vmatpush1.msra.mxu0 %v3288_v10 }
0x1320   : > { %v3707_v7 = vunpack.c.0.s8 %v3706_v4 }
0x1321   : > { %v3221_v13 = vpop.permute.xlu0 %3220 }
0x1322   : > { %v3286_v14 = vsel %vm6206_vm8, %v3221_v13, %v3223_v41  ;;  %v3710_v10 = vsub.s32 %v3707_v7, %v4485_v3 }
0x1323   : > { %3367 = vmatprep.subr.mxu0 %v3286_v14 }
0x1325   : > { %v3219_v17 = vpop.permute.xlu0 %3218 }
0x1326   : > { %v3285_v18 = vsel %vm6207_vm7, %v3219_v17, %v3221_v13 }
0x1327   : > { %3368 = vmatpush1.msra.mxu0 %v3285_v18 }
0x1328   : > { %3369 = vmatprep.subr.mxu0 %v3283_v20 }
0x1329   : > { %3370 = vmatpush1.msra.mxu0 %v3282_v60  ;;  %v3217_v0 = vpop.permute.xlu0 %3216 }
0x132a   : > { %v3284_v22 = vsel %vm6209_vm6, %v5849_v15, %v3217_v0  ;;  %3863 = vmatmul.mubr.msk.f32.vlgmr.msra.gmra.mxu0 %vm291_vm10, %v3861_v16 }
0x132b   : > { %4119 = vmatpush3.msra.mxu1 %v3284_v22  ;;  %3606 = vmatprep.mubr.f32.mxu0 %v4319_v2 }
0x132c   : > { %4121 = vmatmul.mubr.msk.f32.vlgmr.msra.gmra.mxu1 %vm291_vm10, %v3861_v16  ;;  %4123 = vmatprep.subr.mxu1 %v4319_v2 }
0x132d   : > { %4125 = vmatprep.mubr.msk.f32.mxu1 %vm6004_vm14, %v4319_v2 }
0x13ea   : > { %v3405_v25 = vpop.f32.mrf.mxu0 }
0x13eb   : > { %v3406_v23 = vadd.f32 %v3405_v25, %v3208_v59 }
0x13ec   : > { %v3407_v9 = vpop.f32.mrf.mxu0  ;;  %v3476_v63 = vpop.f32.mrf.mxu1 }
0x13ed   : > { %v3480_v12 = vmax.f32 %v3406_v23, 0.0  ;;  %v3408_v11 = vadd.f32 %v3407_v9, %v3208_v59  ;;  %v3477_v15 = vadd.f32 %v3476_v63, %v3208_v59 }
0x13ee   : > { %v4122_v21 = vpop.f32.mrf.mxu1 }
0x13ef   : > { %v3483_v26 = vsel %vm4702_vm11, %v3480_v12, 0.0  ;;  %v3481_v27 = vmax.f32 %v3408_v11, 0.0  ;;  %v3482_v28 = vmax.f32 %v3477_v15, 0.0 }
0x13f0   : > { %3489 = vrot.lane.b32.xlu0 %v3483_v26, %s4320_s29 }
0x13f1   : > { %v3484_v29 = vsel %vm4708_vm9, %v3481_v27, 0.0  ;;  %v3485_v2 = vsel %vm4715_vm5, %v3482_v28, 0.0 }
0x13f2   : > { %3491 = vrot.lane.b32.xlu1 %v3484_v29, %s4320_s29 }
0x13f4   : > { %3493 = vrot.lane.b32.xlu0 %v3485_v2, %s4320_s29 }
0x1462   : > { %v3490_v54 = vpop.permute.xlu0 %3489 }
0x1463   : > { %3501 = vst.msk [vmem:[#allocation2] sm:$0xff] %vm392_vm1, %v3490_v54  ;;  %vm3730_vm1 = vcmp.lt.s32.totalorder %v298_v1, 384 }
0x1464   : > { %v3492_v30 = vpop.permute.xlu1 %3491 }
0x1465   : > { %v3495_v56 = vsel %vm385_vm0, %v3490_v54, %v3492_v30 }
0x1466   : > { %v3494_v32 = vpop.permute.xlu0 %3493  ;;  %3526 = vrot.lane.b32.xlu1 %v3495_v56, %s4332_s20 }
0x1467   : > { %v3496_v33 = vsel %vm385_vm0, %v3492_v30, %v3494_v32  ;;  %3504 = vst.msk [vmem:[#allocation2 + $0x18] sm:$0xff] %vm385_vm0, %v3494_v32  ;;  %vm3538_vm0 = vcmask 64512  }
0x1468   : > { %3528 = vrot.lane.b32.xlu0 %v3496_v33, %s4332_s20 }
0x146a   : > { %v3505_v62 = vld [vmem:[#allocation2] sm:$0xff] }
0x146b   : > { %3524 = vrot.lane.b32.xlu1 %v3505_v62, %s4332_s20 }
0x146e   : > { %v3508_v34 = vld [vmem:[#allocation2 + $0x18] sm:$0xff] }
0x146f   : > { %3530 = vrot.lane.b32.xlu0 %v3508_v34, %s4332_s20  ;;  %3513 = vperm.xlu1 %4210, %v3510_v6   ;;  %s4139_s20 = smul.u32 48, %s4403_s5  ;;  %s4256_s5 = sshll.u32 %s4343_s30, 4  ;;  %s4257_s5 = int_to_ptr.vmem [resolvable:$false] %s4256_s5 }
0x1470   : > { %s4258_s12 = scalar_lea.vmem %s4257_s5, 96  ;;  %p4259_p3 = scmp.lt.s32.totalorder %s3749_s16, %s4257_s5 }
0x1471   : > { %s3746_s17 = scalar_lea.hbm %s5971_s6, %s4139_s20  ;;  %p4260_p8 = scmp.lt.s32.totalorder %s4258_s12, %s4252_s22 }
0x1473   : > { %p4261_p10 = por %p4260_p8, %p4259_p3 }
0x1475   : > { %p4262_p2 = pnand %p4261_p10, %p4255_p1 }
0x14d8   : > { %v3527_v24 = vpop.permute.xlu1 %3526 }
0x14da   : > { %v3529_v38 = vpop.permute.xlu0 %3528 }
0x14db   : > { %v3533_v39 = vsel %vm903_vm3, %v3527_v24, %v3529_v38 }
0x14dc   : > { %3572 = vmatprep.subr.mxu0 %v3533_v39 }
0x14dd   : > { %v3525_v42 = vpop.permute.xlu1 %3524 }
0x14de   : > { %v3532_v43 = vsel %vm903_vm3, %v3525_v42, %v3527_v24 }
0x14df   : > { %3573 = vmatpush1.msra.mxu0 %v3532_v43 }
0x14e0   : > { %3865 = vmatmul.mubr.msk.f32.vlgmr.msra.gmra.mxu0 %vm3538_vm0, %v3509_v37 }
0x14e1   : > { %v3531_v36 = vpop.permute.xlu0 %3530 }
0x14e2   : > { %v3534_v45 = vsel %vm903_vm3, %v3529_v38, %v3531_v36 }
0x14e3   : > { %4124 = vmatpush3.msra.mxu1 %v3534_v45 }
0x14e4   : > { %4126 = vmatmul.mubr.msk.f32.vlgmr.msra.gmra.mxu1 %vm3538_vm0, %v3509_v37 }
0x14ea   : > { %v3514_v46 = vpop.permute.xlu1 %3513 }
0x14eb   : > { %v3519_v44 = vrot.slane %v3514_v46, %v360_v5 }
0x15a0   : > { %v3608_v47 = vpop.f32.mrf.mxu0 }
0x15a1   : > { %v3609_v48 = vadd.f32 %v3608_v47, %v3519_v44 }
0x15a2   : > { %v3610_v19 = vpop.f32.mrf.mxu0 }
0x15a3   : > { %v3867_v50 = vmul.f32 -1.442695, %v3609_v48  ;;  %v3611_v31 = vadd.f32 %v3610_v19, %v3519_v44 }
0x15a4   : > { %v3679_v35 = vpop.f32.mrf.mxu1 }
0x15a5   : > { %4212 = vpow2.f32 %v3867_v50  ;;  %v3868_v40 = vmul.f32 -1.442695, %v3611_v31  ;;  %v3680_v41 = vadd.f32 %v3679_v35, %v3519_v44 }
0x15a6   : > { %v4127_v49 = vpop.f32.mrf.mxu1 }
0x15a7   : > { %4214 = vpow2.f32 %v3868_v40  ;;  %v3869_v51 = vmul.f32 -1.442695, %v3680_v41 }
0x15a9   : > { %4216 = vpow2.f32 %v3869_v51 }
0x15b2   : > { %v4213_v52 = vpop.eup %4212 }
0x15b3   : > { %v3692_v53 = vadd.f32 1.0, %v4213_v52 }
0x15b4   : > { %v4215_v55 = vpop.eup %4214 }
0x15b5   : > { %v3693_v57 = vadd.f32 1.0, %v4215_v55  ;;  %4218 = vrcp.f32 %v3692_v53 }
0x15b6   : > { %v4217_v58 = vpop.eup %4216 }
0x15b7   : > { %4220 = vrcp.f32 %v3693_v57  ;;  %v3694_v5 = vadd.f32 1.0, %v4217_v58 }
0x15b9   : > { %4222 = vrcp.f32 %v3694_v5 }
0x15c2   : > { %v4219_v8 = vpop.eup %4218 }
0x15c4   : > { %v4221_v13 = vpop.eup %4220 }
0x15c5   : > { %v3704_v14 = vcombine.low %v4219_v8, %v4221_v13 }
0x15c6   : > { %v4223_v17 = vpop.eup %4222 }
0x15c7   : > { %v3711_v18 = vrot.slane %v3704_v14, %v3710_v10  ;;  %v3718_v20 = vrot.slane %v4223_v17, %v3710_v10 }
0x15c9   : > { %v3719_v16 = vcombine.low %v3711_v18, %v3718_v20 }
0x15cb   : > { %v3726_v60 = vrot.slane %v3719_v16, %v3710_v10 }
0x15cd   : > { %3732 = vst.msk [vmem:[%s282_s27] sm:$0x7] %vm3730_vm1, %v3726_v60 }
0x15ce   : > { %4265 = shalt.err (!%p4262_p2)
}
0x15cf   : > { %s4266_s13 = scalar_lea.hbm %s3746_s17, 48  ;;  %s4270_s29 = scalar_lea.hbm %s5971_s6, 96 }
0x15d0   : > { %p4267_p4 = scmp.ne.s32.totalorder %s3746_s17, %s4266_s13  ;;  %p4271_p5 = scmp.lt.s32.totalorder %s3746_s17, %s5971_s6 }
0x15d1   : > { %p4272_p6 = scmp.lt.s32.totalorder %s4270_s29, %s4266_s13 }
0x15d2   : > { %p4268_p9 = pnand %p4267_p4, %p6210_p13 }
0x15d3   : > { %p4273_p11 = por %p4272_p6, %p4271_p5 }
0x15d4   : > { %p4269_p7 = pneg %p4268_p9 }
0x15d6   : > { %p4274_p12 = pnand %p4273_p11, %p4269_p7 }
0x15d8   : > { %4277 = shalt.err (!%p4274_p12)
}
0x15d9   : > { %4142 = dma.vmem_to_hbm [thread:$0]  (%p6210_p13), %s3749_s16, 48, %s3746_s17, %s3734_s21  }
0x15da PF: > { %s3760_s20 = sand.u32 1, %s4304_s23   ;;  %p6211_p0 = scmp.ne.s32.totalorder %s5991_s10, 0 }
0x15db   : > { %p6212_p1 = scmp.ge.s32.totalorder %s4316_s26, 2  ;;  %s3761_s27 = scalar_lea.sflag [#allocation7], %s3760_s20 }
0x15dd   : > { %p4149_p3 = pnand %p6212_p1, %p6211_p0 }
0x15df   : > { %p4150_p8 = pneg %p4149_p3 }
0x15e1   : > { %4299 = dma.done.wait (%p4150_p8), %s3761_s27, 48  }
0x15e2   : > { %4301 = vsyncadd (%p4150_p8), %s3761_s27, 4294967248  ;;  %p21_p10 = scmp.ge.s32.totalorder %s4407_s28, 4   ;;  %s6213_s23 = smov %s4308_s24 }
0x15e3   : > { %s6214_s24 = smov %s4312_s25  ;;  %s6215_s25 = smov %s4419_s7 }
0x15e4   : > { %s6216_s26 = smov %s4407_s28  ;;  %23 = sbr.rel (!%p21_p10) target bundleno = 8 (0x8), region = 106 }
0x15e9   :  { %3766 = vsyncpa [#allocation6], 1 }
0x15ea   :  { %3768 = vsyncpa [#allocation6 + $0x1], 1 }
0x15eb   :  { %3769 = vsyncpa [#allocation7], 1 }
0x15ec   :  { %3771 = vsyncpa [#allocation7 + $0x1], 1 }

</bundles_post_ra>
